<compile_context>
chip_gen: v6e
topology: v6e:2x2x1
jax: 0.10.0
libtpu: 0.0.40
codegen_flags: <defaults>
</compile_context>

<pallas_src>
import functools

import numpy as np
import jax
import jax.numpy as jnp
from jax.experimental import pallas as pl
from jax.experimental.pallas import tpu as pltpu

LANE = 128  # pad the internal-node axis to a whole lane group


def _make_tree_constants(depth: int, n_pad: int):
    """Level-concatenated signed ancestor-selection matrix and right-bit mask.

    gsel_cat : (n_pad, depth * n_leaf); gsel_cat[n, d*n_leaf + l] = +1 if leaf l
               passes ancestor node n going LEFT at level d, -1 if going RIGHT,
               0 otherwise (node axis zero-padded from 2**depth - 1 to n_pad).
    bits_cat : (1, depth * n_leaf); 1.0 where leaf l goes right at level d.
    Level-d path factor for leaf l = bits + gates @ gsel  (= g if left, 1-g if right).
    """
    n_leaf = 2 ** depth
    gsel = np.zeros((depth, n_pad, n_leaf), np.float32)
    bits = np.zeros((depth, 1, n_leaf), np.float32)
    for d in range(depth):
        for leaf in range(n_leaf):
            bit = (leaf >> (depth - 1 - d)) & 1
            node = (2 ** d - 1) + (leaf >> (depth - d))
            bits[d, 0, leaf] = float(bit)
            gsel[d, node, leaf] = -1.0 if bit else 1.0
    gsel_cat = np.concatenate([gsel[d] for d in range(depth)], axis=1)
    bits_cat = np.concatenate([bits[d] for d in range(depth)], axis=1)
    return jnp.asarray(gsel_cat), jnp.asarray(bits_cat)


def _sohot_fused_kernel(x_ref, wall_ref, ball_ref, gsel_ref, bits_ref, leaf_ref,
                        out_ref, *, depth, ssp, trees_num, n_pad, n_leaf,
                        average_output):
    x = x_ref[...]                                                   # (B, F)

    # --- One wide gating matmul for ALL trees: (B, F) @ (F, T*n_pad). ---
    pre = jnp.dot(x, wall_ref[...],
                  preferred_element_type=jnp.float32) + ball_ref[...]  # (B, T*n_pad)

    # Smooth-step gate S(t) (SoHoT / TEL), pure f32 VPU math (no pow path).
    c3 = -2.0 / (ssp * ssp * ssp)
    c1 = 1.5 / ssp
    poly = c3 * (pre * pre * pre) + c1 * pre + 0.5
    gates = jnp.where(pre <= -0.5 * ssp, 0.0,
                      jnp.where(pre >= 0.5 * ssp, 1.0, poly))        # (B, T*n_pad)

    gsel = gsel_ref[...]                                             # (n_pad, depth*n_leaf)
    bits = bits_ref[...]                                             # (1, depth*n_leaf)

    # --- Per tree: ONE wide level matmul, then a VPU product over levels. ---
    probs = []
    for t in range(trees_num):                       # static unroll; 128-lane-aligned slices
        g_t = gates[:, t * n_pad:(t + 1) * n_pad]                    # (B, n_pad)
        lvl = jnp.dot(g_t, gsel,
                      preferred_element_type=jnp.float32) + bits     # (B, depth*n_leaf)
        p = lvl[:, 0:n_leaf]
        for d in range(1, depth):
            p = p * lvl[:, d * n_leaf:(d + 1) * n_leaf]
        probs.append(p)                                              # (B, n_leaf)
    prob_all = jnp.concatenate(probs, axis=-1)                       # (B, T*n_leaf)

    # --- Fused leaf projection + sum over trees: one matmul, no RMW accumulator. ---
    logits = jnp.dot(prob_all, leaf_ref[...],
                     preferred_element_type=jnp.float32)             # (B, C)
    if average_output:
        logits = logits * (1.0 / float(trees_num))

    m = jnp.max(logits, axis=-1, keepdims=True)
    e = jnp.exp(logits - m)
    out_ref[...] = e / jnp.sum(e, axis=-1, keepdims=True)


def sohot_layer_forward(x, wg, bg, leaf_w, *, max_depth=7, ssp=1.0,
                        average_output=False):
    """Pallas forward of SoftHoeffdingTreeLayer.

    x      : (B, F) float32
    wg     : (T, F, N_int) gating weights     (N_int = 2**max_depth - 1)
    bg     : (T, 1, N_int) gating biases
    leaf_w : (T, L, C) leaf logit vectors     (L = 2**max_depth)
    returns: (B, C) softmax probabilities
    """
    B, F = x.shape
    T, _, n_int = wg.shape
    _, n_leaf, C = leaf_w.shape
    assert n_int == 2 ** max_depth - 1 and n_leaf == 2 ** max_depth

    n_pad = ((n_int + LANE - 1) // LANE) * LANE
    pad = n_pad - n_int

    # Host-side layout fusion (zero pads + reshapes, done once per call).
    wg_p = jnp.pad(wg, ((0, 0), (0, 0), (0, pad)))                   # (T, F, n_pad)
    bg_p = jnp.pad(bg, ((0, 0), (0, 0), (0, pad)))                   # (T, 1, n_pad)
    w_all = jnp.transpose(wg_p, (1, 0, 2)).reshape(F, T * n_pad)     # (F, T*n_pad)
    b_all = jnp.transpose(bg_p, (1, 0, 2)).reshape(1, T * n_pad)     # (1, T*n_pad)
    leaf_all = leaf_w.reshape(T * n_leaf, C)                         # (T*n_leaf, C)

    gsel_cat, bits_cat = _make_tree_constants(max_depth, n_pad)

    kernel = functools.partial(
        _sohot_fused_kernel,
        depth=max_depth, ssp=float(ssp), trees_num=T,
        n_pad=n_pad, n_leaf=n_leaf, average_output=average_output)

    vmem = lambda: pl.BlockSpec(memory_space=pltpu.MemorySpace.VMEM)
    return pl.pallas_call(
        kernel,
        out_shape=jax.ShapeDtypeStruct((B, C), jnp.float32),
        in_specs=[vmem() for _ in range(6)],
        out_specs=vmem(),
    )(x, w_all, b_all, gsel_cat, bits_cat, leaf_all)


def _reference_forward(x, wg, bg, leaf_w, *, max_depth, ssp, average_output):
    """Pure-JAX reference of the same forward (for a sanity check)."""
    n_int = 2 ** max_depth - 1
    n_leaf = 2 ** max_depth
    gsel = np.zeros((max_depth, n_int, n_leaf), np.float32)
    bits = np.zeros((max_depth, 1, n_leaf), np.float32)
    for d in range(max_depth):
        for leaf in range(n_leaf):
            bit = (leaf >> (max_depth - 1 - d)) & 1
            node = (2 ** d - 1) + (leaf >> (max_depth - d))
            bits[d, 0, leaf] = float(bit)
            gsel[d, node, leaf] = -1.0 if bit else 1.0
    gsel = jnp.asarray(gsel)
    bits = jnp.asarray(bits)
    pre = jnp.einsum("bf,tfn->tbn", x, wg) + bg                      # (T, B, N_int)
    poly = (-2.0 / ssp ** 3) * pre ** 3 + (1.5 / ssp) * pre + 0.5
    gates = jnp.where(pre <= -0.5 * ssp, 0.0,
                      jnp.where(pre >= 0.5 * ssp, 1.0, poly))
    prob = jnp.ones((wg.shape[0], x.shape[0], n_leaf), jnp.float32)
    for d in range(max_depth):
        prob = prob * (bits[d] + jnp.einsum("tbn,nl->tbl", gates, gsel[d]))
    logits = jnp.einsum("tbl,tlc->tbc", prob, leaf_w)
    agg = logits.mean(0) if average_output else logits.sum(0)
    return jax.nn.softmax(agg, axis=-1)


if __name__ == "__main__":
    # Shapes consistent with the module defaults:
    #   trees_num=10, max_depth=7 -> 127 internal / 128 leaves,
    #   input_dim (sum of per-attribute encodings) = 32, num_classes = 8, batch = 8.
    T, MAX_DEPTH, SSP = 10, 7, 1.0
    B, F, C = 8, 32, 8
    N_INT, N_LEAF = 2 ** MAX_DEPTH - 1, 2 ** MAX_DEPTH

    key = jax.random.PRNGKey(0)
    kx, kw, kb, kl = jax.random.split(key, 4)
    x = jax.random.normal(kx, (B, F), jnp.float32)
    wg = jax.random.normal(kw, (T, F, N_INT), jnp.float32) * (1.0 / np.sqrt(F))
    bg = jax.random.normal(kb, (T, 1, N_INT), jnp.float32) * 0.1
    leaf_w = jax.random.normal(kl, (T, N_LEAF, C), jnp.float32) * 0.5

    out = sohot_layer_forward(x, wg, bg, leaf_w, max_depth=MAX_DEPTH, ssp=SSP,
                              average_output=False)
    out = jax.block_until_ready(out)

    ref = _reference_forward(x, wg, bg, leaf_w, max_depth=MAX_DEPTH, ssp=SSP,
                             average_output=False)
    np.testing.assert_allclose(np.asarray(out), np.asarray(ref),
                               rtol=1e-4, atol=1e-5)
    assert out.shape == (B, C)
    assert np.allclose(np.asarray(out).sum(-1), 1.0, atol=1e-5)
    print("KERNEL_OK")
</pallas_src>

<mosaic_0001>
module attributes {stable_mosaic.version = 11 : i64} {
  func.func @_sohot_fused_kernel(%arg0: memref<8x32xf32, #tpu.memory_space<vmem>>, %arg1: memref<32x1280xf32, #tpu.memory_space<vmem>>, %arg2: memref<1x1280xf32, #tpu.memory_space<vmem>>, %arg3: memref<128x896xf32, #tpu.memory_space<vmem>>, %arg4: memref<1x896xf32, #tpu.memory_space<vmem>>, %arg5: memref<1280x8xf32, #tpu.memory_space<vmem>>, %arg6: memref<8x8xf32, #tpu.memory_space<vmem>>) attributes {dimension_semantics = [], scalar_prefetch = 0 : i64, scratch_operands = 0 : i64, tpu.core_type = #tpu.core_type<tc>} {
    %c0 = arith.constant 0 : index
    %c0_0 = arith.constant 0 : index
    %0 = vector.load %arg0[%c0, %c0_0] : memref<8x32xf32, #tpu.memory_space<vmem>>, vector<8x32xf32>
    %c0_1 = arith.constant 0 : index
    %c0_2 = arith.constant 0 : index
    %1 = vector.load %arg1[%c0_1, %c0_2] : memref<32x1280xf32, #tpu.memory_space<vmem>>, vector<32x1280xf32>
    %cst = arith.constant dense<0.000000e+00> : vector<8x1280xf32>
    %2 = tpu.matmul %0, %1, %cst {dimension_numbers = #tpu.dot_dimension_numbers<[1], [0], [0], [1], [0, 0, 1, 1], [], []>} : vector<8x32xf32>, vector<32x1280xf32>, vector<8x1280xf32> -> vector<8x1280xf32>
    %c0_3 = arith.constant 0 : index
    %c0_4 = arith.constant 0 : index
    %3 = vector.load %arg2[%c0_3, %c0_4] : memref<1x1280xf32, #tpu.memory_space<vmem>>, vector<1x1280xf32>
    %4 = vector.broadcast %3 : vector<1x1280xf32> to vector<8x1280xf32>
    %5 = arith.addf %2, %4 : vector<8x1280xf32>
    %6 = arith.mulf %5, %5 : vector<8x1280xf32>
    %7 = arith.mulf %6, %5 : vector<8x1280xf32>
    %cst_5 = arith.constant -2.000000e+00 : f32
    %8 = vector.broadcast %cst_5 : f32 to vector<8x1280xf32>
    %9 = arith.mulf %8, %7 : vector<8x1280xf32>
    %cst_6 = arith.constant 1.500000e+00 : f32
    %10 = vector.broadcast %cst_6 : f32 to vector<8x1280xf32>
    %11 = arith.mulf %10, %5 : vector<8x1280xf32>
    %12 = arith.addf %9, %11 : vector<8x1280xf32>
    %cst_7 = arith.constant 5.000000e-01 : f32
    %13 = vector.broadcast %cst_7 : f32 to vector<8x1280xf32>
    %14 = arith.addf %12, %13 : vector<8x1280xf32>
    %cst_8 = arith.constant -5.000000e-01 : f32
    %15 = vector.broadcast %cst_8 : f32 to vector<8x1280xf32>
    %16 = arith.cmpf ole, %5, %15 : vector<8x1280xf32>
    %cst_9 = arith.constant 5.000000e-01 : f32
    %17 = vector.broadcast %cst_9 : f32 to vector<8x1280xf32>
    %18 = arith.cmpf oge, %5, %17 : vector<8x1280xf32>
    %cst_10 = arith.constant 1.000000e+00 : f32
    %19 = vector.broadcast %cst_10 : f32 to vector<8x1280xf32>
    %20 = arith.select %18, %19, %14 : vector<8x1280xi1>, vector<8x1280xf32>
    %cst_11 = arith.constant 0.000000e+00 : f32
    %21 = vector.broadcast %cst_11 : f32 to vector<8x1280xf32>
    %22 = arith.select %16, %21, %20 : vector<8x1280xi1>, vector<8x1280xf32>
    %c0_12 = arith.constant 0 : index
    %c0_13 = arith.constant 0 : index
    %23 = vector.load %arg3[%c0_12, %c0_13] : memref<128x896xf32, #tpu.memory_space<vmem>>, vector<128x896xf32>
    %c0_14 = arith.constant 0 : index
    %c0_15 = arith.constant 0 : index
    %24 = vector.load %arg4[%c0_14, %c0_15] : memref<1x896xf32, #tpu.memory_space<vmem>>, vector<1x896xf32>
    %25 = vector.extract_strided_slice %22 {offsets = [0, 0], sizes = [8, 128], strides = [1, 1]} : vector<8x1280xf32> to vector<8x128xf32>
    %cst_16 = arith.constant dense<0.000000e+00> : vector<8x896xf32>
    %26 = tpu.matmul %25, %23, %cst_16 {dimension_numbers = #tpu.dot_dimension_numbers<[1], [0], [0], [1], [0, 0, 1, 1], [], []>} : vector<8x128xf32>, vector<128x896xf32>, vector<8x896xf32> -> vector<8x896xf32>
    %27 = vector.broadcast %24 : vector<1x896xf32> to vector<8x896xf32>
    %28 = arith.addf %26, %27 : vector<8x896xf32>
    %29 = vector.extract_strided_slice %28 {offsets = [0, 0], sizes = [8, 128], strides = [1, 1]} : vector<8x896xf32> to vector<8x128xf32>
    %30 = vector.extract_strided_slice %28 {offsets = [0, 128], sizes = [8, 128], strides = [1, 1]} : vector<8x896xf32> to vector<8x128xf32>
    %31 = arith.mulf %29, %30 : vector<8x128xf32>
    %32 = vector.extract_strided_slice %28 {offsets = [0, 256], sizes = [8, 128], strides = [1, 1]} : vector<8x896xf32> to vector<8x128xf32>
    %33 = arith.mulf %31, %32 : vector<8x128xf32>
    %34 = vector.extract_strided_slice %28 {offsets = [0, 384], sizes = [8, 128], strides = [1, 1]} : vector<8x896xf32> to vector<8x128xf32>
    %35 = arith.mulf %33, %34 : vector<8x128xf32>
    %36 = vector.extract_strided_slice %28 {offsets = [0, 512], sizes = [8, 128], strides = [1, 1]} : vector<8x896xf32> to vector<8x128xf32>
    %37 = arith.mulf %35, %36 : vector<8x128xf32>
    %38 = vector.extract_strided_slice %28 {offsets = [0, 640], sizes = [8, 128], strides = [1, 1]} : vector<8x896xf32> to vector<8x128xf32>
    %39 = arith.mulf %37, %38 : vector<8x128xf32>
    %40 = vector.extract_strided_slice %28 {offsets = [0, 768], sizes = [8, 128], strides = [1, 1]} : vector<8x896xf32> to vector<8x128xf32>
    %41 = arith.mulf %39, %40 : vector<8x128xf32>
    %42 = vector.extract_strided_slice %22 {offsets = [0, 128], sizes = [8, 128], strides = [1, 1]} : vector<8x1280xf32> to vector<8x128xf32>
    %cst_17 = arith.constant dense<0.000000e+00> : vector<8x896xf32>
    %43 = tpu.matmul %42, %23, %cst_17 {dimension_numbers = #tpu.dot_dimension_numbers<[1], [0], [0], [1], [0, 0, 1, 1], [], []>} : vector<8x128xf32>, vector<128x896xf32>, vector<8x896xf32> -> vector<8x896xf32>
    %44 = vector.broadcast %24 : vector<1x896xf32> to vector<8x896xf32>
    %45 = arith.addf %43, %44 : vector<8x896xf32>
    %46 = vector.extract_strided_slice %45 {offsets = [0, 0], sizes = [8, 128], strides = [1, 1]} : vector<8x896xf32> to vector<8x128xf32>
    %47 = vector.extract_strided_slice %45 {offsets = [0, 128], sizes = [8, 128], strides = [1, 1]} : vector<8x896xf32> to vector<8x128xf32>
    %48 = arith.mulf %46, %47 : vector<8x128xf32>
    %49 = vector.extract_strided_slice %45 {offsets = [0, 256], sizes = [8, 128], strides = [1, 1]} : vector<8x896xf32> to vector<8x128xf32>
    %50 = arith.mulf %48, %49 : vector<8x128xf32>
    %51 = vector.extract_strided_slice %45 {offsets = [0, 384], sizes = [8, 128], strides = [1, 1]} : vector<8x896xf32> to vector<8x128xf32>
    %52 = arith.mulf %50, %51 : vector<8x128xf32>
    %53 = vector.extract_strided_slice %45 {offsets = [0, 512], sizes = [8, 128], strides = [1, 1]} : vector<8x896xf32> to vector<8x128xf32>
    %54 = arith.mulf %52, %53 : vector<8x128xf32>
    %55 = vector.extract_strided_slice %45 {offsets = [0, 640], sizes = [8, 128], strides = [1, 1]} : vector<8x896xf32> to vector<8x128xf32>
    %56 = arith.mulf %54, %55 : vector<8x128xf32>
    %57 = vector.extract_strided_slice %45 {offsets = [0, 768], sizes = [8, 128], strides = [1, 1]} : vector<8x896xf32> to vector<8x128xf32>
    %58 = arith.mulf %56, %57 : vector<8x128xf32>
    %59 = vector.extract_strided_slice %22 {offsets = [0, 256], sizes = [8, 128], strides = [1, 1]} : vector<8x1280xf32> to vector<8x128xf32>
    %cst_18 = arith.constant dense<0.000000e+00> : vector<8x896xf32>
    %60 = tpu.matmul %59, %23, %cst_18 {dimension_numbers = #tpu.dot_dimension_numbers<[1], [0], [0], [1], [0, 0, 1, 1], [], []>} : vector<8x128xf32>, vector<128x896xf32>, vector<8x896xf32> -> vector<8x896xf32>
    %61 = vector.broadcast %24 : vector<1x896xf32> to vector<8x896xf32>
    %62 = arith.addf %60, %61 : vector<8x896xf32>
    %63 = vector.extract_strided_slice %62 {offsets = [0, 0], sizes = [8, 128], strides = [1, 1]} : vector<8x896xf32> to vector<8x128xf32>
    %64 = vector.extract_strided_slice %62 {offsets = [0, 128], sizes = [8, 128], strides = [1, 1]} : vector<8x896xf32> to vector<8x128xf32>
    %65 = arith.mulf %63, %64 : vector<8x128xf32>
    %66 = vector.extract_strided_slice %62 {offsets = [0, 256], sizes = [8, 128], strides = [1, 1]} : vector<8x896xf32> to vector<8x128xf32>
    %67 = arith.mulf %65, %66 : vector<8x128xf32>
    %68 = vector.extract_strided_slice %62 {offsets = [0, 384], sizes = [8, 128], strides = [1, 1]} : vector<8x896xf32> to vector<8x128xf32>
    %69 = arith.mulf %67, %68 : vector<8x128xf32>
    %70 = vector.extract_strided_slice %62 {offsets = [0, 512], sizes = [8, 128], strides = [1, 1]} : vector<8x896xf32> to vector<8x128xf32>
    %71 = arith.mulf %69, %70 : vector<8x128xf32>
    %72 = vector.extract_strided_slice %62 {offsets = [0, 640], sizes = [8, 128], strides = [1, 1]} : vector<8x896xf32> to vector<8x128xf32>
    %73 = arith.mulf %71, %72 : vector<8x128xf32>
    %74 = vector.extract_strided_slice %62 {offsets = [0, 768], sizes = [8, 128], strides = [1, 1]} : vector<8x896xf32> to vector<8x128xf32>
    %75 = arith.mulf %73, %74 : vector<8x128xf32>
    %76 = vector.extract_strided_slice %22 {offsets = [0, 384], sizes = [8, 128], strides = [1, 1]} : vector<8x1280xf32> to vector<8x128xf32>
    %cst_19 = arith.constant dense<0.000000e+00> : vector<8x896xf32>
    %77 = tpu.matmul %76, %23, %cst_19 {dimension_numbers = #tpu.dot_dimension_numbers<[1], [0], [0], [1], [0, 0, 1, 1], [], []>} : vector<8x128xf32>, vector<128x896xf32>, vector<8x896xf32> -> vector<8x896xf32>
    %78 = vector.broadcast %24 : vector<1x896xf32> to vector<8x896xf32>
    %79 = arith.addf %77, %78 : vector<8x896xf32>
    %80 = vector.extract_strided_slice %79 {offsets = [0, 0], sizes = [8, 128], strides = [1, 1]} : vector<8x896xf32> to vector<8x128xf32>
    %81 = vector.extract_strided_slice %79 {offsets = [0, 128], sizes = [8, 128], strides = [1, 1]} : vector<8x896xf32> to vector<8x128xf32>
    %82 = arith.mulf %80, %81 : vector<8x128xf32>
    %83 = vector.extract_strided_slice %79 {offsets = [0, 256], sizes = [8, 128], strides = [1, 1]} : vector<8x896xf32> to vector<8x128xf32>
    %84 = arith.mulf %82, %83 : vector<8x128xf32>
    %85 = vector.extract_strided_slice %79 {offsets = [0, 384], sizes = [8, 128], strides = [1, 1]} : vector<8x896xf32> to vector<8x128xf32>
    %86 = arith.mulf %84, %85 : vector<8x128xf32>
    %87 = vector.extract_strided_slice %79 {offsets = [0, 512], sizes = [8, 128], strides = [1, 1]} : vector<8x896xf32> to vector<8x128xf32>
    %88 = arith.mulf %86, %87 : vector<8x128xf32>
    %89 = vector.extract_strided_slice %79 {offsets = [0, 640], sizes = [8, 128], strides = [1, 1]} : vector<8x896xf32> to vector<8x128xf32>
    %90 = arith.mulf %88, %89 : vector<8x128xf32>
    %91 = vector.extract_strided_slice %79 {offsets = [0, 768], sizes = [8, 128], strides = [1, 1]} : vector<8x896xf32> to vector<8x128xf32>
    %92 = arith.mulf %90, %91 : vector<8x128xf32>
    %93 = vector.extract_strided_slice %22 {offsets = [0, 512], sizes = [8, 128], strides = [1, 1]} : vector<8x1280xf32> to vector<8x128xf32>
    %cst_20 = arith.constant dense<0.000000e+00> : vector<8x896xf32>
    %94 = tpu.matmul %93, %23, %cst_20 {dimension_numbers = #tpu.dot_dimension_numbers<[1], [0], [0], [1], [0, 0, 1, 1], [], []>} : vector<8x128xf32>, vector<128x896xf32>, vector<8x896xf32> -> vector<8x896xf32>
    %95 = vector.broadcast %24 : vector<1x896xf32> to vector<8x896xf32>
    %96 = arith.addf %94, %95 : vector<8x896xf32>
    %97 = vector.extract_strided_slice %96 {offsets = [0, 0], sizes = [8, 128], strides = [1, 1]} : vector<8x896xf32> to vector<8x128xf32>
    %98 = vector.extract_strided_slice %96 {offsets = [0, 128], sizes = [8, 128], strides = [1, 1]} : vector<8x896xf32> to vector<8x128xf32>
    %99 = arith.mulf %97, %98 : vector<8x128xf32>
    %100 = vector.extract_strided_slice %96 {offsets = [0, 256], sizes = [8, 128], strides = [1, 1]} : vector<8x896xf32> to vector<8x128xf32>
    %101 = arith.mulf %99, %100 : vector<8x128xf32>
    %102 = vector.extract_strided_slice %96 {offsets = [0, 384], sizes = [8, 128], strides = [1, 1]} : vector<8x896xf32> to vector<8x128xf32>
    %103 = arith.mulf %101, %102 : vector<8x128xf32>
    %104 = vector.extract_strided_slice %96 {offsets = [0, 512], sizes = [8, 128], strides = [1, 1]} : vector<8x896xf32> to vector<8x128xf32>
    %105 = arith.mulf %103, %104 : vector<8x128xf32>
    %106 = vector.extract_strided_slice %96 {offsets = [0, 640], sizes = [8, 128], strides = [1, 1]} : vector<8x896xf32> to vector<8x128xf32>
    %107 = arith.mulf %105, %106 : vector<8x128xf32>
    %108 = vector.extract_strided_slice %96 {offsets = [0, 768], sizes = [8, 128], strides = [1, 1]} : vector<8x896xf32> to vector<8x128xf32>
    %109 = arith.mulf %107, %108 : vector<8x128xf32>
    %110 = vector.extract_strided_slice %22 {offsets = [0, 640], sizes = [8, 128], strides = [1, 1]} : vector<8x1280xf32> to vector<8x128xf32>
    %cst_21 = arith.constant dense<0.000000e+00> : vector<8x896xf32>
    %111 = tpu.matmul %110, %23, %cst_21 {dimension_numbers = #tpu.dot_dimension_numbers<[1], [0], [0], [1], [0, 0, 1, 1], [], []>} : vector<8x128xf32>, vector<128x896xf32>, vector<8x896xf32> -> vector<8x896xf32>
    %112 = vector.broadcast %24 : vector<1x896xf32> to vector<8x896xf32>
    %113 = arith.addf %111, %112 : vector<8x896xf32>
    %114 = vector.extract_strided_slice %113 {offsets = [0, 0], sizes = [8, 128], strides = [1, 1]} : vector<8x896xf32> to vector<8x128xf32>
    %115 = vector.extract_strided_slice %113 {offsets = [0, 128], sizes = [8, 128], strides = [1, 1]} : vector<8x896xf32> to vector<8x128xf32>
    %116 = arith.mulf %114, %115 : vector<8x128xf32>
    %117 = vector.extract_strided_slice %113 {offsets = [0, 256], sizes = [8, 128], strides = [1, 1]} : vector<8x896xf32> to vector<8x128xf32>
    %118 = arith.mulf %116, %117 : vector<8x128xf32>
    %119 = vector.extract_strided_slice %113 {offsets = [0, 384], sizes = [8, 128], strides = [1, 1]} : vector<8x896xf32> to vector<8x128xf32>
    %120 = arith.mulf %118, %119 : vector<8x128xf32>
    %121 = vector.extract_strided_slice %113 {offsets = [0, 512], sizes = [8, 128], strides = [1, 1]} : vector<8x896xf32> to vector<8x128xf32>
    %122 = arith.mulf %120, %121 : vector<8x128xf32>
    %123 = vector.extract_strided_slice %113 {offsets = [0, 640], sizes = [8, 128], strides = [1, 1]} : vector<8x896xf32> to vector<8x128xf32>
    %124 = arith.mulf %122, %123 : vector<8x128xf32>
    %125 = vector.extract_strided_slice %113 {offsets = [0, 768], sizes = [8, 128], strides = [1, 1]} : vector<8x896xf32> to vector<8x128xf32>
    %126 = arith.mulf %124, %125 : vector<8x128xf32>
    %127 = vector.extract_strided_slice %22 {offsets = [0, 768], sizes = [8, 128], strides = [1, 1]} : vector<8x1280xf32> to vector<8x128xf32>
    %cst_22 = arith.constant dense<0.000000e+00> : vector<8x896xf32>
    %128 = tpu.matmul %127, %23, %cst_22 {dimension_numbers = #tpu.dot_dimension_numbers<[1], [0], [0], [1], [0, 0, 1, 1], [], []>} : vector<8x128xf32>, vector<128x896xf32>, vector<8x896xf32> -> vector<8x896xf32>
    %129 = vector.broadcast %24 : vector<1x896xf32> to vector<8x896xf32>
    %130 = arith.addf %128, %129 : vector<8x896xf32>
    %131 = vector.extract_strided_slice %130 {offsets = [0, 0], sizes = [8, 128], strides = [1, 1]} : vector<8x896xf32> to vector<8x128xf32>
    %132 = vector.extract_strided_slice %130 {offsets = [0, 128], sizes = [8, 128], strides = [1, 1]} : vector<8x896xf32> to vector<8x128xf32>
    %133 = arith.mulf %131, %132 : vector<8x128xf32>
    %134 = vector.extract_strided_slice %130 {offsets = [0, 256], sizes = [8, 128], strides = [1, 1]} : vector<8x896xf32> to vector<8x128xf32>
    %135 = arith.mulf %133, %134 : vector<8x128xf32>
    %136 = vector.extract_strided_slice %130 {offsets = [0, 384], sizes = [8, 128], strides = [1, 1]} : vector<8x896xf32> to vector<8x128xf32>
    %137 = arith.mulf %135, %136 : vector<8x128xf32>
    %138 = vector.extract_strided_slice %130 {offsets = [0, 512], sizes = [8, 128], strides = [1, 1]} : vector<8x896xf32> to vector<8x128xf32>
    %139 = arith.mulf %137, %138 : vector<8x128xf32>
    %140 = vector.extract_strided_slice %130 {offsets = [0, 640], sizes = [8, 128], strides = [1, 1]} : vector<8x896xf32> to vector<8x128xf32>
    %141 = arith.mulf %139, %140 : vector<8x128xf32>
    %142 = vector.extract_strided_slice %130 {offsets = [0, 768], sizes = [8, 128], strides = [1, 1]} : vector<8x896xf32> to vector<8x128xf32>
    %143 = arith.mulf %141, %142 : vector<8x128xf32>
    %144 = vector.extract_strided_slice %22 {offsets = [0, 896], sizes = [8, 128], strides = [1, 1]} : vector<8x1280xf32> to vector<8x128xf32>
    %cst_23 = arith.constant dense<0.000000e+00> : vector<8x896xf32>
    %145 = tpu.matmul %144, %23, %cst_23 {dimension_numbers = #tpu.dot_dimension_numbers<[1], [0], [0], [1], [0, 0, 1, 1], [], []>} : vector<8x128xf32>, vector<128x896xf32>, vector<8x896xf32> -> vector<8x896xf32>
    %146 = vector.broadcast %24 : vector<1x896xf32> to vector<8x896xf32>
    %147 = arith.addf %145, %146 : vector<8x896xf32>
    %148 = vector.extract_strided_slice %147 {offsets = [0, 0], sizes = [8, 128], strides = [1, 1]} : vector<8x896xf32> to vector<8x128xf32>
    %149 = vector.extract_strided_slice %147 {offsets = [0, 128], sizes = [8, 128], strides = [1, 1]} : vector<8x896xf32> to vector<8x128xf32>
    %150 = arith.mulf %148, %149 : vector<8x128xf32>
    %151 = vector.extract_strided_slice %147 {offsets = [0, 256], sizes = [8, 128], strides = [1, 1]} : vector<8x896xf32> to vector<8x128xf32>
    %152 = arith.mulf %150, %151 : vector<8x128xf32>
    %153 = vector.extract_strided_slice %147 {offsets = [0, 384], sizes = [8, 128], strides = [1, 1]} : vector<8x896xf32> to vector<8x128xf32>
    %154 = arith.mulf %152, %153 : vector<8x128xf32>
    %155 = vector.extract_strided_slice %147 {offsets = [0, 512], sizes = [8, 128], strides = [1, 1]} : vector<8x896xf32> to vector<8x128xf32>
    %156 = arith.mulf %154, %155 : vector<8x128xf32>
    %157 = vector.extract_strided_slice %147 {offsets = [0, 640], sizes = [8, 128], strides = [1, 1]} : vector<8x896xf32> to vector<8x128xf32>
    %158 = arith.mulf %156, %157 : vector<8x128xf32>
    %159 = vector.extract_strided_slice %147 {offsets = [0, 768], sizes = [8, 128], strides = [1, 1]} : vector<8x896xf32> to vector<8x128xf32>
    %160 = arith.mulf %158, %159 : vector<8x128xf32>
    %161 = vector.extract_strided_slice %22 {offsets = [0, 1024], sizes = [8, 128], strides = [1, 1]} : vector<8x1280xf32> to vector<8x128xf32>
    %cst_24 = arith.constant dense<0.000000e+00> : vector<8x896xf32>
    %162 = tpu.matmul %161, %23, %cst_24 {dimension_numbers = #tpu.dot_dimension_numbers<[1], [0], [0], [1], [0, 0, 1, 1], [], []>} : vector<8x128xf32>, vector<128x896xf32>, vector<8x896xf32> -> vector<8x896xf32>
    %163 = vector.broadcast %24 : vector<1x896xf32> to vector<8x896xf32>
    %164 = arith.addf %162, %163 : vector<8x896xf32>
    %165 = vector.extract_strided_slice %164 {offsets = [0, 0], sizes = [8, 128], strides = [1, 1]} : vector<8x896xf32> to vector<8x128xf32>
    %166 = vector.extract_strided_slice %164 {offsets = [0, 128], sizes = [8, 128], strides = [1, 1]} : vector<8x896xf32> to vector<8x128xf32>
    %167 = arith.mulf %165, %166 : vector<8x128xf32>
    %168 = vector.extract_strided_slice %164 {offsets = [0, 256], sizes = [8, 128], strides = [1, 1]} : vector<8x896xf32> to vector<8x128xf32>
    %169 = arith.mulf %167, %168 : vector<8x128xf32>
    %170 = vector.extract_strided_slice %164 {offsets = [0, 384], sizes = [8, 128], strides = [1, 1]} : vector<8x896xf32> to vector<8x128xf32>
    %171 = arith.mulf %169, %170 : vector<8x128xf32>
    %172 = vector.extract_strided_slice %164 {offsets = [0, 512], sizes = [8, 128], strides = [1, 1]} : vector<8x896xf32> to vector<8x128xf32>
    %173 = arith.mulf %171, %172 : vector<8x128xf32>
    %174 = vector.extract_strided_slice %164 {offsets = [0, 640], sizes = [8, 128], strides = [1, 1]} : vector<8x896xf32> to vector<8x128xf32>
    %175 = arith.mulf %173, %174 : vector<8x128xf32>
    %176 = vector.extract_strided_slice %164 {offsets = [0, 768], sizes = [8, 128], strides = [1, 1]} : vector<8x896xf32> to vector<8x128xf32>
    %177 = arith.mulf %175, %176 : vector<8x128xf32>
    %178 = vector.extract_strided_slice %22 {offsets = [0, 1152], sizes = [8, 128], strides = [1, 1]} : vector<8x1280xf32> to vector<8x128xf32>
    %cst_25 = arith.constant dense<0.000000e+00> : vector<8x896xf32>
    %179 = tpu.matmul %178, %23, %cst_25 {dimension_numbers = #tpu.dot_dimension_numbers<[1], [0], [0], [1], [0, 0, 1, 1], [], []>} : vector<8x128xf32>, vector<128x896xf32>, vector<8x896xf32> -> vector<8x896xf32>
    %180 = vector.broadcast %24 : vector<1x896xf32> to vector<8x896xf32>
    %181 = arith.addf %179, %180 : vector<8x896xf32>
    %182 = vector.extract_strided_slice %181 {offsets = [0, 0], sizes = [8, 128], strides = [1, 1]} : vector<8x896xf32> to vector<8x128xf32>
    %183 = vector.extract_strided_slice %181 {offsets = [0, 128], sizes = [8, 128], strides = [1, 1]} : vector<8x896xf32> to vector<8x128xf32>
    %184 = arith.mulf %182, %183 : vector<8x128xf32>
    %185 = vector.extract_strided_slice %181 {offsets = [0, 256], sizes = [8, 128], strides = [1, 1]} : vector<8x896xf32> to vector<8x128xf32>
    %186 = arith.mulf %184, %185 : vector<8x128xf32>
    %187 = vector.extract_strided_slice %181 {offsets = [0, 384], sizes = [8, 128], strides = [1, 1]} : vector<8x896xf32> to vector<8x128xf32>
    %188 = arith.mulf %186, %187 : vector<8x128xf32>
    %189 = vector.extract_strided_slice %181 {offsets = [0, 512], sizes = [8, 128], strides = [1, 1]} : vector<8x896xf32> to vector<8x128xf32>
    %190 = arith.mulf %188, %189 : vector<8x128xf32>
    %191 = vector.extract_strided_slice %181 {offsets = [0, 640], sizes = [8, 128], strides = [1, 1]} : vector<8x896xf32> to vector<8x128xf32>
    %192 = arith.mulf %190, %191 : vector<8x128xf32>
    %193 = vector.extract_strided_slice %181 {offsets = [0, 768], sizes = [8, 128], strides = [1, 1]} : vector<8x896xf32> to vector<8x128xf32>
    %194 = arith.mulf %192, %193 : vector<8x128xf32>
    %195 = tpu.concatenate %41, %58, %75, %92, %109, %126, %143, %160, %177, %194 in 1 : vector<8x128xf32>, vector<8x128xf32>, vector<8x128xf32>, vector<8x128xf32>, vector<8x128xf32>, vector<8x128xf32>, vector<8x128xf32>, vector<8x128xf32>, vector<8x128xf32>, vector<8x128xf32> -> vector<8x1280xf32>
    %c0_26 = arith.constant 0 : index
    %c0_27 = arith.constant 0 : index
    %196 = vector.load %arg5[%c0_26, %c0_27] : memref<1280x8xf32, #tpu.memory_space<vmem>>, vector<1280x8xf32>
    %cst_28 = arith.constant dense<0.000000e+00> : vector<8x8xf32>
    %197 = tpu.matmul %195, %196, %cst_28 {dimension_numbers = #tpu.dot_dimension_numbers<[1], [0], [0], [1], [0, 0, 1, 1], [], []>} : vector<8x1280xf32>, vector<1280x8xf32>, vector<8x8xf32> -> vector<8x8xf32>
    %cst_29 = arith.constant dense<0xFF800000> : vector<8xf32>
    %198 = vector.multi_reduction <maximumf>, %197, %cst_29 [1] : vector<8x8xf32> to vector<8xf32>
    %199 = vector.shape_cast %198 : vector<8xf32> to vector<8x1xf32>
    %200 = vector.broadcast %199 : vector<8x1xf32> to vector<8x8xf32>
    %201 = arith.subf %197, %200 : vector<8x8xf32>
    %202 = math.exp %201 : vector<8x8xf32>
    %cst_30 = arith.constant dense<0.000000e+00> : vector<8xf32>
    %203 = vector.multi_reduction <add>, %202, %cst_30 [1] : vector<8x8xf32> to vector<8xf32>
    %204 = vector.shape_cast %203 : vector<8xf32> to vector<8x1xf32>
    %205 = vector.broadcast %204 : vector<8x1xf32> to vector<8x8xf32>
    %206 = arith.divf %202, %205 : vector<8x8xf32>
    %c0_31 = arith.constant 0 : index
    %c0_32 = arith.constant 0 : index
    %207 = vector.load %arg6[%c0_31, %c0_32] : memref<8x8xf32, #tpu.memory_space<vmem>>, vector<8x8xf32>
    tpu.vector_store %arg6[%c0_31, %c0_32], %206 {strides = array<i32>} : memref<8x8xf32, #tpu.memory_space<vmem>>, vector<8x8xf32>,
    return
  }
}

</mosaic_0001>

<bundles_post_ra>
// kernel: tpu_custom_call.1
= control target key start
LH: loop header
LB: loop body
LE: loop exit
PB: predicated region body
PF: predicated region fallthrough
CT: control target
= control target key end

     0   :  { %v9324_v4 = vmov 0.0   ;;  %vm119_vm0 = vcmask 261120   ;;  %s9317_s0 = inlined_call_operand.vmem [shape: f32[8,32], index: 0, kind: input, shape index: {}]   ;;  %s9318_s1 = inlined_call_operand.vmem [shape: f32[32,1280], index: 1, kind: input, shape index: {}]   ;;  %s9319_s2 = inlined_call_operand.vmem [shape: f32[1,1280], index: 2, kind: input, shape index: {}]   ;;  %s9320_s3 = inlined_call_operand.vmem [shape: f32[128,896], index: 3, kind: input, shape index: {}]   ;;  %s9321_s4 = inlined_call_operand.vmem [shape: f32[1,896], index: 4, kind: input, shape index: {}]   ;;  %s9322_s5 = inlined_call_operand.vmem [shape: f32[1280,8], index: 5, kind: input, shape index: {}]   ;;  %s9323_s6 = inlined_call_operand.hbm [shape: f32[8,8], index: 6, kind: output, shape index: {}]  }
   0x1   :  { %v56_v0 = vld [vmem:[%s9318_s1 + $0xf8] sm:$0xff]  ;;  %v55_v1 = vld [vmem:[%s9318_s1 + $0xf0] sm:$0xff]  ;;  %v46_v2 = vld [vmem:[%s9318_s1 + $0xa8] sm:$0xff]  ;;  %187 = vmatprep.mubr.f32.mxu0 %v9324_v4  ;;  %400 = vmatprep.mubr.f32.mxu1 %v9324_v4 }
   0x2   :  { %147 = vmatprep.subr.mxu0 %v56_v0  ;;  %v45_v3 = vld [vmem:[%s9318_s1 + $0xa0] sm:$0xff]  ;;  %v36_v5 = vld [vmem:[%s9318_s1 + $0x58] sm:$0xff]  ;;  %v35_v6 = vld [vmem:[%s9318_s1 + $0x50] sm:$0xff] }
   0x3   :  { %148 = vmatpush1.msra.mxu0 %v55_v1  ;;  %v26_v7 = vld [vmem:[%s9318_s1 + $0x8] sm:$0xff]  ;;  %v25_v8 = vld [vmem:[%s9318_s1] sm:$0xff]  ;;  %v48_v13 = vld [vmem:[%s9318_s1 + $0xb8] sm:$0xff] }
   0x4   :  { %149 = vmatprep.subr.mxu0 %v46_v2  ;;  %v5255_v9 = vld [vmem:[%s9317_s0] sm:$0xff]  ;;  %v58_v10 = vld [vmem:[%s9318_s1 + $0x108] sm:$0xff]  ;;  %v47_v15 = vld [vmem:[%s9318_s1 + $0xb0] sm:$0xff] }
   0x5   :  { %150 = vmatpush1.msra.mxu0 %v45_v3  ;;  %v57_v11 = vld [vmem:[%s9318_s1 + $0x100] sm:$0xff]  ;;  %v62_v12 = vld [vmem:[%s9318_s1 + $0x128] sm:$0xff]  ;;  %v52_v16 = vld [vmem:[%s9318_s1 + $0xd8] sm:$0xff] }
   0x6   :  { %151 = vmatprep.subr.mxu0 %v36_v5  ;;  %360 = vmatprep.subr.mxu1 %v62_v12  ;;  %v61_v14 = vld [vmem:[%s9318_s1 + $0x120] sm:$0xff]  ;;  %v38_v17 = vld [vmem:[%s9318_s1 + $0x68] sm:$0xff]  ;;  %v51_v18 = vld [vmem:[%s9318_s1 + $0xd0] sm:$0xff] }
   0x7   :  { %152 = vmatpush1.msra.mxu0 %v35_v6  ;;  %v37_v19 = vld [vmem:[%s9318_s1 + $0x60] sm:$0xff]  ;;  %361 = vmatpush1.msra.mxu1 %v61_v14  ;;  %v42_v20 = vld [vmem:[%s9318_s1 + $0x88] sm:$0xff]  ;;  %v28_v21 = vld [vmem:[%s9318_s1 + $0x18] sm:$0xff] }
   0x8   :  { %153 = vmatprep.subr.mxu0 %v26_v7  ;;  %362 = vmatprep.subr.mxu1 %v52_v16  ;;  %v41_v22 = vld [vmem:[%s9318_s1 + $0x80] sm:$0xff]  ;;  %v27_v23 = vld [vmem:[%s9318_s1 + $0x10] sm:$0xff]  ;;  %v32_v24 = vld [vmem:[%s9318_s1 + $0x38] sm:$0xff] }
   0x9   :  { %154 = vmatpush1.msra.mxu0 %v25_v8  ;;  %363 = vmatpush1.msra.mxu1 %v51_v18  ;;  %v60_v25 = vld [vmem:[%s9318_s1 + $0x118] sm:$0xff]  ;;  %v59_v26 = vld [vmem:[%s9318_s1 + $0x110] sm:$0xff]  ;;  %v50_v27 = vld [vmem:[%s9318_s1 + $0xc8] sm:$0xff] }
   0xa   :  { %4154 = vmatmul.mubr.msk.f32.vlgmr.msra.gmra.mxu0 %vm119_vm0, %v5255_v9  ;;  %218 = vmatprep.subr.mxu0 %v58_v10  ;;  %v31_v28 = vld [vmem:[%s9318_s1 + $0x30] sm:$0xff]  ;;  %v49_v29 = vld [vmem:[%s9318_s1 + $0xc0] sm:$0xff]  ;;  %v40_v30 = vld [vmem:[%s9318_s1 + $0x78] sm:$0xff] }
   0xb   :  { %219 = vmatpush1.msra.mxu0 %v57_v11  ;;  %258 = vmatprep.mubr.f32.mxu0 %v9324_v4  ;;  %v5329_v31 = vld [vmem:[%s9320_s3 + $0x350] sm:$0xff]  ;;  %v5337_v33 = vld [vmem:[%s9320_s3 + $0x348] sm:$0xff]  ;;  %v5347_v35 = vld [vmem:[%s9320_s3 + $0x318] sm:$0xff] }
   0xc   :  { %220 = vmatprep.subr.mxu0 %v48_v13  ;;  %364 = vmatprep.subr.mxu1 %v42_v20  ;;  %v39_v32 = vld [vmem:[%s9318_s1 + $0x70] sm:$0xff]  ;;  %v30_v34 = vld [vmem:[%s9318_s1 + $0x28] sm:$0xff]  ;;  %v29_v36 = vld [vmem:[%s9318_s1 + $0x20] sm:$0xff] }
   0xd   :  { %221 = vmatpush1.msra.mxu0 %v47_v15  ;;  %365 = vmatpush1.msra.mxu1 %v41_v22  ;;  %v5356_v37 = vld [vmem:[%s9320_s3 + $0x310] sm:$0xff]  ;;  %v64_v38 = vld [vmem:[%s9318_s1 + $0x138] sm:$0xff]  ;;  %v54_v40 = vld [vmem:[%s9318_s1 + $0xe8] sm:$0xff] }
   0xe   :  { %222 = vmatprep.subr.mxu0 %v38_v17  ;;  %366 = vmatprep.subr.mxu1 %v32_v24  ;;  %v63_v39 = vld [vmem:[%s9318_s1 + $0x130] sm:$0xff]  ;;  %v5373_v41 = vld [vmem:[%s9320_s3 + $0x2e0] sm:$0xff]  ;;  %v5383_v43 = vld [vmem:[%s9320_s3 + $0x2d8] sm:$0xff] }
   0xf   :  { %223 = vmatpush1.msra.mxu0 %v37_v19  ;;  %367 = vmatpush1.msra.mxu1 %v31_v28  ;;  %v53_v42 = vld [vmem:[%s9318_s1 + $0xe0] sm:$0xff]  ;;  %v44_v44 = vld [vmem:[%s9318_s1 + $0x98] sm:$0xff]  ;;  %v5392_v45 = vld [vmem:[%s9320_s3 + $0x2a8] sm:$0xff] }
  0x10   :  { %224 = vmatprep.subr.mxu0 %v28_v21  ;;  %4157 = vmatmul.mubr.msk.f32.vlgmr.msra.gmra.mxu1 %vm119_vm0, %v5255_v9 }
  0x11   :  { %225 = vmatpush1.msra.mxu0 %v27_v23  ;;  %727 = vmatprep.subr.mxu1 %v5329_v31 }
  0x12   :  { %4155 = vmatmul.mubr.msk.f32.vlgmr.msra.gmra.mxu0 %vm119_vm0, %v5255_v9  ;;  %289 = vmatprep.subr.mxu0 %v60_v25 }
  0x13   :  { %290 = vmatpush1.msra.mxu0 %v59_v26  ;;  %329 = vmatprep.mubr.f32.mxu0 %v9324_v4 }
  0x14   :  { %291 = vmatprep.subr.mxu0 %v50_v27  ;;  %728 = vmatpush1.msra.mxu1 %v5337_v33 }
  0x15   :  { %292 = vmatpush1.msra.mxu0 %v49_v29  ;;  %729 = vmatprep.subr.mxu1 %v5347_v35 }
  0x16   :  { %293 = vmatprep.subr.mxu0 %v40_v30  ;;  %730 = vmatpush1.msra.mxu1 %v5356_v37 }
  0x17   :  { %294 = vmatpush1.msra.mxu0 %v39_v32 }
  0x18   :  { %295 = vmatprep.subr.mxu0 %v30_v34 }
  0x19   :  { %296 = vmatpush1.msra.mxu0 %v29_v36 }
  0x1a   :  { %4156 = vmatmul.mubr.msk.f32.vlgmr.msra.gmra.mxu0 %vm119_vm0, %v5255_v9  ;;  %431 = vmatprep.subr.mxu0 %v64_v38 }
  0x1b   :  { %432 = vmatpush1.msra.mxu0 %v63_v39  ;;  %471 = vmatprep.mubr.f32.mxu0 %v9324_v4 }
  0x1c   :  { %11 = vsyncpa [#allocation3], 0  ;;  %433 = vmatprep.subr.mxu0 %v54_v40  ;;  %v43_v46 = vld [vmem:[%s9318_s1 + $0x90] sm:$0xff]  ;;  %731 = vmatprep.subr.mxu1 %v5373_v41  ;;  %v5401_v47 = vld [vmem:[%s9320_s3 + $0x2a0] sm:$0xff]  ;;  %vm5189_vm4 = vmmov 0  }
  0x1d   :  { %434 = vmatpush1.msra.mxu0 %v53_v42  ;;  %v34_v48 = vld [vmem:[%s9318_s1 + $0x48] sm:$0xff]  ;;  %732 = vmatpush1.msra.mxu1 %v5383_v43  ;;  %v5410_v49 = vld [vmem:[%s9320_s3 + $0x270] sm:$0xff]  ;;  %v33_v50 = vld [vmem:[%s9318_s1 + $0x40] sm:$0xff] }
  0x1e   :  { %435 = vmatprep.subr.mxu0 %v44_v44  ;;  %733 = vmatprep.subr.mxu1 %v5392_v45  ;;  %v5419_v51 = vld [vmem:[%s9320_s3 + $0x268] sm:$0xff]  ;;  %v5424_v52 = vld [vmem:[%s9320_s3 + $0x360] sm:$0xff]  ;;  %v5430_v53 = vld [vmem:[%s9320_s3 + $0x358] sm:$0xff] }
  0x1f   :  { %436 = vmatpush1.msra.mxu0 %v43_v46  ;;  %734 = vmatpush1.msra.mxu1 %v5401_v47  ;;  %v5436_v54 = vld [vmem:[%s9320_s3 + $0x238] sm:$0xff]  ;;  %v5441_v55 = vld [vmem:[%s9320_s3 + $0x328] sm:$0xff]  ;;  %v5447_v56 = vld [vmem:[%s9320_s3 + $0x230] sm:$0xff] }
  0x20   :  { %437 = vmatprep.subr.mxu0 %v34_v48  ;;  %735 = vmatprep.subr.mxu1 %v5410_v49  ;;  %v5455_v57 = vld [vmem:[%s9320_s3 + $0x320] sm:$0xff]  ;;  %v5466_v59 = vld [vmem:[%s9320_s3 + $0x2f0] sm:$0xff]  ;;  %v5472_v60 = vld [vmem:[%s9320_s3 + $0x1f8] sm:$0xff] }
  0x21   :  { %438 = vmatpush1.msra.mxu0 %v33_v50  ;;  %736 = vmatpush1.msra.mxu1 %v5419_v51  ;;  %9802 = vst [vmem:[#allocation5_spill] sm:$0xff] %v5455_v57  ;;  %v5460_v58 = vld [vmem:[%s9320_s3 + $0x200] sm:$0xff]  ;;  %v5478_v61 = vld [vmem:[%s9320_s3 + $0x2e8] sm:$0xff]  ;;  %v5490_v63 = vld [vmem:[%s9320_s3 + $0x2b8] sm:$0xff] }
  0x22   :  { %4158 = vmatmul.mubr.msk.f32.vlgmr.msra.gmra.mxu0 %vm119_vm0, %v5255_v9  ;;  %798 = vmatprep.subr.mxu0 %v5424_v52  ;;  %v5484_v62 = vld [vmem:[%s9320_s3 + $0x1c8] sm:$0xff]  ;;  %v5496_v0 = vld [vmem:[%s9320_s3 + $0x1c0] sm:$0xff]  ;;  %v5502_v1 = vld [vmem:[%s9320_s3 + $0x2b0] sm:$0xff] }
  0x23   :  { %799 = vmatpush1.msra.mxu0 %v5430_v53  ;;  %737 = vmatprep.subr.mxu1 %v5436_v54  ;;  %v5508_v2 = vld [vmem:[%s9320_s3 + $0x190] sm:$0xff]  ;;  %v5514_v3 = vld [vmem:[%s9320_s3 + $0x280] sm:$0xff]  ;;  %v5520_v5 = vld [vmem:[%s9320_s3 + $0x188] sm:$0xff] }
  0x24   :  { %800 = vmatprep.subr.mxu0 %v5441_v55  ;;  %738 = vmatpush1.msra.mxu1 %v5447_v56  ;;  %v5526_v6 = vld [vmem:[%s9320_s3 + $0x278] sm:$0xff]  ;;  %v5538_v8 = vld [vmem:[%s9320_s3 + $0x248] sm:$0xff]  ;;  %v5545_v9 = vld [vmem:[%s9320_s3 + $0x240] sm:$0xff] }
  0x25   :  { %801 = vmatpush1.msra.mxu0 %v5455_v57  ;;  %739 = vmatprep.subr.mxu1 %v5460_v58  ;;  %v5532_v7 = vld [vmem:[%s9320_s3 + $0x158] sm:$0xff]  ;;  %v5552_v10 = vld [vmem:[%s9320_s3 + $0x210] sm:$0xff]  ;;  %v5559_v11 = vld [vmem:[%s9320_s3 + $0x208] sm:$0xff] }
  0x26   :  { %802 = vmatprep.subr.mxu0 %v5466_v59  ;;  %740 = vmatpush1.msra.mxu1 %v5472_v60  ;;  %v5566_v12 = vld [vmem:[%s9320_s3 + $0x1d8] sm:$0xff]  ;;  %v5573_v13 = vld [vmem:[%s9320_s3 + $0x1d0] sm:$0xff]  ;;  %v5579_v14 = vld [vmem:[%s9320_s3 + $0x1a0] sm:$0xff] }
  0x27   :  { %803 = vmatpush1.msra.mxu0 %v5478_v61  ;;  %741 = vmatprep.subr.mxu1 %v5484_v62  ;;  %v5585_v15 = vld [vmem:[%s9320_s3 + $0x198] sm:$0xff]  ;;  %v5591_v16 = vld [vmem:[%s9320_s3 + $0x168] sm:$0xff]  ;;  %v5599_v17 = vld [vmem:[%s9320_s3 + $0x150] sm:$0xff] }
  0x28   :  { %804 = vmatprep.subr.mxu0 %v5490_v63  ;;  %742 = vmatpush1.msra.mxu1 %v5496_v0  ;;  %9803 = vst [vmem:[#allocation6_spill] sm:$0xff] %v5599_v17  ;;  %v5604_v18 = vld [vmem:[%s9320_s3 + $0x160] sm:$0xff]  ;;  %v5616_v20 = vld [vmem:[%s9320_s3 + $0x130] sm:$0xff]  ;;  %v5623_v21 = vld [vmem:[%s9320_s3 + $0x118] sm:$0xff] }
  0x29   :  { %805 = vmatpush1.msra.mxu0 %v5502_v1  ;;  %743 = vmatprep.subr.mxu1 %v5508_v2  ;;  %9804 = vst [vmem:[#allocation7_spill] sm:$0xff] %v5604_v18  ;;  %v5611_v19 = vld [vmem:[%s9320_s3 + $0x120] sm:$0xff]  ;;  %9806 = vst [vmem:[#allocation9_spill] sm:$0xff] %v5616_v20  ;;  %v5628_v22 = vld [vmem:[%s9320_s3 + $0x128] sm:$0xff] }
  0x2a   :  { %806 = vmatprep.subr.mxu0 %v5514_v3  ;;  %744 = vmatpush1.msra.mxu1 %v5520_v5  ;;  %9805 = vst [vmem:[#allocation8_spill] sm:$0xff] %v5611_v19  ;;  %9807 = vst [vmem:[#allocation10_spill] sm:$0xff] %v5623_v21  ;;  %v5635_v23 = vld [vmem:[%s9320_s3 + $0xe8] sm:$0xff]  ;;  %v5640_v24 = vld [vmem:[%s9320_s3 + $0xf8] sm:$0xff] }
  0x2b   :  { %807 = vmatpush1.msra.mxu0 %v5526_v6  ;;  %745 = vmatprep.subr.mxu1 %v5532_v7  ;;  %9808 = vst [vmem:[#allocation11_spill] sm:$0xff] %v5628_v22  ;;  %9809 = vst [vmem:[#allocation12_spill] sm:$0xff] %v5635_v23  ;;  %v5647_v25 = vld [vmem:[%s9320_s3 + $0xe0] sm:$0xff]  ;;  %v5652_v26 = vld [vmem:[%s9320_s3 + $0xf0] sm:$0xff] }
  0x2c   :  { %808 = vmatprep.subr.mxu0 %v5538_v8  ;;  %791 = vmatprep.mubr.f32.mxu1 %v9324_v4  ;;  %9810 = vst [vmem:[#allocation13_spill] sm:$0xff] %v5640_v24  ;;  %9811 = vst [vmem:[#allocation14_spill] sm:$0xff] %v5647_v25  ;;  %v5657_v27 = vld [vmem:[%s9320_s3 + $0xb0] sm:$0xff]  ;;  %v5664_v28 = vld [vmem:[%s9320_s3 + $0xc0] sm:$0xff] }
  0x2d   :  { %809 = vmatpush1.msra.mxu0 %v5545_v9  ;;  %862 = vmatprep.mubr.f32.mxu0 %v9324_v4  ;;  %9812 = vst [vmem:[#allocation15_spill] sm:$0xff] %v5652_v26  ;;  %9813 = vst [vmem:[#allocation16_spill] sm:$0xff] %v5657_v27  ;;  %v5669_v29 = vld [vmem:[%s9320_s3 + $0xa8] sm:$0xff]  ;;  %v5674_v30 = vld [vmem:[%s9320_s3 + $0xb8] sm:$0xff] }
  0x2e   :  { %810 = vmatprep.subr.mxu0 %v5552_v10  ;;  %746 = vmatpush1.msra.mxu1 %v5599_v17  ;;  %9814 = vst [vmem:[#allocation17_spill] sm:$0xff] %v5664_v28  ;;  %9815 = vst [vmem:[#allocation18_spill] sm:$0xff] %v5669_v29  ;;  %v5681_v32 = vld [vmem:[%s9320_s3 + $0x78] sm:$0xff]  ;;  %v5686_v34 = vld [vmem:[%s9320_s3 + $0x88] sm:$0xff] }
  0x2f   :  { %811 = vmatpush1.msra.mxu0 %v5559_v11  ;;  %747 = vmatprep.subr.mxu1 %v5611_v19  ;;  %9816 = vst [vmem:[#allocation19_spill] sm:$0xff] %v5674_v30  ;;  %9817 = vst [vmem:[#allocation20_spill] sm:$0xff] %v5681_v32  ;;  %v5691_v36 = vld [vmem:[%s9320_s3 + $0x70] sm:$0xff]  ;;  %v5698_v38 = vld [vmem:[%s9320_s3 + $0x80] sm:$0xff] }
  0x30   :  { %812 = vmatprep.subr.mxu0 %v5566_v12  ;;  %748 = vmatpush1.msra.mxu1 %v5623_v21  ;;  %9818 = vst [vmem:[#allocation21_spill] sm:$0xff] %v5686_v34  ;;  %9819 = vst [vmem:[#allocation22_spill] sm:$0xff] %v5691_v36  ;;  %v5703_v39 = vld [vmem:[%s9320_s3 + $0x40] sm:$0xff]  ;;  %v5708_v40 = vld [vmem:[%s9320_s3 + $0x50] sm:$0xff] }
  0x31   :  { %813 = vmatpush1.msra.mxu0 %v5573_v13  ;;  %749 = vmatprep.subr.mxu1 %v5635_v23  ;;  %9820 = vst [vmem:[#allocation23_spill] sm:$0xff] %v5698_v38  ;;  %9821 = vst [vmem:[#allocation24_spill] sm:$0xff] %v5703_v39  ;;  %v5715_v42 = vld [vmem:[%s9320_s3 + $0x38] sm:$0xff]  ;;  %v5720_v44 = vld [vmem:[%s9320_s3 + $0x48] sm:$0xff] }
  0x32   :  { %814 = vmatprep.subr.mxu0 %v5579_v14  ;;  %750 = vmatpush1.msra.mxu1 %v5647_v25  ;;  %9822 = vst [vmem:[#allocation25_spill] sm:$0xff] %v5708_v40  ;;  %9823 = vst [vmem:[#allocation26_spill] sm:$0xff] %v5715_v42  ;;  %v5727_v46 = vld [vmem:[%s9320_s3 + $0x8] sm:$0xff]  ;;  %v5732_v48 = vld [vmem:[%s9320_s3 + $0x18] sm:$0xff] }
  0x33   :  { %815 = vmatpush1.msra.mxu0 %v5585_v15  ;;  %751 = vmatprep.subr.mxu1 %v5657_v27  ;;  %9824 = vst [vmem:[#allocation27_spill] sm:$0xff] %v5720_v44  ;;  %9825 = vst [vmem:[#allocation28_spill] sm:$0xff] %v5727_v46  ;;  %v5739_v50 = vld [vmem:[%s9320_s3] sm:$0xff]  ;;  %v5744_v4 = vld [vmem:[%s9320_s3 + $0x10] sm:$0xff] }
  0x34   :  { %816 = vmatprep.subr.mxu0 %v5591_v16  ;;  %752 = vmatpush1.msra.mxu1 %v5669_v29  ;;  %9826 = vst [vmem:[#allocation29_spill] sm:$0xff] %v5732_v48  ;;  %9827 = vst [vmem:[#allocation30_spill] sm:$0xff] %v5739_v50  ;;  %v5774_v29 = vld [vmem:[%s9320_s3 + $0x368] sm:$0xff] }
  0x35   :  { %817 = vmatpush1.msra.mxu0 %v5604_v18  ;;  %753 = vmatprep.subr.mxu1 %v5681_v32  ;;  %9828 = vst [vmem:[#allocation31_spill] sm:$0xff] %v5744_v4  ;;  %9832 = vst [vmem:[#allocation34_spill] sm:$0xff] %v5774_v29 }
  0x36   :  { %818 = vmatprep.subr.mxu0 %v5616_v20  ;;  %754 = vmatpush1.msra.mxu1 %v5691_v36 }
  0x37   :  { %819 = vmatpush1.msra.mxu0 %v5628_v22  ;;  %755 = vmatprep.subr.mxu1 %v5703_v39  ;;  %v5751_v39 = vld [vmem:[%s9320_s3 + $0x370] sm:$0xff] }
  0x38   :  { %820 = vmatprep.subr.mxu0 %v5640_v24  ;;  %756 = vmatpush1.msra.mxu1 %v5715_v42  ;;  %9829 = vst [vmem:[#allocation32_spill] sm:$0xff] %v5751_v39  ;;  %v69_v42 = vlaneseq }
  0x39   :  { %821 = vmatpush1.msra.mxu0 %v5652_v26  ;;  %757 = vmatprep.subr.mxu1 %v5727_v46  ;;  %v5767_v46 = vld [vmem:[%s9319_s2] sm:$0xff] }
  0x3a   :  { %822 = vmatprep.subr.mxu0 %v5664_v28  ;;  %758 = vmatpush1.msra.mxu1 %v5739_v50  ;;  %v5779_v28 = vld [vmem:[%s9320_s3 + $0x378] sm:$0xff] }
  0x3b   :  { %823 = vmatpush1.msra.mxu0 %v5674_v30  ;;  %869 = vmatprep.subr.mxu1 %v5751_v39  ;;  %9833 = vst [vmem:[#allocation35_spill] sm:$0xff] %v5779_v28 }
  0x3c   :  { %824 = vmatprep.subr.mxu0 %v5686_v34 }
  0x3d   :  { %825 = vmatpush1.msra.mxu0 %v5698_v38  ;;  %v5759_v38 = vshrl.u32 %v69_v42, 7 }
  0x3e   :  { %826 = vmatprep.subr.mxu0 %v5708_v40  ;;  %v9830_v40 = vmov 0.0  }
  0x3f   :  { %827 = vmatpush1.msra.mxu0 %v5720_v44  ;;  %v5762_v44 = vsub.s32 0, %v5759_v38 }
  0x40   :  { %828 = vmatprep.subr.mxu0 %v5732_v48 }
  0x41   :  { %829 = vmatpush1.msra.mxu0 %v5744_v4  ;;  %9831 = vst [vmem:[#allocation33_spill] sm:$0xff] %v5762_v44  ;;  %v72_v50 = vrot.slane %v5767_v46, %v5762_v44 }
  0x42   :  { %4584 = vmatprep.subr.mxu0 %v9830_v40 }
  0xca   :  { %v189_v48 = vpop.f32.mrf.mxu0 }
  0xcb   :  { %v190_v4 = vadd.f32 %v189_v48, %v72_v50  ;;  %v5825_v48 = vld [vmem:[%s9320_s3 + $0x308] sm:$0xff] }
  0xcc   :  { %9841 = vst [vmem:[#allocation41_spill] sm:$0xff] %v5825_v48  ;;  %v5832_v50 = vld [vmem:[%s9320_s3 + $0x2c8] sm:$0xff] }
  0xcd   :  { %v478_v36 = vmul.f32 %v190_v4, %v190_v4  ;;  %v508_v32 = vmul.f32 1.5, %v190_v4  ;;  %vm538_vm1 = vcmp.le.f32.partialorder %v190_v4, -0.5  ;;  %vm548_vm2 = vcmp.ge.f32.partialorder %v190_v4, 0.5  ;;  %9842 = vst [vmem:[#allocation42_spill] sm:$0xff] %v5832_v50 }
  0xce   :  { %vm5783_vm3 = vmneg %vm538_vm1 }
  0xcf   :  { %v488_v39 = vmul.f32 %v478_v36, %v190_v4  ;;  %v5790_v4 = vld [vmem:[%s9320_s3 + $0x338] sm:$0xff]  ;;  %v191_v36 = vpop.f32.mrf.mxu0 }
  0xd0   :  { %9836 = vst [vmem:[#allocation36_spill] sm:$0xff] %v5790_v4 }
  0xd1   :  { %v498_v34 = vmul.f32 -2.0, %v488_v39  ;;  %v5820_v39 = vld [vmem:[%s9320_s3 + $0x2f8] sm:$0xff] }
  0xd2   :  { %9840 = vst [vmem:[#allocation40_spill] sm:$0xff] %v5820_v39 }
  0xd3   :  { %v518_v30 = vadd.f32 %v508_v32, %v498_v34  ;;  %v5806_v32 = vld [vmem:[%s9320_s3 + $0x340] sm:$0xff] }
  0xd4   :  { %9838 = vst [vmem:[#allocation38_spill] sm:$0xff] %v5806_v32  ;;  %v5813_v34 = vld [vmem:[%s9320_s3 + $0x300] sm:$0xff] }
  0xd5   :  { %v528_v42 = vadd.f32 0.5, %v518_v30  ;;  %v5801_v30 = vld [vmem:[%s9320_s3 + $0x330] sm:$0xff]  ;;  %9839 = vst [vmem:[#allocation39_spill] sm:$0xff] %v5813_v34 }
  0xd6   :  { %9837 = vst [vmem:[#allocation37_spill] sm:$0xff] %v5801_v30 }
  0xd7   :  { %v5781_v44 = vsel %vm548_vm2, 1.0, %v528_v42  ;;  %v5839_v42 = vld [vmem:[%s9320_s3 + $0x2c0] sm:$0xff] }
  0xd8   :  { %4160 = vmatmul.mubr.msk.f32.vlgmr.msra.gmra.mxu1 %vm5783_vm3, %v5781_v44  ;;  %4162 = vmatmul.mubr.msk.f32.vlgmr.msra.gmra.mxu0 %vm5783_vm3, %v5781_v44  ;;  %9843 = vst [vmem:[#allocation43_spill] sm:$0xff] %v5839_v42 }
  0xd9   :  { %870 = vmatpush1.msra.mxu1 %v5774_v29  ;;  %4585 = vmatpush3.msra.mxu0 %v5779_v28 }
  0xda   :  { %871 = vmatprep.subr.mxu1 %v5790_v4  ;;  %4586 = vmatprep.subr.mxu0 %v9830_v40 }
  0xdb   :  { %872 = vmatpush1.msra.mxu1 %v5801_v30  ;;  %4587 = vmatpush3.msra.mxu0 %v5806_v32  ;;  %v5844_v30 = vld [vmem:[%s9320_s3 + $0x2d0] sm:$0xff]  ;;  %v5858_v32 = vld [vmem:[%s9320_s3 + $0x288] sm:$0xff] }
  0xdc   :  { %873 = vmatprep.subr.mxu1 %v5813_v34  ;;  %4588 = vmatprep.subr.mxu0 %v9830_v40  ;;  %9844 = vst [vmem:[#allocation44_spill] sm:$0xff] %v5844_v30  ;;  %v5851_v34 = vld [vmem:[%s9320_s3 + $0x290] sm:$0xff]  ;;  %9846 = vst [vmem:[#allocation46_spill] sm:$0xff] %v5858_v32 }
  0xdd   :  { %874 = vmatpush1.msra.mxu1 %v5820_v39  ;;  %4589 = vmatpush3.msra.mxu0 %v5825_v48  ;;  %9845 = vst [vmem:[#allocation45_spill] sm:$0xff] %v5851_v34  ;;  %v5863_v39 = vld [vmem:[%s9320_s3 + $0x298] sm:$0xff]  ;;  %v5877_v48 = vld [vmem:[%s9320_s3 + $0x250] sm:$0xff] }
  0xde   :  { %875 = vmatprep.subr.mxu1 %v5832_v50  ;;  %4590 = vmatprep.subr.mxu0 %v9830_v40  ;;  %9847 = vst [vmem:[#allocation47_spill] sm:$0xff] %v5863_v39  ;;  %v5870_v50 = vld [vmem:[%s9320_s3 + $0x258] sm:$0xff]  ;;  %9849 = vst [vmem:[#allocation49_spill] sm:$0xff] %v5877_v48 }
  0xdf   :  { %876 = vmatpush1.msra.mxu1 %v5839_v42  ;;  %4591 = vmatpush3.msra.mxu0 %v5844_v30  ;;  %9848 = vst [vmem:[#allocation48_spill] sm:$0xff] %v5870_v50  ;;  %v5882_v42 = vld [vmem:[%s9320_s3 + $0x260] sm:$0xff]  ;;  %v5896_v30 = vld [vmem:[%s9320_s3 + $0x218] sm:$0xff] }
  0xe0   :  { %877 = vmatprep.subr.mxu1 %v5851_v34  ;;  %4592 = vmatprep.subr.mxu0 %v9830_v40  ;;  %9850 = vst [vmem:[#allocation50_spill] sm:$0xff] %v5882_v42  ;;  %v5889_v34 = vld [vmem:[%s9320_s3 + $0x220] sm:$0xff]  ;;  %9852 = vst [vmem:[#allocation52_spill] sm:$0xff] %v5896_v30 }
  0xe1   :  { %878 = vmatpush1.msra.mxu1 %v5858_v32  ;;  %4593 = vmatpush3.msra.mxu0 %v5863_v39  ;;  %9851 = vst [vmem:[#allocation51_spill] sm:$0xff] %v5889_v34  ;;  %v5901_v32 = vld [vmem:[%s9320_s3 + $0x228] sm:$0xff]  ;;  %v5915_v39 = vld [vmem:[%s9320_s3 + $0x1e0] sm:$0xff] }
  0xe2   :  { %879 = vmatprep.subr.mxu1 %v5870_v50  ;;  %4594 = vmatprep.subr.mxu0 %v9830_v40  ;;  %9853 = vst [vmem:[#allocation53_spill] sm:$0xff] %v5901_v32  ;;  %v5908_v50 = vld [vmem:[%s9320_s3 + $0x1e8] sm:$0xff]  ;;  %9855 = vst [vmem:[#allocation55_spill] sm:$0xff] %v5915_v39 }
  0xe3   :  { %880 = vmatpush1.msra.mxu1 %v5877_v48  ;;  %4595 = vmatpush3.msra.mxu0 %v5882_v42  ;;  %9854 = vst [vmem:[#allocation54_spill] sm:$0xff] %v5908_v50  ;;  %v5920_v48 = vld [vmem:[%s9320_s3 + $0x1f0] sm:$0xff]  ;;  %v5934_v42 = vld [vmem:[%s9320_s3 + $0x1a8] sm:$0xff] }
  0xe4   :  { %881 = vmatprep.subr.mxu1 %v5889_v34  ;;  %4596 = vmatprep.subr.mxu0 %v9830_v40  ;;  %9856 = vst [vmem:[#allocation56_spill] sm:$0xff] %v5920_v48  ;;  %v5927_v34 = vld [vmem:[%s9320_s3 + $0x1b0] sm:$0xff]  ;;  %9858 = vst [vmem:[#allocation58_spill] sm:$0xff] %v5934_v42 }
  0xe5   :  { %882 = vmatpush1.msra.mxu1 %v5896_v30  ;;  %4597 = vmatpush3.msra.mxu0 %v5901_v32  ;;  %9857 = vst [vmem:[#allocation57_spill] sm:$0xff] %v5927_v34  ;;  %v5939_v30 = vld [vmem:[%s9320_s3 + $0x1b8] sm:$0xff]  ;;  %v5953_v32 = vld [vmem:[%s9320_s3 + $0x170] sm:$0xff] }
  0xe6   :  { %883 = vmatprep.subr.mxu1 %v5908_v50  ;;  %4598 = vmatprep.subr.mxu0 %v9830_v40  ;;  %9859 = vst [vmem:[#allocation59_spill] sm:$0xff] %v5939_v30  ;;  %v5946_v50 = vld [vmem:[%s9320_s3 + $0x178] sm:$0xff]  ;;  %9861 = vst [vmem:[#allocation61_spill] sm:$0xff] %v5953_v32 }
  0xe7   :  { %884 = vmatpush1.msra.mxu1 %v5915_v39  ;;  %4599 = vmatpush3.msra.mxu0 %v5920_v48  ;;  %9860 = vst [vmem:[#allocation60_spill] sm:$0xff] %v5946_v50  ;;  %v5958_v39 = vld [vmem:[%s9320_s3 + $0x180] sm:$0xff]  ;;  %v5972_v48 = vld [vmem:[%s9320_s3 + $0x138] sm:$0xff] }
  0xe8   :  { %885 = vmatprep.subr.mxu1 %v5927_v34  ;;  %4600 = vmatprep.subr.mxu0 %v9830_v40  ;;  %9862 = vst [vmem:[#allocation62_spill] sm:$0xff] %v5958_v39  ;;  %v5965_v34 = vld [vmem:[%s9320_s3 + $0x140] sm:$0xff]  ;;  %9864 = vst [vmem:[#allocation64_spill] sm:$0xff] %v5972_v48 }
  0xe9   :  { %886 = vmatpush1.msra.mxu1 %v5934_v42  ;;  %4601 = vmatpush3.msra.mxu0 %v5939_v30  ;;  %9863 = vst [vmem:[#allocation63_spill] sm:$0xff] %v5965_v34  ;;  %v5977_v42 = vld [vmem:[%s9320_s3 + $0x148] sm:$0xff]  ;;  %v5991_v30 = vld [vmem:[%s9320_s3 + $0x100] sm:$0xff] }
  0xea   :  { %887 = vmatprep.subr.mxu1 %v5946_v50  ;;  %4602 = vmatprep.subr.mxu0 %v9830_v40  ;;  %9865 = vst [vmem:[#allocation65_spill] sm:$0xff] %v5977_v42  ;;  %v5984_v50 = vld [vmem:[%s9320_s3 + $0x108] sm:$0xff]  ;;  %9867 = vst [vmem:[#allocation67_spill] sm:$0xff] %v5991_v30 }
  0xeb   :  { %888 = vmatpush1.msra.mxu1 %v5953_v32  ;;  %4603 = vmatpush3.msra.mxu0 %v5958_v39  ;;  %9866 = vst [vmem:[#allocation66_spill] sm:$0xff] %v5984_v50  ;;  %v5996_v32 = vld [vmem:[%s9320_s3 + $0x110] sm:$0xff]  ;;  %v6010_v39 = vld [vmem:[%s9320_s3 + $0xc8] sm:$0xff] }
  0xec   :  { %889 = vmatprep.subr.mxu1 %v5965_v34  ;;  %4604 = vmatprep.subr.mxu0 %v9830_v40  ;;  %9868 = vst [vmem:[#allocation68_spill] sm:$0xff] %v5996_v32  ;;  %v6003_v34 = vld [vmem:[%s9320_s3 + $0xd0] sm:$0xff]  ;;  %9870 = vst [vmem:[#allocation70_spill] sm:$0xff] %v6010_v39 }
  0xed   :  { %890 = vmatpush1.msra.mxu1 %v5972_v48  ;;  %4605 = vmatpush3.msra.mxu0 %v5977_v42  ;;  %9869 = vst [vmem:[#allocation69_spill] sm:$0xff] %v6003_v34  ;;  %v6015_v48 = vld [vmem:[%s9320_s3 + $0xd8] sm:$0xff]  ;;  %v6029_v42 = vld [vmem:[%s9320_s3 + $0x90] sm:$0xff] }
  0xee   :  { %891 = vmatprep.subr.mxu1 %v5984_v50  ;;  %4606 = vmatprep.subr.mxu0 %v9830_v40  ;;  %9871 = vst [vmem:[#allocation71_spill] sm:$0xff] %v6015_v48  ;;  %v6022_v50 = vld [vmem:[%s9320_s3 + $0x98] sm:$0xff] }
  0xef   :  { %892 = vmatpush1.msra.mxu1 %v5991_v30  ;;  %4607 = vmatpush3.msra.mxu0 %v5996_v32  ;;  %9872 = vst [vmem:[#allocation72_spill] sm:$0xff] %v6022_v50  ;;  %v6034_v30 = vld [vmem:[%s9320_s3 + $0xa0] sm:$0xff]  ;;  %v6048_v32 = vld [vmem:[%s9320_s3 + $0x58] sm:$0xff] }
  0xf0   :  { %893 = vmatprep.subr.mxu1 %v6003_v34  ;;  %4608 = vmatprep.subr.mxu0 %v9830_v40  ;;  %9873 = vst [vmem:[#allocation73_spill] sm:$0xff] %v6034_v30  ;;  %v6041_v34 = vld [vmem:[%s9320_s3 + $0x60] sm:$0xff] }
  0xf1   :  { %894 = vmatpush1.msra.mxu1 %v6010_v39  ;;  %4609 = vmatpush3.msra.mxu0 %v6015_v48  ;;  %v6053_v39 = vld [vmem:[%s9320_s3 + $0x68] sm:$0xff]  ;;  %v6067_v48 = vld [vmem:[%s9320_s3 + $0x20] sm:$0xff] }
  0xf2   :  { %895 = vmatprep.subr.mxu1 %v6022_v50  ;;  %4610 = vmatprep.subr.mxu0 %v9830_v40  ;;  %v6060_v50 = vld [vmem:[%s9320_s3 + $0x28] sm:$0xff]  ;;  %9875 = vst [vmem:[#allocation75_spill] sm:$0xff] %v6067_v48 }
  0xf3   :  { %896 = vmatpush1.msra.mxu1 %v6029_v42  ;;  %4611 = vmatpush3.msra.mxu0 %v6034_v30  ;;  %9874 = vst [vmem:[#allocation74_spill] sm:$0xff] %v6060_v50  ;;  %v6074_v30 = vld [vmem:[%s9320_s3 + $0x30] sm:$0xff] }
  0xf4   :  { %897 = vmatprep.subr.mxu1 %v6041_v34  ;;  %4612 = vmatprep.subr.mxu0 %v9830_v40  ;;  %9876 = vst [vmem:[#allocation76_spill] sm:$0xff] %v6074_v30 }
  0xf5   :  { %898 = vmatpush1.msra.mxu1 %v6048_v32  ;;  %4613 = vmatpush3.msra.mxu0 %v6053_v39 }
  0xf6   :  { %899 = vmatprep.subr.mxu1 %v6060_v50  ;;  %4614 = vmatprep.subr.mxu0 %v9830_v40  ;;  %v6090_v50 = vsub.s32 1, %v5759_v38 }
  0xf7   :  { %900 = vmatpush1.msra.mxu1 %v6067_v48  ;;  %933 = vmatprep.mubr.f32.mxu1 %v9830_v40 }
  0xf8   :  { %4615 = vmatpush3.msra.mxu0 %v6074_v30  ;;  %4616 = vmatprep.mubr.msk.f32.mxu0 %vm5189_vm4, %v9830_v40  ;;  %9877 = vst [vmem:[#allocation77_spill] sm:$0xff] %v6090_v50 }
  0xf9   :  { %4164 = vmatmul.mubr.msk.f32.vlgmr.msra.gmra.mxu1 %vm5783_vm3, %v5781_v44  ;;  %4617 = vmatmul.mubr.msk.f32.vlgmr.msra.gmra.mxu0 %vm5783_vm3, %v5781_v44  ;;  %v76_v44 = vrot.slane %v5767_v46, %v6090_v50 }
  0xfa   :  { %1016 = vmatprep.subr.mxu1 %v5329_v31  ;;  %1087 = vmatprep.subr.mxu0 %v5424_v52 }
  0xfb   :  { %1017 = vmatpush1.msra.mxu1 %v5337_v33  ;;  %1088 = vmatpush1.msra.mxu0 %v5430_v53 }
  0xfc   :  { %1018 = vmatprep.subr.mxu1 %v5347_v35  ;;  %1089 = vmatprep.subr.mxu0 %v5441_v55 }
  0xfd   :  { %1019 = vmatpush1.msra.mxu1 %v5356_v37  ;;  %1090 = vmatpush1.msra.mxu0 %v5455_v57  ;;  %v192_v57 = vadd.f32 %v191_v36, %v76_v44 }
  0xfe   :  { %1020 = vmatprep.subr.mxu1 %v5373_v41  ;;  %1091 = vmatprep.subr.mxu0 %v5466_v59 }
  0xff   :  { %1021 = vmatpush1.msra.mxu1 %v5383_v43  ;;  %1092 = vmatpush1.msra.mxu0 %v5478_v61  ;;  %v479_v44 = vmul.f32 %v192_v57, %v192_v57  ;;  %vm539_vm5 = vcmp.le.f32.partialorder %v192_v57, -0.5  ;;  %vm549_vm6 = vcmp.ge.f32.partialorder %v192_v57, 0.5 }
 0x100   :  { %1022 = vmatprep.subr.mxu1 %v5392_v45  ;;  %1093 = vmatprep.subr.mxu0 %v5490_v63  ;;  %vm6162_vm7 = vmneg %vm539_vm5 }
 0x101   :  { %1023 = vmatpush1.msra.mxu1 %v5401_v47  ;;  %1094 = vmatpush1.msra.mxu0 %v5502_v1  ;;  %v489_v36 = vmul.f32 %v479_v44, %v192_v57  ;;  %v509_v44 = vmul.f32 1.5, %v192_v57  ;;  %v9896_v57 = vld [vmem:[#allocation37_spill] sm:$0xff] }
 0x102   :  { %1024 = vmatprep.subr.mxu1 %v5410_v49  ;;  %1095 = vmatprep.subr.mxu0 %v5514_v3 }
 0x103   :  { %1025 = vmatpush1.msra.mxu1 %v5419_v51  ;;  %1096 = vmatpush1.msra.mxu0 %v5526_v6  ;;  %v499_v50 = vmul.f32 -2.0, %v489_v36  ;;  %v9880_v36 = vld [vmem:[#allocation19_spill] sm:$0xff] }
 0x104   :  { %1026 = vmatprep.subr.mxu1 %v5436_v54  ;;  %1097 = vmatprep.subr.mxu0 %v5538_v8 }
 0x105   :  { %1027 = vmatpush1.msra.mxu1 %v5447_v56  ;;  %1098 = vmatpush1.msra.mxu0 %v5545_v9 }
 0x106   :  { %1028 = vmatprep.subr.mxu1 %v5460_v58  ;;  %1099 = vmatprep.subr.mxu0 %v5552_v10 }
 0x107   :  { %1029 = vmatpush1.msra.mxu1 %v5472_v60  ;;  %1100 = vmatpush1.msra.mxu0 %v5559_v11 }
 0x108   :  { %1030 = vmatprep.subr.mxu1 %v5484_v62  ;;  %1101 = vmatprep.subr.mxu0 %v5566_v12 }
 0x109   :  { %1031 = vmatpush1.msra.mxu1 %v5496_v0  ;;  %1102 = vmatpush1.msra.mxu0 %v5573_v13 }
 0x10a   :  { %1032 = vmatprep.subr.mxu1 %v5508_v2  ;;  %1103 = vmatprep.subr.mxu0 %v5579_v14 }
 0x10b   :  { %1033 = vmatpush1.msra.mxu1 %v5520_v5  ;;  %1104 = vmatpush1.msra.mxu0 %v5585_v15 }
 0x10c   :  { %1034 = vmatprep.subr.mxu1 %v5532_v7  ;;  %1105 = vmatprep.subr.mxu0 %v5591_v16 }
 0x10d   :  { %1035 = vmatpush1.msra.mxu1 %v5599_v17  ;;  %1106 = vmatpush1.msra.mxu0 %v5604_v18  ;;  %v9878_v18 = vld [vmem:[#allocation17_spill] sm:$0xff]  ;;  %v9887_v17 = vld [vmem:[#allocation26_spill] sm:$0xff] }
 0x10e   :  { %1036 = vmatprep.subr.mxu1 %v5611_v19  ;;  %1107 = vmatprep.subr.mxu0 %v5616_v20  ;;  %v519_v19 = vadd.f32 %v509_v44, %v499_v50  ;;  %v9879_v20 = vld [vmem:[#allocation18_spill] sm:$0xff]  ;;  %v9888_v50 = vld [vmem:[#allocation27_spill] sm:$0xff]  ;;  %v9889_v44 = vld [vmem:[#allocation28_spill] sm:$0xff] }
 0x10f   :  { %1037 = vmatpush1.msra.mxu1 %v5623_v21  ;;  %1108 = vmatpush1.msra.mxu0 %v5628_v22  ;;  %v9881_v21 = vld [vmem:[#allocation20_spill] sm:$0xff]  ;;  %v9882_v22 = vld [vmem:[#allocation21_spill] sm:$0xff] }
 0x110   :  { %1038 = vmatprep.subr.mxu1 %v5635_v23  ;;  %1109 = vmatprep.subr.mxu0 %v5640_v24  ;;  %v9883_v23 = vld [vmem:[#allocation22_spill] sm:$0xff]  ;;  %v9884_v24 = vld [vmem:[#allocation23_spill] sm:$0xff] }
 0x111   :  { %1039 = vmatpush1.msra.mxu1 %v5647_v25  ;;  %1110 = vmatpush1.msra.mxu0 %v5652_v26  ;;  %v9885_v25 = vld [vmem:[#allocation24_spill] sm:$0xff]  ;;  %v9886_v26 = vld [vmem:[#allocation25_spill] sm:$0xff] }
 0x112   :  { %1040 = vmatprep.subr.mxu1 %v5657_v27  ;;  %1111 = vmatprep.subr.mxu0 %v9878_v18  ;;  %v529_v27 = vadd.f32 0.5, %v519_v19  ;;  %v9972_v19 = vld [vmem:[#allocation49_spill] sm:$0xff] }
 0x113   :  { %1041 = vmatpush1.msra.mxu1 %v9879_v20  ;;  %1112 = vmatpush1.msra.mxu0 %v9880_v36  ;;  %v9890_v36 = vld [vmem:[#allocation29_spill] sm:$0xff] }
 0x114   :  { %1042 = vmatprep.subr.mxu1 %v9881_v21  ;;  %1113 = vmatprep.subr.mxu0 %v9882_v22  ;;  %v9891_v21 = vld [vmem:[#allocation30_spill] sm:$0xff] }
 0x115   :  { %1043 = vmatpush1.msra.mxu1 %v9883_v23  ;;  %1114 = vmatpush1.msra.mxu0 %v9884_v24  ;;  %v9892_v24 = vld [vmem:[#allocation31_spill] sm:$0xff] }
 0x116   :  { %1044 = vmatprep.subr.mxu1 %v9885_v25  ;;  %1115 = vmatprep.subr.mxu0 %v9886_v26  ;;  %v6160_v26 = vsel %vm549_vm6, 1.0, %v529_v27  ;;  %v9897_v27 = vld [vmem:[#allocation38_spill] sm:$0xff] }
 0x117   :  { %1045 = vmatpush1.msra.mxu1 %v9887_v17  ;;  %1116 = vmatpush1.msra.mxu0 %v9888_v50 }
 0x118   :  { %1046 = vmatprep.subr.mxu1 %v9889_v44  ;;  %1117 = vmatprep.subr.mxu0 %v9890_v36  ;;  %v9899_v36 = vld [vmem:[#allocation40_spill] sm:$0xff]  ;;  %v9901_v44 = vld [vmem:[#allocation42_spill] sm:$0xff] }
 0x119   :  { %1047 = vmatpush1.msra.mxu1 %v9891_v21  ;;  %1080 = vmatprep.mubr.f32.mxu1 %v9830_v40  ;;  %v9895_v21 = vld [vmem:[#allocation32_spill] sm:$0xff] }
 0x11a   :  { %1118 = vmatpush1.msra.mxu0 %v9892_v24  ;;  %1151 = vmatprep.mubr.f32.mxu0 %v9830_v40  ;;  %v9898_v24 = vld [vmem:[#allocation39_spill] sm:$0xff] }
 0x11b   :  { %4168 = vmatmul.mubr.msk.f32.vlgmr.msra.gmra.mxu1 %vm6162_vm7, %v6160_v26  ;;  %4170 = vmatmul.mubr.msk.f32.vlgmr.msra.gmra.mxu0 %vm6162_vm7, %v6160_v26 }
 0x11c   :  { %1158 = vmatprep.subr.mxu1 %v9895_v21  ;;  %4619 = vmatprep.subr.mxu0 %v9830_v40  ;;  %v9900_v21 = vld [vmem:[#allocation41_spill] sm:$0xff] }
 0x11d   :  { %1159 = vmatpush1.msra.mxu1 %v5774_v29  ;;  %4620 = vmatpush3.msra.mxu0 %v5779_v28  ;;  %v9902_v28 = vld [vmem:[#allocation43_spill] sm:$0xff]  ;;  %v9904_v29 = vld [vmem:[#allocation45_spill] sm:$0xff] }
 0x11e   :  { %1160 = vmatprep.subr.mxu1 %v5790_v4  ;;  %4621 = vmatprep.subr.mxu0 %v9830_v40  ;;  %v9903_v4 = vld [vmem:[#allocation44_spill] sm:$0xff] }
 0x11f   :  { %1161 = vmatpush1.msra.mxu1 %v9896_v57  ;;  %4622 = vmatpush3.msra.mxu0 %v9897_v27  ;;  %v9905_v27 = vld [vmem:[#allocation46_spill] sm:$0xff]  ;;  %v9907_v57 = vld [vmem:[#allocation48_spill] sm:$0xff] }
 0x120   :  { %1162 = vmatprep.subr.mxu1 %v9898_v24  ;;  %4623 = vmatprep.subr.mxu0 %v9830_v40  ;;  %v9906_v24 = vld [vmem:[#allocation47_spill] sm:$0xff] }
 0x121   :  { %1163 = vmatpush1.msra.mxu1 %v9899_v36  ;;  %4624 = vmatpush3.msra.mxu0 %v9900_v21  ;;  %v9908_v21 = vld [vmem:[#allocation49_spill] sm:$0xff]  ;;  %v9910_v36 = vld [vmem:[#allocation51_spill] sm:$0xff] }
 0x122   :  { %1164 = vmatprep.subr.mxu1 %v9901_v44  ;;  %4625 = vmatprep.subr.mxu0 %v9830_v40  ;;  %v9909_v44 = vld [vmem:[#allocation50_spill] sm:$0xff] }
 0x123   :  { %1165 = vmatpush1.msra.mxu1 %v9902_v28  ;;  %4626 = vmatpush3.msra.mxu0 %v9903_v4  ;;  %v9911_v4 = vld [vmem:[#allocation52_spill] sm:$0xff]  ;;  %v9913_v28 = vld [vmem:[#allocation54_spill] sm:$0xff] }
 0x124   :  { %1166 = vmatprep.subr.mxu1 %v9904_v29  ;;  %4627 = vmatprep.subr.mxu0 %v9830_v40  ;;  %v9912_v29 = vld [vmem:[#allocation53_spill] sm:$0xff] }
 0x125   :  { %1167 = vmatpush1.msra.mxu1 %v9905_v27  ;;  %4628 = vmatpush3.msra.mxu0 %v9906_v24  ;;  %v9914_v24 = vld [vmem:[#allocation55_spill] sm:$0xff]  ;;  %v9916_v27 = vld [vmem:[#allocation57_spill] sm:$0xff] }
 0x126   :  { %1168 = vmatprep.subr.mxu1 %v9907_v57  ;;  %4629 = vmatprep.subr.mxu0 %v9830_v40  ;;  %v9915_v57 = vld [vmem:[#allocation56_spill] sm:$0xff] }
 0x127   :  { %1169 = vmatpush1.msra.mxu1 %v9908_v21  ;;  %4630 = vmatpush3.msra.mxu0 %v9909_v44  ;;  %v9917_v44 = vld [vmem:[#allocation58_spill] sm:$0xff]  ;;  %v9919_v21 = vld [vmem:[#allocation60_spill] sm:$0xff] }
 0x128   :  { %1170 = vmatprep.subr.mxu1 %v9910_v36  ;;  %4631 = vmatprep.subr.mxu0 %v9830_v40  ;;  %v9918_v36 = vld [vmem:[#allocation59_spill] sm:$0xff] }
 0x129   :  { %1171 = vmatpush1.msra.mxu1 %v9911_v4  ;;  %4632 = vmatpush3.msra.mxu0 %v9912_v29  ;;  %v9920_v29 = vld [vmem:[#allocation61_spill] sm:$0xff]  ;;  %v9922_v4 = vld [vmem:[#allocation63_spill] sm:$0xff] }
 0x12a   :  { %1172 = vmatprep.subr.mxu1 %v9913_v28  ;;  %4633 = vmatprep.subr.mxu0 %v9830_v40  ;;  %v9921_v28 = vld [vmem:[#allocation62_spill] sm:$0xff] }
 0x12b   :  { %1173 = vmatpush1.msra.mxu1 %v9914_v24  ;;  %4634 = vmatpush3.msra.mxu0 %v9915_v57  ;;  %v9923_v57 = vld [vmem:[#allocation64_spill] sm:$0xff]  ;;  %v9925_v24 = vld [vmem:[#allocation66_spill] sm:$0xff] }
 0x12c   :  { %1174 = vmatprep.subr.mxu1 %v9916_v27  ;;  %4635 = vmatprep.subr.mxu0 %v9830_v40  ;;  %v9924_v27 = vld [vmem:[#allocation65_spill] sm:$0xff] }
 0x12d   :  { %1175 = vmatpush1.msra.mxu1 %v9917_v44  ;;  %4636 = vmatpush3.msra.mxu0 %v9918_v36  ;;  %v9926_v36 = vld [vmem:[#allocation67_spill] sm:$0xff]  ;;  %v9928_v44 = vld [vmem:[#allocation69_spill] sm:$0xff] }
 0x12e   :  { %1176 = vmatprep.subr.mxu1 %v9919_v21  ;;  %4637 = vmatprep.subr.mxu0 %v9830_v40  ;;  %v9927_v21 = vld [vmem:[#allocation68_spill] sm:$0xff] }
 0x12f   :  { %1177 = vmatpush1.msra.mxu1 %v9920_v29  ;;  %4638 = vmatpush3.msra.mxu0 %v9921_v28  ;;  %v9929_v28 = vld [vmem:[#allocation70_spill] sm:$0xff]  ;;  %v9931_v29 = vld [vmem:[#allocation72_spill] sm:$0xff] }
 0x130   :  { %1178 = vmatprep.subr.mxu1 %v9922_v4  ;;  %4639 = vmatprep.subr.mxu0 %v9830_v40  ;;  %v9930_v4 = vld [vmem:[#allocation71_spill] sm:$0xff] }
 0x131   :  { %1179 = vmatpush1.msra.mxu1 %v9923_v57  ;;  %4640 = vmatpush3.msra.mxu0 %v9924_v27 }
 0x132   :  { %1180 = vmatprep.subr.mxu1 %v9925_v24  ;;  %4641 = vmatprep.subr.mxu0 %v9830_v40  ;;  %v9932_v24 = vld [vmem:[#allocation73_spill] sm:$0xff] }
 0x133   :  { %1181 = vmatpush1.msra.mxu1 %v9926_v36  ;;  %4642 = vmatpush3.msra.mxu0 %v9927_v21 }
 0x134   :  { %1182 = vmatprep.subr.mxu1 %v9928_v44  ;;  %4643 = vmatprep.subr.mxu0 %v9830_v40  ;;  %v9933_v44 = vld [vmem:[#allocation74_spill] sm:$0xff] }
 0x135   :  { %1183 = vmatpush1.msra.mxu1 %v9929_v28  ;;  %4644 = vmatpush3.msra.mxu0 %v9930_v4 }
 0x136   :  { %1184 = vmatprep.subr.mxu1 %v9931_v29  ;;  %4645 = vmatprep.subr.mxu0 %v9830_v40 }
 0x137   :  { %1185 = vmatpush1.msra.mxu1 %v6029_v42  ;;  %4646 = vmatpush3.msra.mxu0 %v9932_v24 }
 0x138   :  { %1186 = vmatprep.subr.mxu1 %v6041_v34  ;;  %4647 = vmatprep.subr.mxu0 %v9830_v40 }
 0x139   :  { %1187 = vmatpush1.msra.mxu1 %v6048_v32  ;;  %4648 = vmatpush3.msra.mxu0 %v6053_v39 }
 0x13a   :  { %1188 = vmatprep.subr.mxu1 %v9933_v44  ;;  %4649 = vmatprep.subr.mxu0 %v9830_v40 }
 0x13b   :  { %1189 = vmatpush1.msra.mxu1 %v6067_v48  ;;  %1222 = vmatprep.mubr.f32.mxu1 %v9830_v40  ;;  %v9458_v48 = vsub.s32 2, %v5759_v38 }
 0x13c   :  { %4650 = vmatpush3.msra.mxu0 %v6074_v30  ;;  %4651 = vmatprep.mubr.msk.f32.mxu0 %vm5189_vm4, %v9830_v40  ;;  %v9934_v30 = vld [vmem:[#allocation5_spill] sm:$0xff] }
 0x13d   :  { %4172 = vmatmul.mubr.msk.f32.vlgmr.msra.gmra.mxu1 %vm6162_vm7, %v6160_v26  ;;  %4652 = vmatmul.mubr.msk.f32.vlgmr.msra.gmra.mxu0 %vm6162_vm7, %v6160_v26  ;;  %v9969_v26 = vld [vmem:[#allocation46_spill] sm:$0xff] }
 0x13e   :  { %1305 = vmatprep.subr.mxu1 %v5329_v31  ;;  %1376 = vmatprep.subr.mxu0 %v5424_v52  ;;  %v80_v31 = vrot.slane %v5767_v46, %v9458_v48 }
 0x13f   :  { %1306 = vmatpush1.msra.mxu1 %v5337_v33  ;;  %1377 = vmatpush1.msra.mxu0 %v5430_v53  ;;  %v260_v33 = vpop.f32.mrf.mxu0  ;;  %v9939_v53 = vld [vmem:[#allocation10_spill] sm:$0xff] }
 0x140   :  { %1307 = vmatprep.subr.mxu1 %v5347_v35  ;;  %1378 = vmatprep.subr.mxu0 %v5441_v55  ;;  %v261_v35 = vadd.f32 %v260_v33, %v80_v31  ;;  %v9941_v55 = vld [vmem:[#allocation12_spill] sm:$0xff]  ;;  %v9973_v31 = vld [vmem:[#allocation50_spill] sm:$0xff]  ;;  %v9974_v33 = vld [vmem:[#allocation51_spill] sm:$0xff] }
 0x141   :  { %1308 = vmatpush1.msra.mxu1 %v5356_v37  ;;  %1379 = vmatpush1.msra.mxu0 %v9934_v30  ;;  %v9970_v30 = vld [vmem:[#allocation47_spill] sm:$0xff] }
 0x142   :  { %1309 = vmatprep.subr.mxu1 %v5373_v41  ;;  %1380 = vmatprep.subr.mxu0 %v5466_v59  ;;  %v480_v37 = vmul.f32 %v261_v35, %v261_v35  ;;  %v510_v52 = vmul.f32 1.5, %v261_v35  ;;  %v9944_v59 = vld [vmem:[#allocation15_spill] sm:$0xff]  ;;  %vm540_vm8 = vcmp.le.f32.partialorder %v261_v35, -0.5  ;;  %vm550_vm9 = vcmp.ge.f32.partialorder %v261_v35, 0.5 }
 0x143   :  { %1310 = vmatpush1.msra.mxu1 %v5383_v43  ;;  %1381 = vmatpush1.msra.mxu0 %v5478_v61  ;;  %v9935_v43 = vld [vmem:[#allocation6_spill] sm:$0xff]  ;;  %vm6317_vm10 = vmneg %vm540_vm8 }
 0x144   :  { %1311 = vmatprep.subr.mxu1 %v5392_v45  ;;  %1382 = vmatprep.subr.mxu0 %v5490_v63  ;;  %v490_v41 = vmul.f32 %v480_v37, %v261_v35  ;;  %v9936_v45 = vld [vmem:[#allocation7_spill] sm:$0xff]  ;;  %v9947_v63 = vld [vmem:[#allocation20_spill] sm:$0xff]  ;;  %v9976_v37 = vld [vmem:[#allocation53_spill] sm:$0xff] }
 0x145   :  { %1312 = vmatpush1.msra.mxu1 %v5401_v47  ;;  %1383 = vmatpush1.msra.mxu0 %v5502_v1  ;;  %v9937_v47 = vld [vmem:[#allocation8_spill] sm:$0xff]  ;;  %v9949_v1 = vld [vmem:[#allocation25_spill] sm:$0xff] }
 0x146   :  { %1313 = vmatprep.subr.mxu1 %v5410_v49  ;;  %1384 = vmatprep.subr.mxu0 %v5514_v3  ;;  %v9938_v49 = vld [vmem:[#allocation9_spill] sm:$0xff]  ;;  %v9950_v3 = vld [vmem:[#allocation28_spill] sm:$0xff] }
 0x147   :  { %1314 = vmatpush1.msra.mxu1 %v5419_v51  ;;  %1385 = vmatpush1.msra.mxu0 %v5526_v6  ;;  %v500_v51 = vmul.f32 -2.0, %v490_v41  ;;  %v9952_v6 = vld [vmem:[#allocation30_spill] sm:$0xff]  ;;  %v9975_v35 = vld [vmem:[#allocation52_spill] sm:$0xff] }
 0x148   :  { %1315 = vmatprep.subr.mxu1 %v5436_v54  ;;  %1386 = vmatprep.subr.mxu0 %v5538_v8  ;;  %v9940_v54 = vld [vmem:[#allocation11_spill] sm:$0xff]  ;;  %v9977_v41 = vld [vmem:[#allocation54_spill] sm:$0xff] }
 0x149   :  { %1316 = vmatpush1.msra.mxu1 %v5447_v56  ;;  %1387 = vmatpush1.msra.mxu0 %v5545_v9  ;;  %v9942_v56 = vld [vmem:[#allocation13_spill] sm:$0xff]  ;;  %v520_v61 = vadd.f32 %v510_v52, %v500_v51  ;;  %v9982_v51 = vld [vmem:[#allocation59_spill] sm:$0xff]  ;;  %v9983_v52 = vld [vmem:[#allocation60_spill] sm:$0xff] }
 0x14a   :  { %1317 = vmatprep.subr.mxu1 %v5460_v58  ;;  %1388 = vmatprep.subr.mxu0 %v5552_v10  ;;  %v9943_v58 = vld [vmem:[#allocation14_spill] sm:$0xff]  ;;  %v9956_v10 = vld [vmem:[#allocation32_spill] sm:$0xff] }
 0x14b   :  { %1318 = vmatpush1.msra.mxu1 %v5472_v60  ;;  %1389 = vmatpush1.msra.mxu0 %v5559_v11  ;;  %v9945_v60 = vld [vmem:[#allocation16_spill] sm:$0xff]  ;;  %v9957_v11 = vld [vmem:[#allocation34_spill] sm:$0xff] }
 0x14c   :  { %1319 = vmatprep.subr.mxu1 %v5484_v62  ;;  %1390 = vmatprep.subr.mxu0 %v5566_v12  ;;  %v9946_v62 = vld [vmem:[#allocation19_spill] sm:$0xff]  ;;  %v6461_v9 = vld [vmem:[%s9320_s3 + $0x2f0] sm:$0xff] }
 0x14d   :  { %1320 = vmatpush1.msra.mxu1 %v5496_v0  ;;  %1391 = vmatpush1.msra.mxu0 %v5573_v13  ;;  %v9948_v0 = vld [vmem:[#allocation23_spill] sm:$0xff]  ;;  %v9959_v13 = vld [vmem:[#allocation36_spill] sm:$0xff] }
 0x14e   :  { %1321 = vmatprep.subr.mxu1 %v5508_v2  ;;  %1392 = vmatprep.subr.mxu0 %v5579_v14  ;;  %v530_v2 = vadd.f32 0.5, %v520_v61  ;;  %v9958_v12 = vld [vmem:[#allocation35_spill] sm:$0xff]  ;;  %v9960_v14 = vld [vmem:[#allocation37_spill] sm:$0xff]  ;;  %v9457_v61 = vsub.s32 3, %v5759_v38 }
 0x14f   :  { %1322 = vmatpush1.msra.mxu1 %v5520_v5  ;;  %1393 = vmatpush1.msra.mxu0 %v5585_v15  ;;  %v9951_v5 = vld [vmem:[#allocation29_spill] sm:$0xff]  ;;  %v9961_v15 = vld [vmem:[#allocation38_spill] sm:$0xff] }
 0x150   :  { %1323 = vmatprep.subr.mxu1 %v5532_v7  ;;  %1394 = vmatprep.subr.mxu0 %v5591_v16  ;;  %v9953_v7 = vld [vmem:[#allocation31_spill] sm:$0xff]  ;;  %v6315_v8 = vsel %vm550_vm9, 1.0, %v530_v2 }
 0x151   :  { %1324 = vmatpush1.msra.mxu1 %v9935_v43  ;;  %1395 = vmatpush1.msra.mxu0 %v9936_v45  ;;  %v9962_v16 = vld [vmem:[#allocation39_spill] sm:$0xff]  ;;  %v9979_v45 = vld [vmem:[#allocation56_spill] sm:$0xff] }
 0x152   :  { %1325 = vmatprep.subr.mxu1 %v9937_v47  ;;  %1396 = vmatprep.subr.mxu0 %v9938_v49  ;;  %v9978_v43 = vld [vmem:[#allocation55_spill] sm:$0xff]  ;;  %v9980_v47 = vld [vmem:[#allocation57_spill] sm:$0xff]  ;;  %v9981_v49 = vld [vmem:[#allocation58_spill] sm:$0xff] }
 0x153   :  { %1326 = vmatpush1.msra.mxu1 %v9939_v53  ;;  %1397 = vmatpush1.msra.mxu0 %v9940_v54  ;;  %v9984_v53 = vld [vmem:[#allocation61_spill] sm:$0xff]  ;;  %v9985_v54 = vld [vmem:[#allocation62_spill] sm:$0xff]  ;;  %v6428_v2 = vld [vmem:[%s9320_s3 + $0x318] sm:$0xff] }
 0x154   :  { %1327 = vmatprep.subr.mxu1 %v9941_v55  ;;  %1398 = vmatprep.subr.mxu0 %v9942_v56  ;;  %v9986_v55 = vld [vmem:[#allocation63_spill] sm:$0xff]  ;;  %v9987_v56 = vld [vmem:[#allocation66_spill] sm:$0xff] }
 0x155   :  { %1328 = vmatpush1.msra.mxu1 %v9943_v58  ;;  %1399 = vmatpush1.msra.mxu0 %v9944_v59  ;;  %v9988_v58 = vld [vmem:[#allocation69_spill] sm:$0xff]  ;;  %v9989_v59 = vld [vmem:[#allocation75_spill] sm:$0xff] }
 0x156   :  { %1329 = vmatprep.subr.mxu1 %v9945_v60  ;;  %1400 = vmatprep.subr.mxu0 %v9878_v18  ;;  %v9964_v18 = vld [vmem:[#allocation41_spill] sm:$0xff]  ;;  %v9990_v60 = vld [vmem:[#allocation76_spill] sm:$0xff] }
 0x157   :  { %1330 = vmatpush1.msra.mxu1 %v9879_v20  ;;  %1401 = vmatpush1.msra.mxu0 %v9946_v62  ;;  %v9965_v20 = vld [vmem:[#allocation42_spill] sm:$0xff] }
 0x158   :  { %1331 = vmatprep.subr.mxu1 %v9947_v63  ;;  %1402 = vmatprep.subr.mxu0 %v9882_v22  ;;  %v9966_v22 = vld [vmem:[#allocation43_spill] sm:$0xff]  ;;  %v6404_v62 = vld [vmem:[%s9320_s3 + $0x350] sm:$0xff]  ;;  %v6410_v63 = vld [vmem:[%s9320_s3 + $0x360] sm:$0xff] }
 0x159   :  { %1332 = vmatpush1.msra.mxu1 %v9883_v23  ;;  %1403 = vmatpush1.msra.mxu0 %v9948_v0  ;;  %v9967_v23 = vld [vmem:[#allocation44_spill] sm:$0xff]  ;;  %v6416_v0 = vld [vmem:[%s9320_s3 + $0x348] sm:$0xff] }
 0x15a   :  { %1333 = vmatprep.subr.mxu1 %v9885_v25  ;;  %1404 = vmatprep.subr.mxu0 %v9949_v1  ;;  %v9968_v25 = vld [vmem:[#allocation45_spill] sm:$0xff]  ;;  %v6422_v1 = vld [vmem:[%s9320_s3 + $0x358] sm:$0xff] }
 0x15b   :  { %1334 = vmatpush1.msra.mxu1 %v9887_v17  ;;  %1405 = vmatpush1.msra.mxu0 %v9888_v50  ;;  %v9963_v17 = vld [vmem:[#allocation40_spill] sm:$0xff] }
 0x15c   :  { %1335 = vmatprep.subr.mxu1 %v9950_v3  ;;  %1406 = vmatprep.subr.mxu0 %v9951_v5  ;;  %v9971_v50 = vld [vmem:[#allocation48_spill] sm:$0xff]  ;;  %v6434_v3 = vld [vmem:[%s9320_s3 + $0x328] sm:$0xff]  ;;  %v6440_v5 = vld [vmem:[%s9320_s3 + $0x310] sm:$0xff] }
 0x15d   :  { %1336 = vmatpush1.msra.mxu1 %v9952_v6  ;;  %1369 = vmatprep.mubr.f32.mxu1 %v9830_v40  ;;  %v6446_v6 = vld [vmem:[%s9320_s3 + $0x320] sm:$0xff] }
 0x15e   :  { %1407 = vmatpush1.msra.mxu0 %v9953_v7  ;;  %1440 = vmatprep.mubr.f32.mxu0 %v9830_v40  ;;  %v84_v7 = vrot.slane %v5767_v46, %v9457_v61  ;;  %v6473_v46 = vld [vmem:[%s9320_s3 + $0x2e8] sm:$0xff]  ;;  %v6561_v61 = vld [vmem:[%s9320_s3 + $0x210] sm:$0xff] }
 0x15f   :  { %4176 = vmatmul.mubr.msk.f32.vlgmr.msra.gmra.mxu1 %vm6317_vm10, %v6315_v8  ;;  %4178 = vmatmul.mubr.msk.f32.vlgmr.msra.gmra.mxu0 %vm6317_vm10, %v6315_v8  ;;  %10004 = vst [vmem:[#allocation72_spill] sm:$0xff] %v6561_v61 }
 0x160   :  { %1447 = vmatprep.subr.mxu1 %v9956_v10  ;;  %4654 = vmatprep.subr.mxu0 %v9830_v40  ;;  %v262_v10 = vpop.f32.mrf.mxu0 }
 0x161   :  { %1448 = vmatpush1.msra.mxu1 %v9957_v11  ;;  %4655 = vmatpush3.msra.mxu0 %v9958_v12  ;;  %v6467_v11 = vld [vmem:[%s9320_s3 + $0x2d8] sm:$0xff]  ;;  %v6479_v12 = vld [vmem:[%s9320_s3 + $0x2a8] sm:$0xff] }
 0x162   :  { %1449 = vmatprep.subr.mxu1 %v9959_v13  ;;  %4656 = vmatprep.subr.mxu0 %v9830_v40  ;;  %v6485_v13 = vld [vmem:[%s9320_s3 + $0x2b8] sm:$0xff] }
 0x163   :  { %1450 = vmatpush1.msra.mxu1 %v9960_v14  ;;  %4657 = vmatpush3.msra.mxu0 %v9961_v15  ;;  %9991 = vst [vmem:[#allocation17_spill] sm:$0xff] %v6485_v13  ;;  %v6491_v14 = vld [vmem:[%s9320_s3 + $0x2a0] sm:$0xff]  ;;  %v6497_v15 = vld [vmem:[%s9320_s3 + $0x2b0] sm:$0xff] }
 0x164   :  { %1451 = vmatprep.subr.mxu1 %v9962_v16  ;;  %4658 = vmatprep.subr.mxu0 %v9830_v40  ;;  %9992 = vst [vmem:[#allocation18_spill] sm:$0xff] %v6491_v14  ;;  %9993 = vst [vmem:[#allocation21_spill] sm:$0xff] %v6497_v15  ;;  %v6500_v16 = vadd.f32 %v262_v10, %v84_v7  ;;  %v6549_v7 = vld [vmem:[%s9320_s3 + $0x240] sm:$0xff] }
 0x165   :  { %1452 = vmatpush1.msra.mxu1 %v9963_v17  ;;  %4659 = vmatpush3.msra.mxu0 %v9964_v18  ;;  %v6505_v17 = vld [vmem:[%s9320_s3 + $0x270] sm:$0xff]  ;;  %v6511_v18 = vld [vmem:[%s9320_s3 + $0x280] sm:$0xff]  ;;  %10002 = vst [vmem:[#allocation70_spill] sm:$0xff] %v6549_v7 }
 0x166   :  { %1453 = vmatprep.subr.mxu1 %v9965_v20  ;;  %4660 = vmatprep.subr.mxu0 %v9830_v40  ;;  %9994 = vst [vmem:[#allocation22_spill] sm:$0xff] %v6505_v17  ;;  %9995 = vst [vmem:[#allocation24_spill] sm:$0xff] %v6511_v18  ;;  %v6517_v20 = vld [vmem:[%s9320_s3 + $0x268] sm:$0xff]  ;;  %v6555_v10 = vld [vmem:[%s9320_s3 + $0x200] sm:$0xff]  ;;  %v481_v48 = vmul.f32 %v6500_v16, %v6500_v16  ;;  %vm541_vm11 = vcmp.le.f32.partialorder %v6500_v16, -0.5  ;;  %vm551_vm12 = vcmp.ge.f32.partialorder %v6500_v16, 0.5 }
 0x167   :  { %1454 = vmatpush1.msra.mxu1 %v9966_v22  ;;  %4661 = vmatpush3.msra.mxu0 %v9967_v23  ;;  %9996 = vst [vmem:[#allocation26_spill] sm:$0xff] %v6517_v20  ;;  %v6523_v22 = vld [vmem:[%s9320_s3 + $0x278] sm:$0xff]  ;;  %v6526_v23 = vpop.f32.mrf.mxu0  ;;  %10003 = vst [vmem:[#allocation71_spill] sm:$0xff] %v6555_v10 }
 0x168   :  { %1455 = vmatprep.subr.mxu1 %v9968_v25  ;;  %4662 = vmatprep.subr.mxu0 %v9830_v40  ;;  %9997 = vst [vmem:[#allocation27_spill] sm:$0xff] %v6523_v22  ;;  %9998 = vst [vmem:[#allocation64_spill] sm:$0xff] %v6526_v23  ;;  %v6531_v25 = vld [vmem:[%s9320_s3 + $0x238] sm:$0xff]  ;;  %v6719_v23 = vld [vmem:[%s9320_s3 + $0xe0] sm:$0xff] }
 0x169   :  { %1456 = vmatpush1.msra.mxu1 %v9969_v26  ;;  %4663 = vmatpush3.msra.mxu0 %v9970_v30  ;;  %9999 = vst [vmem:[#allocation65_spill] sm:$0xff] %v6531_v25  ;;  %v6537_v26 = vld [vmem:[%s9320_s3 + $0x248] sm:$0xff]  ;;  %v6543_v30 = vld [vmem:[%s9320_s3 + $0x230] sm:$0xff]  ;;  %10034 = vst [vmem:[#allocation37_spill] sm:$0xff] %v6719_v23 }
 0x16a   :  { %1457 = vmatprep.subr.mxu1 %v9971_v50  ;;  %4664 = vmatprep.subr.mxu0 %v9830_v40  ;;  %10000 = vst [vmem:[#allocation67_spill] sm:$0xff] %v6537_v26  ;;  %10001 = vst [vmem:[#allocation68_spill] sm:$0xff] %v6543_v30 }
 0x16b   :  { %1458 = vmatpush1.msra.mxu1 %v9972_v19  ;;  %4665 = vmatpush3.msra.mxu0 %v9973_v31  ;;  %vm6843_vm13 = vmneg %vm541_vm11 }
 0x16c   :  { %1459 = vmatprep.subr.mxu1 %v9974_v33  ;;  %4666 = vmatprep.subr.mxu0 %v9830_v40 }
 0x16d   :  { %1460 = vmatpush1.msra.mxu1 %v9975_v35  ;;  %4667 = vmatpush3.msra.mxu0 %v9976_v37 }
 0x16e   :  { %1461 = vmatprep.subr.mxu1 %v9977_v41  ;;  %4668 = vmatprep.subr.mxu0 %v9830_v40 }
 0x16f   :  { %1462 = vmatpush1.msra.mxu1 %v9978_v43  ;;  %4669 = vmatpush3.msra.mxu0 %v9979_v45 }
 0x170   :  { %1463 = vmatprep.subr.mxu1 %v9980_v47  ;;  %4670 = vmatprep.subr.mxu0 %v9830_v40 }
 0x171   :  { %1464 = vmatpush1.msra.mxu1 %v9981_v49  ;;  %4671 = vmatpush3.msra.mxu0 %v9982_v51 }
 0x172   :  { %1465 = vmatprep.subr.mxu1 %v9983_v52  ;;  %4672 = vmatprep.subr.mxu0 %v9830_v40 }
 0x173   :  { %1466 = vmatpush1.msra.mxu1 %v9984_v53  ;;  %4673 = vmatpush3.msra.mxu0 %v9985_v54 }
 0x174   :  { %1467 = vmatprep.subr.mxu1 %v9986_v55  ;;  %4674 = vmatprep.subr.mxu0 %v9830_v40 }
 0x175   :  { %1468 = vmatpush1.msra.mxu1 %v9923_v57  ;;  %4675 = vmatpush3.msra.mxu0 %v9924_v27 }
 0x176   :  { %1469 = vmatprep.subr.mxu1 %v9987_v56  ;;  %4676 = vmatprep.subr.mxu0 %v9830_v40 }
 0x177   :  { %1470 = vmatpush1.msra.mxu1 %v9926_v36  ;;  %4677 = vmatpush3.msra.mxu0 %v9927_v21 }
 0x178   :  { %1471 = vmatprep.subr.mxu1 %v9988_v58  ;;  %4678 = vmatprep.subr.mxu0 %v9830_v40 }
 0x179   :  { %1472 = vmatpush1.msra.mxu1 %v9929_v28  ;;  %4679 = vmatpush3.msra.mxu0 %v9930_v4 }
 0x17a   :  { %1473 = vmatprep.subr.mxu1 %v9931_v29  ;;  %4680 = vmatprep.subr.mxu0 %v9830_v40 }
 0x17b   :  { %1474 = vmatpush1.msra.mxu1 %v6029_v42  ;;  %4681 = vmatpush3.msra.mxu0 %v9932_v24 }
 0x17c   :  { %1475 = vmatprep.subr.mxu1 %v6041_v34  ;;  %4682 = vmatprep.subr.mxu0 %v9830_v40 }
 0x17d   :  { %1476 = vmatpush1.msra.mxu1 %v6048_v32  ;;  %4683 = vmatpush3.msra.mxu0 %v6053_v39 }
 0x17e   :  { %1477 = vmatprep.subr.mxu1 %v9933_v44  ;;  %4684 = vmatprep.subr.mxu0 %v9830_v40 }
 0x17f   :  { %1478 = vmatpush1.msra.mxu1 %v9989_v59  ;;  %1511 = vmatprep.mubr.f32.mxu1 %v9830_v40 }
 0x180   :  { %4685 = vmatpush3.msra.mxu0 %v9990_v60  ;;  %4686 = vmatprep.mubr.msk.f32.mxu0 %vm5189_vm4, %v9830_v40 }
 0x181   :  { %4180 = vmatmul.mubr.msk.f32.vlgmr.msra.gmra.mxu1 %vm6317_vm10, %v6315_v8  ;;  %4687 = vmatmul.mubr.msk.f32.vlgmr.msra.gmra.mxu0 %vm6317_vm10, %v6315_v8  ;;  %v6455_v8 = vld [vmem:[%s9320_s3 + $0x2e0] sm:$0xff] }
 0x182   :  { %1594 = vmatprep.subr.mxu1 %v6404_v62  ;;  %1665 = vmatprep.subr.mxu0 %v6410_v63 }
 0x183   :  { %1595 = vmatpush1.msra.mxu1 %v6416_v0  ;;  %1666 = vmatpush1.msra.mxu0 %v6422_v1 }
 0x184   :  { %1596 = vmatprep.subr.mxu1 %v6428_v2  ;;  %1667 = vmatprep.subr.mxu0 %v6434_v3 }
 0x185   :  { %1597 = vmatpush1.msra.mxu1 %v6440_v5  ;;  %1668 = vmatpush1.msra.mxu0 %v6446_v6 }
 0x186   :  { %1598 = vmatprep.subr.mxu1 %v6455_v8  ;;  %1669 = vmatprep.subr.mxu0 %v6461_v9 }
 0x187   :  { %1599 = vmatpush1.msra.mxu1 %v6467_v11  ;;  %1670 = vmatpush1.msra.mxu0 %v6473_v46 }
 0x188   :  { %1600 = vmatprep.subr.mxu1 %v6479_v12  ;;  %1671 = vmatprep.subr.mxu0 %v6485_v13  ;;  %v6748_v13 = vld [vmem:[%s9320_s3 + $0xa8] sm:$0xff] }
 0x189   :  { %1601 = vmatpush1.msra.mxu1 %v6491_v14  ;;  %1672 = vmatpush1.msra.mxu0 %v6497_v15  ;;  %v10038_v14 = vsub.s32 3, %v5759_v38  ;;  %10039 = vst [vmem:[#allocation41_spill] sm:$0xff] %v6748_v13 }
 0x18a   :  { %1602 = vmatprep.subr.mxu1 %v6505_v17  ;;  %1673 = vmatprep.subr.mxu0 %v6511_v18  ;;  %v10033_v17 = vsub.s32 2, %v5759_v38 }
 0x18b   :  { %1603 = vmatpush1.msra.mxu1 %v6517_v20  ;;  %1674 = vmatpush1.msra.mxu0 %v6523_v22  ;;  %v10027_v20 = vld [vmem:[#allocation77_spill] sm:$0xff] }
 0x18c   :  { %1604 = vmatprep.subr.mxu1 %v6531_v25  ;;  %1675 = vmatprep.subr.mxu0 %v6537_v26 }
 0x18d   :  { %1605 = vmatpush1.msra.mxu1 %v6543_v30  ;;  %1676 = vmatpush1.msra.mxu0 %v6549_v7  ;;  %v6569_v7 = vld [vmem:[%s9320_s3 + $0x1f8] sm:$0xff]  ;;  %v6578_v30 = vpop.f32.mrf.mxu0 }
 0x18e   :  { %1606 = vmatprep.subr.mxu1 %v6555_v10  ;;  %1677 = vmatprep.subr.mxu0 %v6561_v61  ;;  %10005 = vst [vmem:[#allocation73_spill] sm:$0xff] %v6569_v7  ;;  %v6575_v10 = vld [vmem:[%s9320_s3 + $0x208] sm:$0xff]  ;;  %10007 = vst [vmem:[#allocation5_spill] sm:$0xff] %v6578_v30  ;;  %v6601_v30 = vld [vmem:[%s9320_s3 + $0x1d0] sm:$0xff] }
 0x18f   :  { %1607 = vmatpush1.msra.mxu1 %v6569_v7  ;;  %10006 = vst [vmem:[#allocation74_spill] sm:$0xff] %v6575_v10  ;;  %1678 = vmatpush1.msra.mxu0 %v6575_v10  ;;  %v6583_v61 = vld [vmem:[%s9320_s3 + $0x1c8] sm:$0xff]  ;;  %v6589_v7 = vld [vmem:[%s9320_s3 + $0x1d8] sm:$0xff]  ;;  %v6595_v10 = vld [vmem:[%s9320_s3 + $0x1c0] sm:$0xff]  ;;  %v6606_v26 = vpop.f32.mrf.mxu0 }
 0x190   :  { %10008 = vst [vmem:[#allocation6_spill] sm:$0xff] %v6583_v61  ;;  %1608 = vmatprep.subr.mxu1 %v6583_v61  ;;  %10009 = vst [vmem:[#allocation7_spill] sm:$0xff] %v6589_v7  ;;  %1679 = vmatprep.subr.mxu0 %v6589_v7  ;;  %v6604_v61 = vpop.f32.mrf.mxu1  ;;  %v6611_v7 = vld [vmem:[%s9320_s3 + $0x190] sm:$0xff] }
 0x191   :  { %10010 = vst [vmem:[#allocation8_spill] sm:$0xff] %v6595_v10  ;;  %1609 = vmatpush1.msra.mxu1 %v6595_v10  ;;  %10011 = vst [vmem:[#allocation9_spill] sm:$0xff] %v6601_v30  ;;  %1680 = vmatpush1.msra.mxu0 %v6601_v30  ;;  %v6617_v10 = vld [vmem:[%s9320_s3 + $0x1a0] sm:$0xff]  ;;  %v491_v30 = vmul.f32 %v481_v48, %v6500_v16  ;;  %v6641_v48 = vld [vmem:[%s9320_s3 + $0x158] sm:$0xff]  ;;  %v6664_v25 = vpop.f32.mrf.mxu0 }
 0x192   :  { %10012 = vst [vmem:[#allocation10_spill] sm:$0xff] %v6604_v61  ;;  %10013 = vst [vmem:[#allocation11_spill] sm:$0xff] %v6606_v26  ;;  %1610 = vmatprep.subr.mxu1 %v6611_v7  ;;  %1681 = vmatprep.subr.mxu0 %v6617_v10  ;;  %v6624_v26 = vld [vmem:[%s9320_s3 + $0x188] sm:$0xff]  ;;  %v6630_v61 = vld [vmem:[%s9320_s3 + $0x198] sm:$0xff] }
 0x193   :  { %10014 = vst [vmem:[#allocation12_spill] sm:$0xff] %v6611_v7  ;;  %10015 = vst [vmem:[#allocation13_spill] sm:$0xff] %v6617_v10  ;;  %1611 = vmatpush1.msra.mxu1 %v6624_v26  ;;  %1682 = vmatpush1.msra.mxu0 %v6630_v61  ;;  %v6636_v10 = vld [vmem:[%s9321_s4] sm:$0xff]  ;;  %v501_v22 = vmul.f32 -2.0, %v491_v30  ;;  %v6696_v30 = vld [vmem:[%s9320_s3 + $0x128] sm:$0xff] }
 0x194   :  { %10016 = vst [vmem:[#allocation14_spill] sm:$0xff] %v6624_v26  ;;  %10017 = vst [vmem:[#allocation15_spill] sm:$0xff] %v6630_v61  ;;  %1612 = vmatprep.subr.mxu1 %v6641_v48  ;;  %v6647_v26 = vld [vmem:[%s9320_s3 + $0x168] sm:$0xff]  ;;  %v6653_v61 = vld [vmem:[%s9320_s3 + $0x150] sm:$0xff]  ;;  %v6685_v18 = vrot.slane %v6636_v10, %v10027_v20  ;;  %1658 = vmatprep.mubr.f32.mxu1 %v9830_v40 }
 0x195   :  { %10018 = vst [vmem:[#allocation16_spill] sm:$0xff] %v6641_v48  ;;  %10019 = vst [vmem:[#allocation19_spill] sm:$0xff] %v6647_v26  ;;  %1683 = vmatprep.subr.mxu0 %v6647_v26  ;;  %1613 = vmatpush1.msra.mxu1 %v6653_v61  ;;  %v6659_v7 = vld [vmem:[%s9320_s3 + $0x160] sm:$0xff]  ;;  %v6662_v48 = vpop.f32.mrf.mxu1  ;;  %v6708_v20 = vld [vmem:[%s9320_s3 + $0xf8] sm:$0xff] }
 0x196   :  { %10020 = vst [vmem:[#allocation20_spill] sm:$0xff] %v6653_v61  ;;  %10021 = vst [vmem:[#allocation23_spill] sm:$0xff] %v6659_v7  ;;  %1684 = vmatpush1.msra.mxu0 %v6659_v7  ;;  %v6669_v26 = vld [vmem:[%s9320_s3 + $0x120] sm:$0xff]  ;;  %v6675_v61 = vld [vmem:[%s9320_s3 + $0x130] sm:$0xff]  ;;  %v511_v7 = vmul.f32 1.5, %v6500_v16  ;;  %1729 = vmatprep.mubr.f32.mxu0 %v9830_v40 }
 0x197   :  { %10022 = vst [vmem:[#allocation25_spill] sm:$0xff] %v6662_v48  ;;  %10023 = vst [vmem:[#allocation28_spill] sm:$0xff] %v6664_v25  ;;  %1614 = vmatprep.subr.mxu1 %v6669_v26  ;;  %1685 = vmatprep.subr.mxu0 %v6675_v61  ;;  %v10026_v48 = vld [vmem:[#allocation33_spill] sm:$0xff] }
 0x198   :  { %10024 = vst [vmem:[#allocation29_spill] sm:$0xff] %v6669_v26  ;;  %10025 = vst [vmem:[#allocation30_spill] sm:$0xff] %v6675_v61  ;;  %v6681_v25 = vrot.slane %v6636_v10, %v10026_v48  ;;  %v6690_v26 = vld [vmem:[%s9320_s3 + $0x118] sm:$0xff]  ;;  %1686 = vmatpush1.msra.mxu0 %v6696_v30  ;;  %v6702_v48 = vld [vmem:[%s9320_s3 + $0xe8] sm:$0xff]  ;;  %v864_v61 = vpop.f32.mrf.mxu0 }
 0x199   :  { %10028 = vst [vmem:[#allocation31_spill] sm:$0xff] %v6685_v18  ;;  %10029 = vst [vmem:[#allocation32_spill] sm:$0xff] %v6690_v26  ;;  %1615 = vmatpush1.msra.mxu1 %v6690_v26  ;;  %1687 = vmatprep.subr.mxu0 %v6708_v20  ;;  %v793_v26 = vpop.f32.mrf.mxu1  ;;  %v6863_v16 = vld [vmem:[%s9320_s3 + $0x368] sm:$0xff] }
 0x19a   :  { %10030 = vst [vmem:[#allocation34_spill] sm:$0xff] %v6696_v30  ;;  %10031 = vst [vmem:[#allocation35_spill] sm:$0xff] %v6702_v48  ;;  %1616 = vmatprep.subr.mxu1 %v6702_v48  ;;  %v6714_v30 = vrot.slane %v6636_v10, %v10033_v17  ;;  %v6725_v48 = vld [vmem:[%s9320_s3 + $0xf0] sm:$0xff]  ;;  %v6737_v17 = vld [vmem:[%s9320_s3 + $0xc0] sm:$0xff] }
 0x19b   :  { %10032 = vst [vmem:[#allocation36_spill] sm:$0xff] %v6708_v20  ;;  %1617 = vmatpush1.msra.mxu1 %v6719_v23  ;;  %10035 = vst [vmem:[#allocation38_spill] sm:$0xff] %v6725_v48  ;;  %1688 = vmatpush1.msra.mxu0 %v6725_v48  ;;  %v6731_v20 = vld [vmem:[%s9320_s3 + $0xb0] sm:$0xff]  ;;  %v521_v23 = vadd.f32 %v511_v7, %v501_v22  ;;  %v795_v15 = vpop.f32.mrf.mxu1  ;;  %v6743_v48 = vrot.slane %v6636_v10, %v10038_v14  ;;  %v6762_v14 = vld [vmem:[%s9320_s3 + $0x78] sm:$0xff] }
 0x19c   :  { %10036 = vst [vmem:[#allocation39_spill] sm:$0xff] %v6731_v20  ;;  %1618 = vmatprep.subr.mxu1 %v6731_v20  ;;  %10037 = vst [vmem:[#allocation40_spill] sm:$0xff] %v6737_v17  ;;  %1689 = vmatprep.subr.mxu0 %v6737_v17  ;;  %v6754_v20 = vld [vmem:[%s9320_s3 + $0xb8] sm:$0xff]  ;;  %v794_v22 = vadd.f32 %v793_v26, %v6681_v25  ;;  %v796_v7 = vadd.f32 %v795_v15, %v6685_v18  ;;  %v866_v17 = vpop.f32.mrf.mxu0  ;;  %v6774_v26 = vld [vmem:[%s9320_s3 + $0x70] sm:$0xff] }
 0x19d   :  { %1619 = vmatpush1.msra.mxu1 %v6748_v13  ;;  %10040 = vst [vmem:[#allocation42_spill] sm:$0xff] %v6754_v20  ;;  %1690 = vmatpush1.msra.mxu0 %v6754_v20  ;;  %10041 = vst [vmem:[#allocation43_spill] sm:$0xff] %v6762_v14  ;;  %v6768_v13 = vld [vmem:[%s9320_s3 + $0x88] sm:$0xff]  ;;  %v6780_v15 = vld [vmem:[%s9320_s3 + $0x80] sm:$0xff]  ;;  %v531_v18 = vadd.f32 0.5, %v521_v23  ;;  %v867_v23 = vadd.f32 %v866_v17, %v6743_v48 }
 0x19e   :  { %1620 = vmatprep.subr.mxu1 %v6762_v14  ;;  %10042 = vst [vmem:[#allocation44_spill] sm:$0xff] %v6768_v13  ;;  %1691 = vmatprep.subr.mxu0 %v6768_v13  ;;  %10043 = vst [vmem:[#allocation45_spill] sm:$0xff] %v6774_v26  ;;  %v865_v14 = vadd.f32 %v864_v61, %v6714_v30  ;;  %v1010_v20 = vmul.f32 %v796_v7, %v794_v22  ;;  %v6787_v13 = vld [vmem:[%s9320_s3 + $0x40] sm:$0xff]  ;;  %v6799_v61 = vld [vmem:[%s9320_s3 + $0x38] sm:$0xff] }
 0x19f   :  { %1621 = vmatpush1.msra.mxu1 %v6774_v26  ;;  %1692 = vmatpush1.msra.mxu0 %v6780_v15  ;;  %v6793_v26 = vld [vmem:[%s9320_s3 + $0x50] sm:$0xff]  ;;  %10045 = vst [vmem:[#allocation47_spill] sm:$0xff] %v6799_v61  ;;  %v6805_v22 = vld [vmem:[%s9320_s3 + $0x48] sm:$0xff]  ;;  %10052 = vst [vmem:[#allocation52_spill] sm:$0xff] %v6863_v16 }
 0x1a0   :  { %1622 = vmatprep.subr.mxu1 %v6787_v13  ;;  %10044 = vst [vmem:[#allocation46_spill] sm:$0xff] %v6793_v26  ;;  %1693 = vmatprep.subr.mxu0 %v6793_v26  ;;  %10046 = vst [vmem:[#allocation48_spill] sm:$0xff] %v6805_v22  ;;  %v1011_v7 = vmul.f32 %v1010_v20, %v865_v14  ;;  %v6814_v26 = vld [vmem:[%s9320_s3 + $0x8] sm:$0xff]  ;;  %v6835_v17 = vld [vmem:[%s9320_s3 + $0x10] sm:$0xff]  ;;  %v6839_v14 = vsel %vm551_vm12, 1.0, %v531_v18 }
 0x1a1   :  { %1623 = vmatpush1.msra.mxu1 %v6799_v61  ;;  %1694 = vmatpush1.msra.mxu0 %v6805_v22  ;;  %v6820_v61 = vld [vmem:[%s9320_s3 + $0x18] sm:$0xff]  ;;  %v6826_v22 = vld [vmem:[%s9320_s3] sm:$0xff]  ;;  %10048 = vst [vmem:[#allocation50_spill] sm:$0xff] %v6835_v17 }
 0x1a2   :  { %1624 = vmatprep.subr.mxu1 %v6814_v26  ;;  %10047 = vst [vmem:[#allocation49_spill] sm:$0xff] %v6820_v61  ;;  %1695 = vmatprep.subr.mxu0 %v6820_v61  ;;  %v6830_v20 = vmul.f32 %v1011_v7, %v867_v23  ;;  %v6856_v23 = vld [vmem:[%s9320_s3 + $0x370] sm:$0xff]  ;;  %v6869_v18 = vld [vmem:[%s9320_s3 + $0x378] sm:$0xff]  ;;  %v10082_v61 = vld [vmem:[#allocation73_spill] sm:$0xff] }
 0x1a3   :  { %1625 = vmatpush1.msra.mxu1 %v6826_v22  ;;  %1696 = vmatpush1.msra.mxu0 %v6835_v17  ;;  %10051 = vst [vmem:[#allocation51_spill] sm:$0xff] %v6856_v23  ;;  %10053 = vst [vmem:[#allocation53_spill] sm:$0xff] %v6869_v18  ;;  %v6875_v7 = vld [vmem:[%s9320_s3 + $0x338] sm:$0xff] }
 0x1a4   :  { %4184 = vmatmul.mubr.msk.f32.vlgmr.msra.gmra.mxu1 %vm6843_vm13, %v6839_v14  ;;  %4186 = vmatmul.mubr.msk.f32.vlgmr.msra.gmra.mxu0 %vm6843_vm13, %v6839_v14  ;;  %10054 = vst [vmem:[#allocation54_spill] sm:$0xff] %v6875_v7 }
 0x1a5   :  { %1736 = vmatprep.subr.mxu1 %v6856_v23  ;;  %4689 = vmatprep.subr.mxu0 %v9830_v40 }
 0x1a6   :  { %1737 = vmatpush1.msra.mxu1 %v6863_v16  ;;  %4690 = vmatpush3.msra.mxu0 %v6869_v18  ;;  %v6882_v16 = vld [vmem:[%s9320_s3 + $0x330] sm:$0xff]  ;;  %v6888_v18 = vld [vmem:[%s9320_s3 + $0x340] sm:$0xff] }
 0x1a7   :  { %1738 = vmatprep.subr.mxu1 %v6875_v7  ;;  %4691 = vmatprep.subr.mxu0 %v9830_v40  ;;  %10055 = vst [vmem:[#allocation55_spill] sm:$0xff] %v6882_v16  ;;  %10056 = vst [vmem:[#allocation56_spill] sm:$0xff] %v6888_v18  ;;  %v6894_v7 = vld [vmem:[%s9320_s3 + $0x300] sm:$0xff] }
 0x1a8   :  { %1739 = vmatpush1.msra.mxu1 %v6882_v16  ;;  %4692 = vmatpush3.msra.mxu0 %v6888_v18  ;;  %10057 = vst [vmem:[#allocation57_spill] sm:$0xff] %v6894_v7  ;;  %v6901_v16 = vld [vmem:[%s9320_s3 + $0x2f8] sm:$0xff]  ;;  %v6907_v18 = vld [vmem:[%s9320_s3 + $0x308] sm:$0xff] }
 0x1a9   :  { %1740 = vmatprep.subr.mxu1 %v6894_v7  ;;  %4693 = vmatprep.subr.mxu0 %v9830_v40  ;;  %10058 = vst [vmem:[#allocation58_spill] sm:$0xff] %v6901_v16  ;;  %10059 = vst [vmem:[#allocation59_spill] sm:$0xff] %v6907_v18  ;;  %v6913_v7 = vld [vmem:[%s9320_s3 + $0x2c8] sm:$0xff] }
 0x1aa   :  { %1741 = vmatpush1.msra.mxu1 %v6901_v16  ;;  %4694 = vmatpush3.msra.mxu0 %v6907_v18  ;;  %10060 = vst [vmem:[#allocation60_spill] sm:$0xff] %v6913_v7  ;;  %v6920_v16 = vld [vmem:[%s9320_s3 + $0x2c0] sm:$0xff]  ;;  %v6926_v18 = vld [vmem:[%s9320_s3 + $0x2d0] sm:$0xff] }
 0x1ab   :  { %1742 = vmatprep.subr.mxu1 %v6913_v7  ;;  %4695 = vmatprep.subr.mxu0 %v9830_v40  ;;  %10061 = vst [vmem:[#allocation61_spill] sm:$0xff] %v6920_v16  ;;  %10062 = vst [vmem:[#allocation62_spill] sm:$0xff] %v6926_v18  ;;  %v6932_v7 = vld [vmem:[%s9320_s3 + $0x290] sm:$0xff] }
 0x1ac   :  { %1743 = vmatpush1.msra.mxu1 %v6920_v16  ;;  %4696 = vmatpush3.msra.mxu0 %v6926_v18  ;;  %10063 = vst [vmem:[#allocation63_spill] sm:$0xff] %v6932_v7  ;;  %v6939_v16 = vld [vmem:[%s9320_s3 + $0x288] sm:$0xff]  ;;  %v6945_v18 = vld [vmem:[%s9320_s3 + $0x298] sm:$0xff] }
 0x1ad   :  { %1744 = vmatprep.subr.mxu1 %v6932_v7  ;;  %4697 = vmatprep.subr.mxu0 %v9830_v40  ;;  %10064 = vst [vmem:[#allocation66_spill] sm:$0xff] %v6939_v16  ;;  %10065 = vst [vmem:[#allocation69_spill] sm:$0xff] %v6945_v18 }
 0x1ae   :  { %1745 = vmatpush1.msra.mxu1 %v6939_v16  ;;  %4698 = vmatpush3.msra.mxu0 %v6945_v18 }
 0x1af   :  { %1746 = vmatprep.subr.mxu1 %v9971_v50  ;;  %4699 = vmatprep.subr.mxu0 %v9830_v40  ;;  %v87_v50 = vsub.s32 4, %v5759_v38 }
 0x1b0   :  { %1747 = vmatpush1.msra.mxu1 %v9972_v19  ;;  %4700 = vmatpush3.msra.mxu0 %v9973_v31  ;;  %v9576_v31 = vsub.s32 5, %v5759_v38 }
 0x1b1   :  { %1748 = vmatprep.subr.mxu1 %v9974_v33  ;;  %4701 = vmatprep.subr.mxu0 %v9830_v40  ;;  %v6966_v19 = vrot.slane %v6636_v10, %v87_v50 }
 0x1b2   :  { %1749 = vmatpush1.msra.mxu1 %v9975_v35  ;;  %4702 = vmatpush3.msra.mxu0 %v9976_v37  ;;  %v6976_v33 = vrot.slane %v6636_v10, %v9576_v31  ;;  %v9575_v35 = vsub.s32 6, %v5759_v38  ;;  %v10097_v31 = vld [vmem:[#allocation30_spill] sm:$0xff] }
 0x1b3   :  { %1750 = vmatprep.subr.mxu1 %v9977_v41  ;;  %4703 = vmatprep.subr.mxu0 %v9830_v40  ;;  %10066 = vst [vmem:[#allocation75_spill] sm:$0xff] %v6966_v19 }
 0x1b4   :  { %1751 = vmatpush1.msra.mxu1 %v9978_v43  ;;  %4704 = vmatpush3.msra.mxu0 %v9979_v45  ;;  %v6986_v43 = vrot.slane %v6636_v10, %v9575_v35  ;;  %v10096_v35 = vld [vmem:[#allocation29_spill] sm:$0xff] }
 0x1b5   :  { %1752 = vmatprep.subr.mxu1 %v9980_v47  ;;  %4705 = vmatprep.subr.mxu0 %v9830_v40 }
 0x1b6   :  { %1753 = vmatpush1.msra.mxu1 %v9981_v49  ;;  %4706 = vmatpush3.msra.mxu0 %v9982_v51 }
 0x1b7   :  { %1754 = vmatprep.subr.mxu1 %v9983_v52  ;;  %4707 = vmatprep.subr.mxu0 %v9830_v40  ;;  %v10074_v52 = vld [vmem:[#allocation26_spill] sm:$0xff] }
 0x1b8   :  { %1755 = vmatpush1.msra.mxu1 %v9984_v53  ;;  %4708 = vmatpush3.msra.mxu0 %v9985_v54  ;;  %v10075_v53 = vld [vmem:[#allocation27_spill] sm:$0xff]  ;;  %v10076_v54 = vld [vmem:[#allocation65_spill] sm:$0xff] }
 0x1b9   :  { %1756 = vmatprep.subr.mxu1 %v9986_v55  ;;  %4709 = vmatprep.subr.mxu0 %v9830_v40  ;;  %v935_v37 = vpop.f32.mrf.mxu1  ;;  %v1006_v41 = vpop.f32.mrf.mxu0  ;;  %v10077_v55 = vld [vmem:[#allocation67_spill] sm:$0xff] }
 0x1ba   :  { %1757 = vmatpush1.msra.mxu1 %v9923_v57  ;;  %4710 = vmatpush3.msra.mxu0 %v9924_v27  ;;  %v936_v45 = vadd.f32 %v935_v37, %v6966_v19  ;;  %v10086_v37 = vld [vmem:[#allocation8_spill] sm:$0xff] }
 0x1bb   :  { %1758 = vmatprep.subr.mxu1 %v9987_v56  ;;  %4711 = vmatprep.subr.mxu0 %v9830_v40  ;;  %v937_v57 = vpop.f32.mrf.mxu1  ;;  %v4618_v47 = vpop.f32.mrf.mxu0  ;;  %v10078_v56 = vld [vmem:[#allocation68_spill] sm:$0xff] }
 0x1bc   :  { %1759 = vmatpush1.msra.mxu1 %v9926_v36  ;;  %4712 = vmatpush3.msra.mxu0 %v9927_v21  ;;  %v1013_v27 = vmul.f32 %v6830_v20, %v936_v45  ;;  %v938_v49 = vadd.f32 %v937_v57, %v6976_v33  ;;  %v1007_v21 = vadd.f32 %v1006_v41, %v6986_v43  ;;  %v10083_v20 = vld [vmem:[#allocation74_spill] sm:$0xff]  ;;  %v10087_v41 = vld [vmem:[#allocation9_spill] sm:$0xff]  ;;  %v10088_v45 = vld [vmem:[#allocation12_spill] sm:$0xff] }
 0x1bd   :  { %1760 = vmatprep.subr.mxu1 %v9988_v58  ;;  %4713 = vmatprep.subr.mxu0 %v9830_v40  ;;  %v10079_v58 = vld [vmem:[#allocation70_spill] sm:$0xff]  ;;  %v10089_v57 = vld [vmem:[#allocation13_spill] sm:$0xff] }
 0x1be   :  { %1761 = vmatpush1.msra.mxu1 %v9929_v28  ;;  %4714 = vmatpush3.msra.mxu0 %v9930_v4  ;;  %v1014_v36 = vmul.f32 %v1013_v27, %v938_v49  ;;  %v10069_v4 = vld [vmem:[#allocation18_spill] sm:$0xff]  ;;  %v10091_v49 = vld [vmem:[#allocation15_spill] sm:$0xff] }
 0x1bf   :  { %1762 = vmatprep.subr.mxu1 %v9931_v29  ;;  %4715 = vmatprep.subr.mxu0 %v9830_v40  ;;  %v10068_v29 = vld [vmem:[#allocation17_spill] sm:$0xff]  ;;  %v10090_v27 = vld [vmem:[#allocation14_spill] sm:$0xff] }
 0x1c0   :  { %1763 = vmatpush1.msra.mxu1 %v6029_v42  ;;  %4716 = vmatpush3.msra.mxu0 %v9932_v24  ;;  %v7006_v51 = vmul.f32 %v1014_v36, %v1007_v21  ;;  %v7034_v24 = vld [vmem:[%s9319_s2] sm:$0xff]  ;;  %v10072_v42 = vld [vmem:[#allocation22_spill] sm:$0xff]  ;;  %v10093_v36 = vld [vmem:[#allocation19_spill] sm:$0xff] }
 0x1c1   :  { %1764 = vmatprep.subr.mxu1 %v6041_v34  ;;  %4717 = vmatprep.subr.mxu0 %v9830_v40  ;;  %v88_v28 = vrot.slane %v7034_v24, %v87_v50  ;;  %v10071_v34 = vld [vmem:[#allocation64_spill] sm:$0xff]  ;;  %v10085_v50 = vld [vmem:[#allocation7_spill] sm:$0xff] }
 0x1c2   :  { %10067 = vst [vmem:[#allocation76_spill] sm:$0xff] %v7006_v51  ;;  %1765 = vmatpush1.msra.mxu1 %v6048_v32  ;;  %4718 = vmatpush3.msra.mxu0 %v6053_v39  ;;  %v10070_v32 = vld [vmem:[#allocation21_spill] sm:$0xff]  ;;  %v10092_v21 = vld [vmem:[#allocation16_spill] sm:$0xff] }
 0x1c3   :  { %1766 = vmatprep.subr.mxu1 %v9933_v44  ;;  %4719 = vmatprep.subr.mxu0 %v9830_v40  ;;  %v7046_v39 = vadd.f32 %v10071_v34, %v88_v28  ;;  %v10073_v44 = vld [vmem:[#allocation24_spill] sm:$0xff]  ;;  %v10095_v34 = vld [vmem:[#allocation23_spill] sm:$0xff] }
 0x1c4   :  { %1767 = vmatpush1.msra.mxu1 %v9989_v59  ;;  %1800 = vmatprep.mubr.f32.mxu1 %v9830_v40  ;;  %v10080_v59 = vld [vmem:[#allocation71_spill] sm:$0xff]  ;;  %v10094_v28 = vld [vmem:[#allocation20_spill] sm:$0xff] }
 0x1c5   :  { %4720 = vmatpush3.msra.mxu0 %v9990_v60  ;;  %4721 = vmatprep.mubr.msk.f32.mxu0 %vm5189_vm4, %v9830_v40  ;;  %v10081_v60 = vld [vmem:[#allocation72_spill] sm:$0xff]  ;;  %v482_v10 = vmul.f32 %v7046_v39, %v7046_v39  ;;  %vm542_vm14 = vcmp.le.f32.partialorder %v7046_v39, -0.5  ;;  %vm552_vm15 = vcmp.ge.f32.partialorder %v7046_v39, 0.5 }
 0x1c6   :  { %4188 = vmatmul.mubr.msk.f32.vlgmr.msra.gmra.mxu1 %vm6843_vm13, %v6839_v14  ;;  %4722 = vmatmul.mubr.msk.f32.vlgmr.msra.gmra.mxu0 %vm6843_vm13, %v6839_v14  ;;  %v10084_v14 = vld [vmem:[#allocation6_spill] sm:$0xff]  ;;  %vm7112_vm0 = vmneg %vm542_vm14 }
 0x1c7   :  { %1883 = vmatprep.subr.mxu1 %v6404_v62  ;;  %1954 = vmatprep.subr.mxu0 %v6410_v63  ;;  %v492_v47 = vmul.f32 %v482_v10, %v7046_v39  ;;  %v10098_v10 = vld [vmem:[#allocation32_spill] sm:$0xff] }
 0x1c8   :  { %1884 = vmatpush1.msra.mxu1 %v6416_v0  ;;  %1955 = vmatpush1.msra.mxu0 %v6422_v1 }
 0x1c9   :  { %1885 = vmatprep.subr.mxu1 %v6428_v2  ;;  %1956 = vmatprep.subr.mxu0 %v6434_v3  ;;  %v502_v51 = vmul.f32 -2.0, %v492_v47  ;;  %v10105_v47 = vld [vmem:[#allocation40_spill] sm:$0xff] }
 0x1ca   :  { %1886 = vmatpush1.msra.mxu1 %v6440_v5  ;;  %1957 = vmatpush1.msra.mxu0 %v6446_v6 }
 0x1cb   :  { %1887 = vmatprep.subr.mxu1 %v6455_v8  ;;  %1958 = vmatprep.subr.mxu0 %v6461_v9 }
 0x1cc   :  { %1888 = vmatpush1.msra.mxu1 %v6467_v11  ;;  %1959 = vmatpush1.msra.mxu0 %v6473_v46 }
 0x1cd   :  { %1889 = vmatprep.subr.mxu1 %v6479_v12  ;;  %1960 = vmatprep.subr.mxu0 %v10068_v29 }
 0x1ce   :  { %1890 = vmatpush1.msra.mxu1 %v10069_v4  ;;  %1961 = vmatpush1.msra.mxu0 %v10070_v32 }
 0x1cf   :  { %1891 = vmatprep.subr.mxu1 %v10072_v42  ;;  %1962 = vmatprep.subr.mxu0 %v10073_v44 }
 0x1d0   :  { %1892 = vmatpush1.msra.mxu1 %v10074_v52  ;;  %1963 = vmatpush1.msra.mxu0 %v10075_v53 }
 0x1d1   :  { %1893 = vmatprep.subr.mxu1 %v10076_v54  ;;  %1964 = vmatprep.subr.mxu0 %v10077_v55 }
 0x1d2   :  { %1894 = vmatpush1.msra.mxu1 %v10078_v56  ;;  %1965 = vmatpush1.msra.mxu0 %v10079_v58 }
 0x1d3   :  { %1895 = vmatprep.subr.mxu1 %v10080_v59  ;;  %1966 = vmatprep.subr.mxu0 %v10081_v60 }
 0x1d4   :  { %1896 = vmatpush1.msra.mxu1 %v10082_v61  ;;  %1967 = vmatpush1.msra.mxu0 %v10083_v20 }
 0x1d5   :  { %1897 = vmatprep.subr.mxu1 %v10084_v14  ;;  %1968 = vmatprep.subr.mxu0 %v10085_v50  ;;  %v10107_v50 = vld [vmem:[#allocation41_spill] sm:$0xff]  ;;  %v10108_v14 = vld [vmem:[#allocation42_spill] sm:$0xff] }
 0x1d6   :  { %1898 = vmatpush1.msra.mxu1 %v10086_v37  ;;  %1969 = vmatpush1.msra.mxu0 %v10087_v41  ;;  %v10104_v41 = vld [vmem:[#allocation39_spill] sm:$0xff] }
 0x1d7   :  { %1899 = vmatprep.subr.mxu1 %v10088_v45  ;;  %1970 = vmatprep.subr.mxu0 %v10089_v57  ;;  %v512_v57 = vmul.f32 1.5, %v7046_v39  ;;  %v10106_v37 = vld [vmem:[#allocation31_spill] sm:$0xff]  ;;  %v10118_v39 = vld [vmem:[#allocation52_spill] sm:$0xff] }
 0x1d8   :  { %1900 = vmatpush1.msra.mxu1 %v10090_v27  ;;  %1971 = vmatpush1.msra.mxu0 %v10091_v49  ;;  %v10099_v27 = vld [vmem:[#allocation34_spill] sm:$0xff] }
 0x1d9   :  { %1901 = vmatprep.subr.mxu1 %v10092_v21  ;;  %1972 = vmatprep.subr.mxu0 %v10093_v36  ;;  %v10100_v21 = vld [vmem:[#allocation35_spill] sm:$0xff]  ;;  %v10101_v36 = vld [vmem:[#allocation36_spill] sm:$0xff] }
 0x1da   :  { %1902 = vmatpush1.msra.mxu1 %v10094_v28  ;;  %1973 = vmatpush1.msra.mxu0 %v10095_v34  ;;  %v10102_v28 = vld [vmem:[#allocation37_spill] sm:$0xff]  ;;  %v10103_v34 = vld [vmem:[#allocation38_spill] sm:$0xff] }
 0x1db   :  { %1903 = vmatprep.subr.mxu1 %v10096_v35  ;;  %1974 = vmatprep.subr.mxu0 %v10097_v31  ;;  %v1082_v49 = vpop.f32.mrf.mxu1  ;;  %v1153_v45 = vpop.f32.mrf.mxu0 }
 0x1dc   :  { %1904 = vmatpush1.msra.mxu1 %v10098_v10  ;;  %1975 = vmatpush1.msra.mxu0 %v10099_v27  ;;  %v1083_v31 = vadd.f32 %v1082_v49, %v6681_v25  ;;  %v522_v10 = vadd.f32 %v512_v57, %v502_v51  ;;  %v10112_v51 = vld [vmem:[#allocation46_spill] sm:$0xff] }
 0x1dd   :  { %1905 = vmatprep.subr.mxu1 %v10100_v21  ;;  %1976 = vmatprep.subr.mxu0 %v10101_v36  ;;  %v1084_v35 = vpop.f32.mrf.mxu1  ;;  %v1155_v21 = vpop.f32.mrf.mxu0  ;;  %v10109_v36 = vld [vmem:[#allocation43_spill] sm:$0xff] }
 0x1de   :  { %1906 = vmatpush1.msra.mxu1 %v10102_v28  ;;  %1977 = vmatpush1.msra.mxu0 %v10103_v34  ;;  %v1085_v27 = vadd.f32 %v1084_v35, %v10106_v37  ;;  %v10110_v28 = vld [vmem:[#allocation44_spill] sm:$0xff]  ;;  %v1154_v34 = vadd.f32 %v1153_v45, %v6714_v30  ;;  %v532_v35 = vadd.f32 0.5, %v522_v10  ;;  %v1156_v57 = vadd.f32 %v1155_v21, %v6743_v48  ;;  %v10119_v21 = vld [vmem:[#allocation53_spill] sm:$0xff]  ;;  %v10121_v10 = vld [vmem:[#allocation55_spill] sm:$0xff] }
 0x1df   :  { %1907 = vmatprep.subr.mxu1 %v10104_v41  ;;  %1978 = vmatprep.subr.mxu0 %v10105_v47  ;;  %v10111_v41 = vld [vmem:[#allocation45_spill] sm:$0xff] }
 0x1e0   :  { %1908 = vmatpush1.msra.mxu1 %v10107_v50  ;;  %1979 = vmatpush1.msra.mxu0 %v10108_v14  ;;  %v1299_v20 = vmul.f32 %v1085_v27, %v1083_v31  ;;  %v10113_v14 = vld [vmem:[#allocation47_spill] sm:$0xff]  ;;  %v10115_v31 = vld [vmem:[#allocation49_spill] sm:$0xff] }
 0x1e1   :  { %1909 = vmatprep.subr.mxu1 %v10109_v36  ;;  %1980 = vmatprep.subr.mxu0 %v10110_v28  ;;  %v10114_v36 = vld [vmem:[#allocation48_spill] sm:$0xff]  ;;  %v10176_v27 = vld [vmem:[#allocation37_spill] sm:$0xff] }
 0x1e2   :  { %1910 = vmatpush1.msra.mxu1 %v10111_v41  ;;  %1981 = vmatpush1.msra.mxu0 %v6780_v15  ;;  %v1300_v49 = vmul.f32 %v1299_v20, %v1154_v34  ;;  %v7110_v20 = vsel %vm552_vm15, 1.0, %v532_v35  ;;  %v10120_v34 = vld [vmem:[#allocation54_spill] sm:$0xff]  ;;  %v10122_v35 = vld [vmem:[#allocation56_spill] sm:$0xff] }
 0x1e3   :  { %1911 = vmatprep.subr.mxu1 %v6787_v13  ;;  %1982 = vmatprep.subr.mxu0 %v10112_v51 }
 0x1e4   :  { %1912 = vmatpush1.msra.mxu1 %v10113_v14  ;;  %1983 = vmatpush1.msra.mxu0 %v10114_v36  ;;  %v7104_v45 = vmul.f32 %v1300_v49, %v1156_v57  ;;  %v10123_v57 = vld [vmem:[#allocation57_spill] sm:$0xff]  ;;  %v10124_v49 = vld [vmem:[#allocation58_spill] sm:$0xff] }
 0x1e5   :  { %1913 = vmatprep.subr.mxu1 %v6814_v26  ;;  %1984 = vmatprep.subr.mxu0 %v10115_v31 }
 0x1e6   :  { %1914 = vmatpush1.msra.mxu1 %v6826_v22  ;;  %1947 = vmatprep.mubr.f32.mxu1 %v9830_v40 }
 0x1e7   :  { %1985 = vmatpush1.msra.mxu0 %v6835_v17  ;;  %2018 = vmatprep.mubr.f32.mxu0 %v9830_v40  ;;  %v10126_v17 = vld [vmem:[#allocation60_spill] sm:$0xff] }
 0x1e8   :  { %4192 = vmatmul.mubr.msk.f32.vlgmr.msra.gmra.mxu1 %vm7112_vm0, %v7110_v20  ;;  %4194 = vmatmul.mubr.msk.f32.vlgmr.msra.gmra.mxu0 %vm7112_vm0, %v7110_v20 }
 0x1e9   :  { %2025 = vmatprep.subr.mxu1 %v6856_v23  ;;  %4724 = vmatprep.subr.mxu0 %v9830_v40  ;;  %v10125_v23 = vld [vmem:[#allocation59_spill] sm:$0xff] }
 0x1ea   :  { %2026 = vmatpush1.msra.mxu1 %v10118_v39  ;;  %4725 = vmatpush3.msra.mxu0 %v10119_v21  ;;  %v10127_v21 = vld [vmem:[#allocation61_spill] sm:$0xff] }
 0x1eb   :  { %2027 = vmatprep.subr.mxu1 %v10120_v34  ;;  %4726 = vmatprep.subr.mxu0 %v9830_v40  ;;  %v10128_v34 = vld [vmem:[#allocation62_spill] sm:$0xff] }
 0x1ec   :  { %2028 = vmatpush1.msra.mxu1 %v10121_v10  ;;  %4727 = vmatpush3.msra.mxu0 %v10122_v35 }
 0x1ed   :  { %2029 = vmatprep.subr.mxu1 %v10123_v57  ;;  %4728 = vmatprep.subr.mxu0 %v9830_v40 }
 0x1ee   :  { %2030 = vmatpush1.msra.mxu1 %v10124_v49  ;;  %4729 = vmatpush3.msra.mxu0 %v10125_v23  ;;  %v7145_v23 = vld [vmem:[%s9320_s3 + $0x258] sm:$0xff]  ;;  %v7288_v49 = vld [vmem:[%s9320_s3 + $0xc8] sm:$0xff] }
 0x1ef   :  { %2031 = vmatprep.subr.mxu1 %v10126_v17  ;;  %4730 = vmatprep.subr.mxu0 %v9830_v40  ;;  %10129 = vst [vmem:[#allocation17_spill] sm:$0xff] %v7145_v23  ;;  %10150 = vst [vmem:[#allocation47_spill] sm:$0xff] %v7288_v49 }
 0x1f0   :  { %2032 = vmatpush1.msra.mxu1 %v10127_v21  ;;  %4731 = vmatpush3.msra.mxu0 %v10128_v34  ;;  %v7152_v34 = vld [vmem:[%s9320_s3 + $0x250] sm:$0xff]  ;;  %v7267_v21 = vld [vmem:[%s9320_s3 + $0x100] sm:$0xff] }
 0x1f1   :  { %2033 = vmatprep.subr.mxu1 %v6932_v7  ;;  %4732 = vmatprep.subr.mxu0 %v9830_v40  ;;  %10130 = vst [vmem:[#allocation18_spill] sm:$0xff] %v7152_v34  ;;  %10148 = vst [vmem:[#allocation45_spill] sm:$0xff] %v7267_v21 }
 0x1f2   :  { %2034 = vmatpush1.msra.mxu1 %v6939_v16  ;;  %4733 = vmatpush3.msra.mxu0 %v6945_v18  ;;  %v7158_v18 = vld [vmem:[%s9320_s3 + $0x260] sm:$0xff] }
 0x1f3   :  { %2035 = vmatprep.subr.mxu1 %v7145_v23  ;;  %4734 = vmatprep.subr.mxu0 %v9830_v40  ;;  %10131 = vst [vmem:[#allocation21_spill] sm:$0xff] %v7158_v18  ;;  %v7164_v23 = vld [vmem:[%s9320_s3 + $0x220] sm:$0xff] }
 0x1f4   :  { %2036 = vmatpush1.msra.mxu1 %v7152_v34  ;;  %4735 = vmatpush3.msra.mxu0 %v7158_v18  ;;  %10132 = vst [vmem:[#allocation64_spill] sm:$0xff] %v7164_v23  ;;  %v7171_v34 = vld [vmem:[%s9320_s3 + $0x218] sm:$0xff]  ;;  %v7177_v18 = vld [vmem:[%s9320_s3 + $0x228] sm:$0xff] }
 0x1f5   :  { %2037 = vmatprep.subr.mxu1 %v7164_v23  ;;  %4736 = vmatprep.subr.mxu0 %v9830_v40  ;;  %10133 = vst [vmem:[#allocation22_spill] sm:$0xff] %v7171_v34  ;;  %10134 = vst [vmem:[#allocation24_spill] sm:$0xff] %v7177_v18  ;;  %v7183_v23 = vld [vmem:[%s9320_s3 + $0x1e8] sm:$0xff] }
 0x1f6   :  { %2038 = vmatpush1.msra.mxu1 %v7171_v34  ;;  %4737 = vmatpush3.msra.mxu0 %v7177_v18  ;;  %10135 = vst [vmem:[#allocation26_spill] sm:$0xff] %v7183_v23  ;;  %v7190_v34 = vld [vmem:[%s9320_s3 + $0x1e0] sm:$0xff]  ;;  %v7196_v18 = vld [vmem:[%s9320_s3 + $0x1f0] sm:$0xff] }
 0x1f7   :  { %2039 = vmatprep.subr.mxu1 %v7183_v23  ;;  %4738 = vmatprep.subr.mxu0 %v9830_v40  ;;  %10136 = vst [vmem:[#allocation27_spill] sm:$0xff] %v7190_v34  ;;  %10137 = vst [vmem:[#allocation65_spill] sm:$0xff] %v7196_v18  ;;  %v7202_v23 = vld [vmem:[%s9320_s3 + $0x1b0] sm:$0xff] }
 0x1f8   :  { %2040 = vmatpush1.msra.mxu1 %v7190_v34  ;;  %4739 = vmatpush3.msra.mxu0 %v7196_v18  ;;  %10138 = vst [vmem:[#allocation67_spill] sm:$0xff] %v7202_v23  ;;  %v7209_v34 = vld [vmem:[%s9320_s3 + $0x1a8] sm:$0xff]  ;;  %v7215_v18 = vld [vmem:[%s9320_s3 + $0x1b8] sm:$0xff] }
 0x1f9   :  { %2041 = vmatprep.subr.mxu1 %v7202_v23  ;;  %4740 = vmatprep.subr.mxu0 %v9830_v40  ;;  %10139 = vst [vmem:[#allocation68_spill] sm:$0xff] %v7209_v34  ;;  %10140 = vst [vmem:[#allocation70_spill] sm:$0xff] %v7215_v18  ;;  %v7221_v23 = vld [vmem:[%s9320_s3 + $0x178] sm:$0xff] }
 0x1fa   :  { %2042 = vmatpush1.msra.mxu1 %v7209_v34  ;;  %4741 = vmatpush3.msra.mxu0 %v7215_v18  ;;  %10141 = vst [vmem:[#allocation71_spill] sm:$0xff] %v7221_v23  ;;  %v7228_v34 = vld [vmem:[%s9320_s3 + $0x170] sm:$0xff]  ;;  %v7234_v18 = vld [vmem:[%s9320_s3 + $0x180] sm:$0xff] }
 0x1fb   :  { %2043 = vmatprep.subr.mxu1 %v7221_v23  ;;  %4742 = vmatprep.subr.mxu0 %v9830_v40  ;;  %10142 = vst [vmem:[#allocation72_spill] sm:$0xff] %v7228_v34  ;;  %10143 = vst [vmem:[#allocation73_spill] sm:$0xff] %v7234_v18  ;;  %v7240_v23 = vld [vmem:[%s9320_s3 + $0x140] sm:$0xff] }
 0x1fc   :  { %2044 = vmatpush1.msra.mxu1 %v7228_v34  ;;  %4743 = vmatpush3.msra.mxu0 %v7234_v18  ;;  %10144 = vst [vmem:[#allocation40_spill] sm:$0xff] %v7240_v23  ;;  %v7247_v34 = vld [vmem:[%s9320_s3 + $0x138] sm:$0xff]  ;;  %v7253_v18 = vld [vmem:[%s9320_s3 + $0x148] sm:$0xff] }
 0x1fd   :  { %2045 = vmatprep.subr.mxu1 %v7240_v23  ;;  %4744 = vmatprep.subr.mxu0 %v9830_v40  ;;  %10145 = vst [vmem:[#allocation31_spill] sm:$0xff] %v7247_v34  ;;  %10146 = vst [vmem:[#allocation41_spill] sm:$0xff] %v7253_v18  ;;  %v1224_v16 = vpop.f32.mrf.mxu1  ;;  %v1295_v7 = vpop.f32.mrf.mxu0  ;;  %v7259_v23 = vld [vmem:[%s9320_s3 + $0x108] sm:$0xff] }
 0x1fe   :  { %2046 = vmatpush1.msra.mxu1 %v7247_v34  ;;  %4745 = vmatpush3.msra.mxu0 %v7253_v18  ;;  %10147 = vst [vmem:[#allocation44_spill] sm:$0xff] %v7259_v23  ;;  %v1225_v34 = vadd.f32 %v1224_v16, %v6966_v19  ;;  %v7273_v18 = vld [vmem:[%s9320_s3 + $0x110] sm:$0xff] }
 0x1ff   :  { %2047 = vmatprep.subr.mxu1 %v7259_v23  ;;  %4746 = vmatprep.subr.mxu0 %v9830_v40  ;;  %10149 = vst [vmem:[#allocation46_spill] sm:$0xff] %v7273_v18  ;;  %v1226_v17 = vpop.f32.mrf.mxu1  ;;  %v4653_v23 = vpop.f32.mrf.mxu0  ;;  %v7279_v16 = vld [vmem:[%s9320_s3 + $0xd0] sm:$0xff] }
 0x200   :  { %2048 = vmatpush1.msra.mxu1 %v7267_v21  ;;  %4747 = vmatpush3.msra.mxu0 %v7273_v18  ;;  %v1302_v21 = vmul.f32 %v7104_v45, %v1225_v34  ;;  %v1227_v19 = vadd.f32 %v1226_v17, %v6976_v33  ;;  %v7294_v23 = vld [vmem:[%s9320_s3 + $0xd8] sm:$0xff]  ;;  %v1296_v17 = vadd.f32 %v1295_v7, %v6986_v43 }
 0x201   :  { %2049 = vmatprep.subr.mxu1 %v7279_v16  ;;  %4748 = vmatprep.subr.mxu0 %v9830_v40  ;;  %10151 = vst [vmem:[#allocation48_spill] sm:$0xff] %v7294_v23  ;;  %v7300_v45 = vld [vmem:[%s9320_s3 + $0x98] sm:$0xff] }
 0x202   :  { %2050 = vmatpush1.msra.mxu1 %v7288_v49  ;;  %4749 = vmatpush3.msra.mxu0 %v7294_v23  ;;  %10152 = vst [vmem:[#allocation49_spill] sm:$0xff] %v7300_v45  ;;  %v1303_v34 = vmul.f32 %v1302_v21, %v1227_v19  ;;  %v7308_v49 = vld [vmem:[%s9320_s3 + $0x90] sm:$0xff]  ;;  %v7314_v23 = vld [vmem:[%s9320_s3 + $0xa0] sm:$0xff]  ;;  %v7329_v19 = vld [vmem:[%s9320_s3 + $0x58] sm:$0xff] }
 0x203   :  { %2051 = vmatprep.subr.mxu1 %v7300_v45  ;;  %4750 = vmatprep.subr.mxu0 %v9830_v40  ;;  %v7320_v45 = vld [vmem:[%s9320_s3 + $0x60] sm:$0xff]  ;;  %v7335_v21 = vld [vmem:[%s9320_s3 + $0x68] sm:$0xff] }
 0x204   :  { %2052 = vmatpush1.msra.mxu1 %v7308_v49  ;;  %4751 = vmatpush3.msra.mxu0 %v7314_v23  ;;  %10153 = vst [vmem:[#allocation52_spill] sm:$0xff] %v7320_v45  ;;  %v7324_v7 = vmul.f32 %v1303_v34, %v1296_v17  ;;  %v7348_v17 = vld [vmem:[%s9320_s3 + $0x20] sm:$0xff]  ;;  %v7355_v34 = vld [vmem:[%s9320_s3 + $0x30] sm:$0xff] }
 0x205   :  { %2053 = vmatprep.subr.mxu1 %v7320_v45  ;;  %4752 = vmatprep.subr.mxu0 %v9830_v40  ;;  %v7341_v45 = vld [vmem:[%s9320_s3 + $0x28] sm:$0xff] }
 0x206   :  { %10154 = vst [vmem:[#allocation55_spill] sm:$0xff] %v7324_v7  ;;  %2054 = vmatpush1.msra.mxu1 %v7329_v19  ;;  %4753 = vmatpush3.msra.mxu0 %v7335_v21  ;;  %v10155_v7 = vsub.s32 5, %v5759_v38 }
 0x207   :  { %2055 = vmatprep.subr.mxu1 %v7341_v45  ;;  %4754 = vmatprep.subr.mxu0 %v9830_v40 }
 0x208   :  { %2056 = vmatpush1.msra.mxu1 %v7348_v17  ;;  %2089 = vmatprep.mubr.f32.mxu1 %v9830_v40 }
 0x209   :  { %4755 = vmatpush3.msra.mxu0 %v7355_v34  ;;  %4756 = vmatprep.mubr.msk.f32.mxu0 %vm5189_vm4, %v9830_v40 }
 0x20a   :  { %4196 = vmatmul.mubr.msk.f32.vlgmr.msra.gmra.mxu1 %vm7112_vm0, %v7110_v20  ;;  %4757 = vmatmul.mubr.msk.f32.vlgmr.msra.gmra.mxu0 %vm7112_vm0, %v7110_v20  ;;  %v92_v20 = vrot.slane %v7034_v24, %v10155_v7  ;;  %v10177_v7 = vld [vmem:[#allocation38_spill] sm:$0xff] }
 0x20b   :  { %2172 = vmatprep.subr.mxu1 %v6404_v62  ;;  %2243 = vmatprep.subr.mxu0 %v6410_v63  ;;  %v10156_v62 = vld [vmem:[#allocation5_spill] sm:$0xff] }
 0x20c   :  { %2173 = vmatpush1.msra.mxu1 %v6416_v0  ;;  %2244 = vmatpush1.msra.mxu0 %v6422_v1  ;;  %v7386_v63 = vadd.f32 %v10156_v62, %v92_v20  ;;  %v10157_v1 = vld [vmem:[#allocation74_spill] sm:$0xff]  ;;  %v10178_v62 = vld [vmem:[#allocation39_spill] sm:$0xff] }
 0x20d   :  { %2174 = vmatprep.subr.mxu1 %v6428_v2  ;;  %2245 = vmatprep.subr.mxu0 %v6434_v3  ;;  %v10158_v2 = vld [vmem:[#allocation6_spill] sm:$0xff]  ;;  %v10159_v3 = vld [vmem:[#allocation7_spill] sm:$0xff] }
 0x20e   :  { %2175 = vmatpush1.msra.mxu1 %v6440_v5  ;;  %2246 = vmatpush1.msra.mxu0 %v6446_v6  ;;  %v483_v0 = vmul.f32 %v7386_v63, %v7386_v63  ;;  %v10160_v5 = vld [vmem:[#allocation8_spill] sm:$0xff]  ;;  %v10161_v6 = vld [vmem:[#allocation9_spill] sm:$0xff]  ;;  %vm543_vm1 = vcmp.le.f32.partialorder %v7386_v63, -0.5  ;;  %vm553_vm2 = vcmp.ge.f32.partialorder %v7386_v63, 0.5 }
 0x20f   :  { %2176 = vmatprep.subr.mxu1 %v6455_v8  ;;  %2247 = vmatprep.subr.mxu0 %v6461_v9  ;;  %v10162_v8 = vld [vmem:[#allocation12_spill] sm:$0xff]  ;;  %v10163_v9 = vld [vmem:[#allocation13_spill] sm:$0xff]  ;;  %vm7452_vm3 = vmneg %vm543_vm1 }
 0x210   :  { %2177 = vmatpush1.msra.mxu1 %v6467_v11  ;;  %2248 = vmatpush1.msra.mxu0 %v6473_v46  ;;  %v493_v11 = vmul.f32 %v483_v0, %v7386_v63  ;;  %v10164_v46 = vld [vmem:[#allocation14_spill] sm:$0xff] }
 0x211   :  { %2178 = vmatprep.subr.mxu1 %v6479_v12  ;;  %2249 = vmatprep.subr.mxu0 %v10068_v29  ;;  %v10165_v12 = vld [vmem:[#allocation15_spill] sm:$0xff]  ;;  %v10166_v29 = vld [vmem:[#allocation16_spill] sm:$0xff] }
 0x212   :  { %2179 = vmatpush1.msra.mxu1 %v10069_v4  ;;  %2250 = vmatpush1.msra.mxu0 %v10070_v32  ;;  %v10167_v4 = vld [vmem:[#allocation19_spill] sm:$0xff]  ;;  %v10168_v32 = vld [vmem:[#allocation20_spill] sm:$0xff] }
 0x213   :  { %2180 = vmatprep.subr.mxu1 %v10072_v42  ;;  %2251 = vmatprep.subr.mxu0 %v10073_v44  ;;  %v10169_v42 = vld [vmem:[#allocation23_spill] sm:$0xff]  ;;  %v10170_v44 = vld [vmem:[#allocation29_spill] sm:$0xff] }
 0x214   :  { %2181 = vmatpush1.msra.mxu1 %v10074_v52  ;;  %2252 = vmatpush1.msra.mxu0 %v10075_v53  ;;  %v10171_v52 = vld [vmem:[#allocation30_spill] sm:$0xff]  ;;  %v503_v53 = vmul.f32 -2.0, %v493_v11 }
 0x215   :  { %2182 = vmatprep.subr.mxu1 %v10076_v54  ;;  %2253 = vmatprep.subr.mxu0 %v10077_v55  ;;  %v513_v54 = vmul.f32 1.5, %v7386_v63  ;;  %v10172_v55 = vld [vmem:[#allocation32_spill] sm:$0xff]  ;;  %v10191_v63 = vld [vmem:[#allocation62_spill] sm:$0xff] }
 0x216   :  { %2183 = vmatpush1.msra.mxu1 %v10078_v56  ;;  %2254 = vmatpush1.msra.mxu0 %v10079_v58  ;;  %v10173_v56 = vld [vmem:[#allocation34_spill] sm:$0xff] }
 0x217   :  { %2184 = vmatprep.subr.mxu1 %v10080_v59  ;;  %2255 = vmatprep.subr.mxu0 %v10081_v60  ;;  %v10174_v60 = vld [vmem:[#allocation35_spill] sm:$0xff] }
 0x218   :  { %2185 = vmatpush1.msra.mxu1 %v10082_v61  ;;  %2256 = vmatpush1.msra.mxu0 %v10157_v1  ;;  %v10175_v61 = vld [vmem:[#allocation36_spill] sm:$0xff]  ;;  %v523_v1 = vadd.f32 %v513_v54, %v503_v53  ;;  %v10203_v53 = vld [vmem:[#allocation65_spill] sm:$0xff]  ;;  %v10204_v54 = vld [vmem:[#allocation67_spill] sm:$0xff] }
 0x219   :  { %2186 = vmatprep.subr.mxu1 %v10158_v2  ;;  %2257 = vmatprep.subr.mxu0 %v10159_v3  ;;  %v10179_v3 = vld [vmem:[#allocation42_spill] sm:$0xff] }
 0x21a   :  { %2187 = vmatpush1.msra.mxu1 %v10160_v5  ;;  %2258 = vmatpush1.msra.mxu0 %v10161_v6  ;;  %v10180_v6 = vld [vmem:[#allocation43_spill] sm:$0xff] }
 0x21b   :  { %2188 = vmatprep.subr.mxu1 %v10162_v8  ;;  %2259 = vmatprep.subr.mxu0 %v10163_v9 }
 0x21c   :  { %2189 = vmatpush1.msra.mxu1 %v10164_v46  ;;  %2260 = vmatpush1.msra.mxu0 %v10165_v12  ;;  %v10192_v46 = vld [vmem:[#allocation63_spill] sm:$0xff]  ;;  %v10196_v12 = vld [vmem:[#allocation18_spill] sm:$0xff] }
 0x21d   :  { %2190 = vmatprep.subr.mxu1 %v10166_v29  ;;  %2261 = vmatprep.subr.mxu0 %v10167_v4  ;;  %v10197_v29 = vld [vmem:[#allocation21_spill] sm:$0xff]  ;;  %v10198_v4 = vld [vmem:[#allocation64_spill] sm:$0xff] }
 0x21e   :  { %2191 = vmatpush1.msra.mxu1 %v10168_v32  ;;  %2262 = vmatpush1.msra.mxu0 %v10169_v42  ;;  %v10199_v32 = vld [vmem:[#allocation22_spill] sm:$0xff]  ;;  %v10200_v42 = vld [vmem:[#allocation24_spill] sm:$0xff] }
 0x21f   :  { %2192 = vmatprep.subr.mxu1 %v10170_v44  ;;  %2263 = vmatprep.subr.mxu0 %v10171_v52  ;;  %v1371_v58 = vpop.f32.mrf.mxu1  ;;  %v1442_v59 = vpop.f32.mrf.mxu0  ;;  %v10201_v44 = vld [vmem:[#allocation26_spill] sm:$0xff]  ;;  %v10202_v52 = vld [vmem:[#allocation27_spill] sm:$0xff] }
 0x220   :  { %2193 = vmatpush1.msra.mxu1 %v10172_v55  ;;  %2264 = vmatpush1.msra.mxu0 %v10173_v56  ;;  %v1372_v0 = vadd.f32 %v1371_v58, %v6681_v25  ;;  %v1443_v8 = vadd.f32 %v1442_v59, %v6714_v30  ;;  %v10205_v55 = vld [vmem:[#allocation68_spill] sm:$0xff]  ;;  %v10206_v56 = vld [vmem:[#allocation70_spill] sm:$0xff]  ;;  %v10207_v58 = vld [vmem:[#allocation71_spill] sm:$0xff] }
 0x221   :  { %2194 = vmatprep.subr.mxu1 %v10174_v60  ;;  %2265 = vmatprep.subr.mxu0 %v10175_v61  ;;  %v1373_v20 = vpop.f32.mrf.mxu1  ;;  %v1444_v5 = vpop.f32.mrf.mxu0  ;;  %v10208_v59 = vld [vmem:[#allocation72_spill] sm:$0xff]  ;;  %v10209_v60 = vld [vmem:[#allocation73_spill] sm:$0xff] }
 0x222   :  { %2195 = vmatpush1.msra.mxu1 %v10176_v27  ;;  %2266 = vmatpush1.msra.mxu0 %v10177_v7  ;;  %v1374_v2 = vadd.f32 %v1373_v20, %v10106_v37  ;;  %v10210_v61 = vld [vmem:[#allocation40_spill] sm:$0xff]  ;;  %v10211_v27 = vld [vmem:[#allocation31_spill] sm:$0xff]  ;;  %v10212_v7 = vld [vmem:[#allocation41_spill] sm:$0xff] }
 0x223   :  { %2196 = vmatprep.subr.mxu1 %v10178_v62  ;;  %2267 = vmatprep.subr.mxu0 %v10105_v47  ;;  %v533_v47 = vadd.f32 0.5, %v523_v1  ;;  %v10214_v1 = vld [vmem:[#allocation75_spill] sm:$0xff] }
 0x224   :  { %2197 = vmatpush1.msra.mxu1 %v10107_v50  ;;  %2268 = vmatpush1.msra.mxu0 %v10179_v3  ;;  %v1588_v9 = vmul.f32 %v1374_v2, %v1372_v0  ;;  %v1445_v50 = vadd.f32 %v1444_v5, %v6743_v48  ;;  %v10213_v0 = vld [vmem:[#allocation44_spill] sm:$0xff]  ;;  %v10215_v3 = vld [vmem:[#allocation45_spill] sm:$0xff] }
 0x225   :  { %2198 = vmatprep.subr.mxu1 %v10180_v6  ;;  %2269 = vmatprep.subr.mxu0 %v10110_v28  ;;  %v10187_v28 = vld [vmem:[#allocation58_spill] sm:$0xff] }
 0x226   :  { %2199 = vmatpush1.msra.mxu1 %v10111_v41  ;;  %2270 = vmatpush1.msra.mxu0 %v6780_v15  ;;  %v1589_v11 = vmul.f32 %v1588_v9, %v1443_v8  ;;  %v7568_v41 = vld [vmem:[%s9320_s3 + $0x318] sm:$0xff] }
 0x227   :  { %2200 = vmatprep.subr.mxu1 %v6787_v13  ;;  %2271 = vmatprep.subr.mxu0 %v10112_v51  ;;  %v10181_v13 = vld [vmem:[#allocation50_spill] sm:$0xff]  ;;  %v10188_v51 = vld [vmem:[#allocation59_spill] sm:$0xff] }
 0x228   :  { %2201 = vmatpush1.msra.mxu1 %v10113_v14  ;;  %2272 = vmatpush1.msra.mxu0 %v10114_v36  ;;  %v7444_v15 = vmul.f32 %v1589_v11, %v1445_v50  ;;  %v7450_v14 = vsel %vm553_vm2, 1.0, %v533_v47  ;;  %v10186_v36 = vld [vmem:[#allocation54_spill] sm:$0xff]  ;;  %v10216_v47 = vld [vmem:[#allocation47_spill] sm:$0xff]  ;;  %v10217_v50 = vld [vmem:[#allocation48_spill] sm:$0xff] }
 0x229   :  { %2202 = vmatprep.subr.mxu1 %v6814_v26  ;;  %2273 = vmatprep.subr.mxu0 %v10115_v31  ;;  %v10184_v26 = vld [vmem:[#allocation51_spill] sm:$0xff]  ;;  %v10189_v31 = vld [vmem:[#allocation60_spill] sm:$0xff]  ;;  %v10218_v11 = vld [vmem:[#allocation49_spill] sm:$0xff] }
 0x22a   :  { %2203 = vmatpush1.msra.mxu1 %v6826_v22  ;;  %2236 = vmatprep.mubr.f32.mxu1 %v9830_v40  ;;  %v10185_v22 = vld [vmem:[#allocation53_spill] sm:$0xff] }
 0x22b   :  { %2274 = vmatpush1.msra.mxu0 %v10181_v13  ;;  %2307 = vmatprep.mubr.f32.mxu0 %v9830_v40 }
 0x22c   :  { %4200 = vmatmul.mubr.msk.f32.vlgmr.msra.gmra.mxu1 %vm7452_vm3, %v7450_v14  ;;  %4202 = vmatmul.mubr.msk.f32.vlgmr.msra.gmra.mxu0 %vm7452_vm3, %v7450_v14 }
 0x22d   :  { %2314 = vmatprep.subr.mxu1 %v10184_v26  ;;  %4759 = vmatprep.subr.mxu0 %v9830_v40 }
 0x22e   :  { %2315 = vmatpush1.msra.mxu1 %v10118_v39  ;;  %4760 = vmatpush3.msra.mxu0 %v10185_v22  ;;  %v10190_v39 = vld [vmem:[#allocation61_spill] sm:$0xff]  ;;  %v10219_v22 = vld [vmem:[#allocation52_spill] sm:$0xff] }
 0x22f   :  { %2316 = vmatprep.subr.mxu1 %v10186_v36  ;;  %4761 = vmatprep.subr.mxu0 %v9830_v40  ;;  %v7544_v36 = vld [vmem:[%s9320_s3 + $0x350] sm:$0xff] }
 0x230   :  { %2317 = vmatpush1.msra.mxu1 %v10121_v10  ;;  %4762 = vmatpush3.msra.mxu0 %v10122_v35  ;;  %v10193_v10 = vld [vmem:[#allocation66_spill] sm:$0xff]  ;;  %v10194_v35 = vld [vmem:[#allocation69_spill] sm:$0xff] }
 0x231   :  { %2318 = vmatprep.subr.mxu1 %v10123_v57  ;;  %4763 = vmatprep.subr.mxu0 %v9830_v40  ;;  %v10195_v57 = vld [vmem:[#allocation17_spill] sm:$0xff] }
 0x232   :  { %2319 = vmatpush1.msra.mxu1 %v10187_v28  ;;  %4764 = vmatpush3.msra.mxu0 %v10188_v51  ;;  %v7550_v28 = vld [vmem:[%s9320_s3 + $0x360] sm:$0xff]  ;;  %v7556_v51 = vld [vmem:[%s9320_s3 + $0x348] sm:$0xff] }
 0x233   :  { %2320 = vmatprep.subr.mxu1 %v10189_v31  ;;  %4765 = vmatprep.subr.mxu0 %v9830_v40  ;;  %v7574_v31 = vld [vmem:[%s9320_s3 + $0x328] sm:$0xff] }
 0x234   :  { %2321 = vmatpush1.msra.mxu1 %v10190_v39  ;;  %4766 = vmatpush3.msra.mxu0 %v10191_v63  ;;  %10221 = vst [vmem:[#allocation57_spill] sm:$0xff] %v7574_v31  ;;  %v7580_v39 = vld [vmem:[%s9320_s3 + $0x310] sm:$0xff]  ;;  %v7586_v63 = vld [vmem:[%s9320_s3 + $0x320] sm:$0xff] }
 0x235   :  { %2322 = vmatprep.subr.mxu1 %v10192_v46  ;;  %4767 = vmatprep.subr.mxu0 %v9830_v40  ;;  %10222 = vst [vmem:[#allocation5_spill] sm:$0xff] %v7580_v39  ;;  %10223 = vst [vmem:[#allocation74_spill] sm:$0xff] %v7586_v63  ;;  %v10224_v46 = vsub.s32 6, %v5759_v38 }
 0x236   :  { %2323 = vmatpush1.msra.mxu1 %v10193_v10  ;;  %4768 = vmatpush3.msra.mxu0 %v10194_v35  ;;  %v7595_v35 = vld [vmem:[%s9320_s3 + $0x2e0] sm:$0xff] }
 0x237   :  { %2324 = vmatprep.subr.mxu1 %v10195_v57  ;;  %4769 = vmatprep.subr.mxu0 %v9830_v40  ;;  %v96_v10 = vrot.slane %v7034_v24, %v10224_v46  ;;  %10225 = vst [vmem:[#allocation6_spill] sm:$0xff] %v7595_v35  ;;  %v7646_v46 = vld [vmem:[%s9320_s3 + $0x270] sm:$0xff] }
 0x238   :  { %2325 = vmatpush1.msra.mxu1 %v10196_v12  ;;  %4770 = vmatpush3.msra.mxu0 %v10197_v29  ;;  %10234 = vst [vmem:[#allocation16_spill] sm:$0xff] %v7646_v46 }
 0x239   :  { %2326 = vmatprep.subr.mxu1 %v10198_v4  ;;  %4771 = vmatprep.subr.mxu0 %v9830_v40 }
 0x23a   :  { %2327 = vmatpush1.msra.mxu1 %v10199_v32  ;;  %4772 = vmatpush3.msra.mxu0 %v10200_v42 }
 0x23b   :  { %2328 = vmatprep.subr.mxu1 %v10201_v44  ;;  %4773 = vmatprep.subr.mxu0 %v9830_v40 }
 0x23c   :  { %2329 = vmatpush1.msra.mxu1 %v10202_v52  ;;  %4774 = vmatpush3.msra.mxu0 %v10203_v53 }
 0x23d   :  { %2330 = vmatprep.subr.mxu1 %v10204_v54  ;;  %4775 = vmatprep.subr.mxu0 %v9830_v40 }
 0x23e   :  { %2331 = vmatpush1.msra.mxu1 %v10205_v55  ;;  %4776 = vmatpush3.msra.mxu0 %v10206_v56 }
 0x23f   :  { %2332 = vmatprep.subr.mxu1 %v10207_v58  ;;  %4777 = vmatprep.subr.mxu0 %v9830_v40 }
 0x240   :  { %2333 = vmatpush1.msra.mxu1 %v10208_v59  ;;  %4778 = vmatpush3.msra.mxu0 %v10209_v60 }
 0x241   :  { %2334 = vmatprep.subr.mxu1 %v10210_v61  ;;  %4779 = vmatprep.subr.mxu0 %v9830_v40  ;;  %v1513_v20 = vpop.f32.mrf.mxu1  ;;  %v1584_v62 = vpop.f32.mrf.mxu0 }
 0x242   :  { %2335 = vmatpush1.msra.mxu1 %v10211_v27  ;;  %4780 = vmatpush3.msra.mxu0 %v10212_v7  ;;  %v1514_v2 = vadd.f32 %v1513_v20, %v10214_v1  ;;  %v1585_v13 = vadd.f32 %v1584_v62, %v6986_v43  ;;  %v7601_v20 = vld [vmem:[%s9320_s3 + $0x2f0] sm:$0xff]  ;;  %v7607_v62 = vld [vmem:[%s9320_s3 + $0x2d8] sm:$0xff] }
 0x243   :  { %2336 = vmatprep.subr.mxu1 %v10213_v0  ;;  %4781 = vmatprep.subr.mxu0 %v9830_v40  ;;  %v1515_v5 = vpop.f32.mrf.mxu1  ;;  %v4688_v6 = vpop.f32.mrf.mxu0  ;;  %10226 = vst [vmem:[#allocation7_spill] sm:$0xff] %v7601_v20  ;;  %10227 = vst [vmem:[#allocation8_spill] sm:$0xff] %v7607_v62 }
 0x244   :  { %2337 = vmatpush1.msra.mxu1 %v10215_v3  ;;  %4782 = vmatpush3.msra.mxu0 %v7273_v18  ;;  %v1591_v8 = vmul.f32 %v7444_v15, %v1514_v2  ;;  %v1516_v9 = vadd.f32 %v1515_v5, %v6976_v33  ;;  %v7613_v2 = vld [vmem:[%s9320_s3 + $0x2e8] sm:$0xff]  ;;  %v7625_v6 = vld [vmem:[%s9320_s3 + $0x2b8] sm:$0xff] }
 0x245   :  { %2338 = vmatprep.subr.mxu1 %v7279_v16  ;;  %4783 = vmatprep.subr.mxu0 %v9830_v40  ;;  %10228 = vst [vmem:[#allocation9_spill] sm:$0xff] %v7613_v2  ;;  %v7619_v5 = vld [vmem:[%s9320_s3 + $0x2a8] sm:$0xff]  ;;  %10230 = vst [vmem:[#allocation13_spill] sm:$0xff] %v7625_v6 }
 0x246   :  { %2339 = vmatpush1.msra.mxu1 %v10216_v47  ;;  %4784 = vmatpush3.msra.mxu0 %v10217_v50  ;;  %v1592_v26 = vmul.f32 %v1591_v8, %v1516_v9  ;;  %10229 = vst [vmem:[#allocation12_spill] sm:$0xff] %v7619_v5  ;;  %v7631_v8 = vld [vmem:[%s9320_s3 + $0x2a0] sm:$0xff]  ;;  %v7637_v9 = vld [vmem:[%s9320_s3 + $0x2b0] sm:$0xff] }
 0x247   :  { %2340 = vmatprep.subr.mxu1 %v10218_v11  ;;  %4785 = vmatprep.subr.mxu0 %v9830_v40  ;;  %10231 = vst [vmem:[#allocation14_spill] sm:$0xff] %v7631_v8  ;;  %10232 = vst [vmem:[#allocation15_spill] sm:$0xff] %v7637_v9 }
 0x248   :  { %2341 = vmatpush1.msra.mxu1 %v7308_v49  ;;  %4786 = vmatpush3.msra.mxu0 %v7314_v23  ;;  %v7524_v15 = vmul.f32 %v1592_v26, %v1585_v13  ;;  %v10233_v13 = vld [vmem:[#allocation10_spill] sm:$0xff] }
 0x249   :  { %2342 = vmatprep.subr.mxu1 %v10219_v22  ;;  %4787 = vmatprep.subr.mxu0 %v9830_v40  ;;  %v7641_v26 = vadd.f32 %v10233_v13, %v96_v10  ;;  %v7664_v10 = vld [vmem:[%s9320_s3 + $0x278] sm:$0xff] }
 0x24a   :  { %10220 = vst [vmem:[#allocation56_spill] sm:$0xff] %v7524_v15  ;;  %2343 = vmatpush1.msra.mxu1 %v7329_v19  ;;  %4788 = vmatpush3.msra.mxu0 %v7335_v21  ;;  %v7652_v15 = vld [vmem:[%s9320_s3 + $0x280] sm:$0xff]  ;;  %10237 = vst [vmem:[#allocation23_spill] sm:$0xff] %v7664_v10  ;;  %v7670_v13 = vld [vmem:[%s9320_s3 + $0x238] sm:$0xff] }
 0x24b   :  { %2344 = vmatprep.subr.mxu1 %v7341_v45  ;;  %4789 = vmatprep.subr.mxu0 %v9830_v40  ;;  %10235 = vst [vmem:[#allocation19_spill] sm:$0xff] %v7652_v15  ;;  %10238 = vst [vmem:[#allocation29_spill] sm:$0xff] %v7670_v13  ;;  %vm544_vm5 = vcmp.le.f32.partialorder %v7641_v26, -0.5  ;;  %vm554_vm6 = vcmp.ge.f32.partialorder %v7641_v26, 0.5 }
 0x24c   :  { %2345 = vmatpush1.msra.mxu1 %v7348_v17  ;;  %2378 = vmatprep.mubr.f32.mxu1 %v9830_v40  ;;  %vm7947_vm7 = vmneg %vm544_vm5 }
 0x24d   :  { %4790 = vmatpush3.msra.mxu0 %v7355_v34  ;;  %4791 = vmatprep.mubr.msk.f32.mxu0 %vm5189_vm4, %v9830_v40 }
 0x24e   :  { %4204 = vmatmul.mubr.msk.f32.vlgmr.msra.gmra.mxu1 %vm7452_vm3, %v7450_v14  ;;  %4792 = vmatmul.mubr.msk.f32.vlgmr.msra.gmra.mxu0 %vm7452_vm3, %v7450_v14  ;;  %v7562_v14 = vld [vmem:[%s9320_s3 + $0x358] sm:$0xff] }
 0x24f   :  { %2461 = vmatprep.subr.mxu1 %v7544_v36  ;;  %2532 = vmatprep.subr.mxu0 %v7550_v28 }
 0x250   :  { %2462 = vmatpush1.msra.mxu1 %v7556_v51  ;;  %2533 = vmatpush1.msra.mxu0 %v7562_v14 }
 0x251   :  { %2463 = vmatprep.subr.mxu1 %v7568_v41  ;;  %2534 = vmatprep.subr.mxu0 %v7574_v31 }
 0x252   :  { %2464 = vmatpush1.msra.mxu1 %v7580_v39  ;;  %2535 = vmatpush1.msra.mxu0 %v7586_v63 }
 0x253   :  { %2465 = vmatprep.subr.mxu1 %v7595_v35  ;;  %2536 = vmatprep.subr.mxu0 %v7601_v20  ;;  %v7856_v20 = vld [vmem:[%s9320_s3 + $0xa8] sm:$0xff] }
 0x254   :  { %2466 = vmatpush1.msra.mxu1 %v7607_v62  ;;  %2537 = vmatpush1.msra.mxu0 %v7613_v2  ;;  %v7842_v2 = vld [vmem:[%s9320_s3 + $0xb0] sm:$0xff] }
 0x255   :  { %2467 = vmatprep.subr.mxu1 %v7619_v5  ;;  %2538 = vmatprep.subr.mxu0 %v7625_v6  ;;  %10266 = vst [vmem:[#allocation24_spill] sm:$0xff] %v7842_v2 }
 0x256   :  { %2468 = vmatpush1.msra.mxu1 %v7631_v8  ;;  %2539 = vmatpush1.msra.mxu0 %v7637_v9  ;;  %v7658_v9 = vld [vmem:[%s9320_s3 + $0x268] sm:$0xff]  ;;  %v514_v8 = vmul.f32 1.5, %v7641_v26 }
 0x257   :  { %2469 = vmatprep.subr.mxu1 %v7646_v46  ;;  %2540 = vmatprep.subr.mxu0 %v7652_v15  ;;  %10236 = vst [vmem:[#allocation20_spill] sm:$0xff] %v7658_v9  ;;  %v7676_v15 = vld [vmem:[%s9320_s3 + $0x248] sm:$0xff]  ;;  %v7726_v46 = vld [vmem:[%s9320_s3 + $0x1d8] sm:$0xff] }
 0x258   :  { %2470 = vmatpush1.msra.mxu1 %v7658_v9  ;;  %2541 = vmatpush1.msra.mxu0 %v7664_v10  ;;  %10239 = vst [vmem:[#allocation30_spill] sm:$0xff] %v7676_v15  ;;  %v7682_v9 = vld [vmem:[%s9320_s3 + $0x230] sm:$0xff]  ;;  %v7688_v10 = vld [vmem:[%s9320_s3 + $0x240] sm:$0xff]  ;;  %10247 = vst [vmem:[#allocation42_spill] sm:$0xff] %v7726_v46 }
 0x259   :  { %2471 = vmatprep.subr.mxu1 %v7670_v13  ;;  %2542 = vmatprep.subr.mxu0 %v7676_v15  ;;  %10240 = vst [vmem:[#allocation32_spill] sm:$0xff] %v7682_v9  ;;  %10241 = vst [vmem:[#allocation34_spill] sm:$0xff] %v7688_v10  ;;  %v7694_v13 = vld [vmem:[%s9320_s3 + $0x200] sm:$0xff]  ;;  %v7700_v15 = vld [vmem:[%s9320_s3 + $0x210] sm:$0xff] }
 0x25a   :  { %2472 = vmatpush1.msra.mxu1 %v7682_v9  ;;  %2543 = vmatpush1.msra.mxu0 %v7688_v10  ;;  %10242 = vst [vmem:[#allocation35_spill] sm:$0xff] %v7694_v13  ;;  %10243 = vst [vmem:[#allocation36_spill] sm:$0xff] %v7700_v15  ;;  %v484_v9 = vmul.f32 %v7641_v26, %v7641_v26  ;;  %v7708_v10 = vld [vmem:[%s9320_s3 + $0x1f8] sm:$0xff] }
 0x25b   :  { %2473 = vmatprep.subr.mxu1 %v7694_v13  ;;  %2544 = vmatprep.subr.mxu0 %v7700_v15  ;;  %10244 = vst [vmem:[#allocation37_spill] sm:$0xff] %v7708_v10  ;;  %v7714_v13 = vld [vmem:[%s9320_s3 + $0x208] sm:$0xff] }
 0x25c   :  { %2474 = vmatpush1.msra.mxu1 %v7708_v10  ;;  %10245 = vst [vmem:[#allocation38_spill] sm:$0xff] %v7714_v13  ;;  %2545 = vmatpush1.msra.mxu0 %v7714_v13  ;;  %v7720_v15 = vld [vmem:[%s9320_s3 + $0x1c8] sm:$0xff]  ;;  %v7732_v10 = vld [vmem:[%s9320_s3 + $0x1c0] sm:$0xff]  ;;  %v7738_v13 = vld [vmem:[%s9320_s3 + $0x1d0] sm:$0xff] }
 0x25d   :  { %10246 = vst [vmem:[#allocation39_spill] sm:$0xff] %v7720_v15  ;;  %2475 = vmatprep.subr.mxu1 %v7720_v15  ;;  %2546 = vmatprep.subr.mxu0 %v7726_v46  ;;  %10248 = vst [vmem:[#allocation43_spill] sm:$0xff] %v7732_v10  ;;  %v7744_v15 = vld [vmem:[%s9320_s3 + $0x190] sm:$0xff]  ;;  %v7750_v46 = vld [vmem:[%s9320_s3 + $0x1a0] sm:$0xff] }
 0x25e   :  { %2476 = vmatpush1.msra.mxu1 %v7732_v10  ;;  %10249 = vst [vmem:[#allocation50_spill] sm:$0xff] %v7738_v13  ;;  %2547 = vmatpush1.msra.mxu0 %v7738_v13  ;;  %10250 = vst [vmem:[#allocation51_spill] sm:$0xff] %v7744_v15  ;;  %v494_v10 = vmul.f32 %v484_v9, %v7641_v26  ;;  %v7757_v13 = vld [vmem:[%s9320_s3 + $0x188] sm:$0xff]  ;;  %v7934_v26 = vld [vmem:[%s9320_s3] sm:$0xff] }
 0x25f   :  { %2477 = vmatprep.subr.mxu1 %v7744_v15  ;;  %10251 = vst [vmem:[#allocation53_spill] sm:$0xff] %v7750_v46  ;;  %2548 = vmatprep.subr.mxu0 %v7750_v46  ;;  %10252 = vst [vmem:[#allocation54_spill] sm:$0xff] %v7757_v13  ;;  %v7763_v15 = vld [vmem:[%s9320_s3 + $0x198] sm:$0xff]  ;;  %v7775_v9 = vld [vmem:[%s9320_s3 + $0x168] sm:$0xff] }
 0x260   :  { %2478 = vmatpush1.msra.mxu1 %v7757_v13  ;;  %10253 = vst [vmem:[#allocation58_spill] sm:$0xff] %v7763_v15  ;;  %2549 = vmatpush1.msra.mxu0 %v7763_v15  ;;  %v7769_v46 = vld [vmem:[%s9320_s3 + $0x158] sm:$0xff]  ;;  %10255 = vst [vmem:[#allocation60_spill] sm:$0xff] %v7775_v9  ;;  %v7781_v13 = vld [vmem:[%s9320_s3 + $0x150] sm:$0xff] }
 0x261   :  { %10254 = vst [vmem:[#allocation59_spill] sm:$0xff] %v7769_v46  ;;  %2479 = vmatprep.subr.mxu1 %v7769_v46  ;;  %2550 = vmatprep.subr.mxu0 %v7775_v9  ;;  %10256 = vst [vmem:[#allocation61_spill] sm:$0xff] %v7781_v13  ;;  %v7787_v15 = vld [vmem:[%s9320_s3 + $0x160] sm:$0xff]  ;;  %v7799_v9 = vld [vmem:[%s9320_s3 + $0x130] sm:$0xff] }
 0x262   :  { %2480 = vmatpush1.msra.mxu1 %v7781_v13  ;;  %10257 = vst [vmem:[#allocation62_spill] sm:$0xff] %v7787_v15  ;;  %2551 = vmatpush1.msra.mxu0 %v7787_v15  ;;  %v7793_v46 = vld [vmem:[%s9320_s3 + $0x120] sm:$0xff]  ;;  %10259 = vst [vmem:[#allocation66_spill] sm:$0xff] %v7799_v9  ;;  %v504_v13 = vmul.f32 -2.0, %v494_v10  ;;  %v7806_v15 = vld [vmem:[%s9320_s3 + $0x118] sm:$0xff] }
 0x263   :  { %10258 = vst [vmem:[#allocation63_spill] sm:$0xff] %v7793_v46  ;;  %2481 = vmatprep.subr.mxu1 %v7793_v46  ;;  %2552 = vmatprep.subr.mxu0 %v7799_v9  ;;  %10260 = vst [vmem:[#allocation69_spill] sm:$0xff] %v7806_v15  ;;  %v7812_v46 = vld [vmem:[%s9320_s3 + $0x128] sm:$0xff]  ;;  %v7836_v9 = vld [vmem:[%s9320_s3 + $0xf0] sm:$0xff] }
 0x264   :  { %2482 = vmatpush1.msra.mxu1 %v7806_v15  ;;  %10261 = vst [vmem:[#allocation17_spill] sm:$0xff] %v7812_v46  ;;  %2553 = vmatpush1.msra.mxu0 %v7812_v46  ;;  %v1660_v6 = vpop.f32.mrf.mxu1  ;;  %v1731_v5 = vpop.f32.mrf.mxu0  ;;  %v7818_v10 = vld [vmem:[%s9320_s3 + $0xe8] sm:$0xff]  ;;  %v7824_v15 = vld [vmem:[%s9320_s3 + $0xf8] sm:$0xff]  ;;  %v7830_v46 = vld [vmem:[%s9320_s3 + $0xe0] sm:$0xff]  ;;  %v524_v62 = vadd.f32 %v514_v8, %v504_v13 }
 0x265   :  { %10262 = vst [vmem:[#allocation18_spill] sm:$0xff] %v7818_v10  ;;  %2483 = vmatprep.subr.mxu1 %v7818_v10  ;;  %10263 = vst [vmem:[#allocation21_spill] sm:$0xff] %v7824_v15  ;;  %2554 = vmatprep.subr.mxu0 %v7824_v15  ;;  %v7848_v15 = vld [vmem:[%s9320_s3 + $0xc0] sm:$0xff]  ;;  %v7874_v8 = vld [vmem:[%s9320_s3 + $0x88] sm:$0xff]  ;;  %v1732_v13 = vadd.f32 %v1731_v5, %v6714_v30 }
 0x266   :  { %10264 = vst [vmem:[#allocation64_spill] sm:$0xff] %v7830_v46  ;;  %2484 = vmatpush1.msra.mxu1 %v7830_v46  ;;  %10265 = vst [vmem:[#allocation22_spill] sm:$0xff] %v7836_v9  ;;  %2555 = vmatpush1.msra.mxu0 %v7836_v9  ;;  %v1662_v10 = vpop.f32.mrf.mxu1  ;;  %v1661_v46 = vadd.f32 %v1660_v6, %v6681_v25  ;;  %v7868_v6 = vld [vmem:[%s9320_s3 + $0x78] sm:$0xff]  ;;  %v7899_v5 = vld [vmem:[%s9320_s3 + $0x50] sm:$0xff] }
 0x267   :  { %2485 = vmatprep.subr.mxu1 %v7842_v2  ;;  %10267 = vst [vmem:[#allocation26_spill] sm:$0xff] %v7848_v15  ;;  %2556 = vmatprep.subr.mxu0 %v7848_v15  ;;  %v1663_v9 = vadd.f32 %v1662_v10, %v10106_v37  ;;  %v7862_v2 = vld [vmem:[%s9320_s3 + $0xb8] sm:$0xff]  ;;  %v1733_v15 = vpop.f32.mrf.mxu0  ;;  %10269 = vst [vmem:[#allocation65_spill] sm:$0xff] %v7868_v6 }
 0x268   :  { %2486 = vmatpush1.msra.mxu1 %v7856_v20  ;;  %10268 = vst [vmem:[#allocation27_spill] sm:$0xff] %v7862_v2  ;;  %2557 = vmatpush1.msra.mxu0 %v7862_v2  ;;  %10270 = vst [vmem:[#allocation70_spill] sm:$0xff] %v7874_v8  ;;  %v7881_v2 = vld [vmem:[%s9320_s3 + $0x70] sm:$0xff] }
 0x269   :  { %2487 = vmatprep.subr.mxu1 %v7868_v6  ;;  %2558 = vmatprep.subr.mxu0 %v7874_v8  ;;  %v1877_v10 = vmul.f32 %v1663_v9, %v1661_v46  ;;  %10271 = vst [vmem:[#allocation72_spill] sm:$0xff] %v7881_v2  ;;  %v7887_v6 = vld [vmem:[%s9320_s3 + $0x80] sm:$0xff]  ;;  %v534_v46 = vadd.f32 0.5, %v524_v62  ;;  %v1734_v9 = vadd.f32 %v1733_v15, %v6743_v48  ;;  %v7920_v15 = vld [vmem:[%s9320_s3 + $0x8] sm:$0xff]  ;;  %v7926_v62 = vld [vmem:[%s9320_s3 + $0x18] sm:$0xff] }
 0x26a   :  { %2488 = vmatpush1.msra.mxu1 %v7881_v2  ;;  %10272 = vst [vmem:[#allocation44_spill] sm:$0xff] %v7887_v6  ;;  %2559 = vmatpush1.msra.mxu0 %v7887_v6  ;;  %v7893_v8 = vld [vmem:[%s9320_s3 + $0x40] sm:$0xff]  ;;  %v7906_v6 = vld [vmem:[%s9320_s3 + $0x38] sm:$0xff]  ;;  %10274 = vst [vmem:[#allocation47_spill] sm:$0xff] %v7926_v62 }
 0x26b   :  { %10273 = vst [vmem:[#allocation45_spill] sm:$0xff] %v7893_v8  ;;  %2489 = vmatprep.subr.mxu1 %v7893_v8  ;;  %2560 = vmatprep.subr.mxu0 %v7899_v5  ;;  %v1878_v2 = vmul.f32 %v1877_v10, %v1732_v13  ;;  %v7912_v8 = vld [vmem:[%s9320_s3 + $0x48] sm:$0xff]  ;;  %10275 = vst [vmem:[#allocation48_spill] sm:$0xff] %v7934_v26  ;;  %v7941_v10 = vld [vmem:[%s9320_s3 + $0x10] sm:$0xff] }
 0x26c   :  { %2490 = vmatpush1.msra.mxu1 %v7906_v6  ;;  %2561 = vmatpush1.msra.mxu0 %v7912_v8  ;;  %10276 = vst [vmem:[#allocation49_spill] sm:$0xff] %v7941_v10 }
 0x26d   :  { %2491 = vmatprep.subr.mxu1 %v7920_v15  ;;  %2562 = vmatprep.subr.mxu0 %v7926_v62  ;;  %v7929_v13 = vmul.f32 %v1878_v2, %v1734_v9  ;;  %v7945_v2 = vsel %vm554_vm6, 1.0, %v534_v46  ;;  %v7967_v46 = vld [vmem:[%s9320_s3 + $0x368] sm:$0xff] }
 0x26e   :  { %2492 = vmatpush1.msra.mxu1 %v7934_v26  ;;  %2525 = vmatprep.mubr.f32.mxu1 %v9830_v40  ;;  %10280 = vst [vmem:[#allocation10_spill] sm:$0xff] %v7967_v46  ;;  %v7973_v26 = vld [vmem:[%s9320_s3 + $0x378] sm:$0xff]  ;;  %v10302_v9 = vld [vmem:[#allocation25_spill] sm:$0xff] }
 0x26f   :  { %2563 = vmatpush1.msra.mxu0 %v7941_v10  ;;  %2596 = vmatprep.mubr.f32.mxu0 %v9830_v40  ;;  %v7960_v10 = vld [vmem:[%s9320_s3 + $0x370] sm:$0xff]  ;;  %10281 = vst [vmem:[#allocation78_spill] sm:$0xff] %v7973_v26 }
 0x270   :  { %4208 = vmatmul.mubr.msk.f32.vlgmr.msra.gmra.mxu1 %vm7947_vm7, %v7945_v2  ;;  %4210 = vmatmul.mubr.msk.f32.vlgmr.msra.gmra.mxu0 %vm7947_vm7, %v7945_v2  ;;  %10279 = vst [vmem:[#allocation52_spill] sm:$0xff] %v7960_v10 }
 0x271   :  { %2603 = vmatprep.subr.mxu1 %v7960_v10  ;;  %4794 = vmatprep.subr.mxu0 %v9830_v40  ;;  %v7979_v10 = vld [vmem:[%s9320_s3 + $0x338] sm:$0xff] }
 0x272   :  { %2604 = vmatpush1.msra.mxu1 %v7967_v46  ;;  %4795 = vmatpush3.msra.mxu0 %v7973_v26  ;;  %10282 = vst [vmem:[#allocation79_spill] sm:$0xff] %v7979_v10  ;;  %v7986_v46 = vld [vmem:[%s9320_s3 + $0x330] sm:$0xff]  ;;  %v7992_v26 = vld [vmem:[%s9320_s3 + $0x340] sm:$0xff] }
 0x273   :  { %2605 = vmatprep.subr.mxu1 %v7979_v10  ;;  %4796 = vmatprep.subr.mxu0 %v9830_v40  ;;  %10283 = vst [vmem:[#allocation80_spill] sm:$0xff] %v7986_v46  ;;  %10284 = vst [vmem:[#allocation81_spill] sm:$0xff] %v7992_v26  ;;  %v7998_v10 = vld [vmem:[%s9320_s3 + $0x300] sm:$0xff] }
 0x274   :  { %2606 = vmatpush1.msra.mxu1 %v7986_v46  ;;  %4797 = vmatpush3.msra.mxu0 %v7992_v26  ;;  %10285 = vst [vmem:[#allocation82_spill] sm:$0xff] %v7998_v10  ;;  %v8005_v46 = vld [vmem:[%s9320_s3 + $0x2f8] sm:$0xff]  ;;  %v8011_v26 = vld [vmem:[%s9320_s3 + $0x308] sm:$0xff] }
 0x275   :  { %2607 = vmatprep.subr.mxu1 %v7998_v10  ;;  %4798 = vmatprep.subr.mxu0 %v9830_v40  ;;  %10286 = vst [vmem:[#allocation83_spill] sm:$0xff] %v8005_v46  ;;  %10287 = vst [vmem:[#allocation84_spill] sm:$0xff] %v8011_v26  ;;  %v8017_v10 = vld [vmem:[%s9320_s3 + $0x2c8] sm:$0xff] }
 0x276   :  { %2608 = vmatpush1.msra.mxu1 %v8005_v46  ;;  %4799 = vmatpush3.msra.mxu0 %v8011_v26  ;;  %10288 = vst [vmem:[#allocation85_spill] sm:$0xff] %v8017_v10  ;;  %v8024_v46 = vld [vmem:[%s9320_s3 + $0x2c0] sm:$0xff]  ;;  %v8030_v26 = vld [vmem:[%s9320_s3 + $0x2d0] sm:$0xff] }
 0x277   :  { %2609 = vmatprep.subr.mxu1 %v8017_v10  ;;  %4800 = vmatprep.subr.mxu0 %v9830_v40  ;;  %10289 = vst [vmem:[#allocation86_spill] sm:$0xff] %v8024_v46  ;;  %10290 = vst [vmem:[#allocation87_spill] sm:$0xff] %v8030_v26  ;;  %v8036_v10 = vld [vmem:[%s9320_s3 + $0x290] sm:$0xff] }
 0x278   :  { %2610 = vmatpush1.msra.mxu1 %v8024_v46  ;;  %4801 = vmatpush3.msra.mxu0 %v8030_v26  ;;  %10291 = vst [vmem:[#allocation88_spill] sm:$0xff] %v8036_v10  ;;  %v8043_v46 = vld [vmem:[%s9320_s3 + $0x288] sm:$0xff]  ;;  %v8049_v26 = vld [vmem:[%s9320_s3 + $0x298] sm:$0xff] }
 0x279   :  { %2611 = vmatprep.subr.mxu1 %v8036_v10  ;;  %4802 = vmatprep.subr.mxu0 %v9830_v40  ;;  %10292 = vst [vmem:[#allocation89_spill] sm:$0xff] %v8043_v46  ;;  %10293 = vst [vmem:[#allocation90_spill] sm:$0xff] %v8049_v26 }
 0x27a   :  { %2612 = vmatpush1.msra.mxu1 %v8043_v46  ;;  %4803 = vmatpush3.msra.mxu0 %v8049_v26 }
 0x27b   :  { %2613 = vmatprep.subr.mxu1 %v10195_v57  ;;  %4804 = vmatprep.subr.mxu0 %v9830_v40 }
 0x27c   :  { %2614 = vmatpush1.msra.mxu1 %v10196_v12  ;;  %4805 = vmatpush3.msra.mxu0 %v10197_v29 }
 0x27d   :  { %2615 = vmatprep.subr.mxu1 %v10198_v4  ;;  %4806 = vmatprep.subr.mxu0 %v9830_v40 }
 0x27e   :  { %2616 = vmatpush1.msra.mxu1 %v10199_v32  ;;  %4807 = vmatpush3.msra.mxu0 %v10200_v42 }
 0x27f   :  { %2617 = vmatprep.subr.mxu1 %v10201_v44  ;;  %4808 = vmatprep.subr.mxu0 %v9830_v40 }
 0x280   :  { %2618 = vmatpush1.msra.mxu1 %v10202_v52  ;;  %4809 = vmatpush3.msra.mxu0 %v10203_v53 }
 0x281   :  { %2619 = vmatprep.subr.mxu1 %v10204_v54  ;;  %4810 = vmatprep.subr.mxu0 %v9830_v40 }
 0x282   :  { %2620 = vmatpush1.msra.mxu1 %v10205_v55  ;;  %4811 = vmatpush3.msra.mxu0 %v10206_v56 }
 0x283   :  { %2621 = vmatprep.subr.mxu1 %v10207_v58  ;;  %4812 = vmatprep.subr.mxu0 %v9830_v40 }
 0x284   :  { %2622 = vmatpush1.msra.mxu1 %v10208_v59  ;;  %4813 = vmatpush3.msra.mxu0 %v10209_v60 }
 0x285   :  { %2623 = vmatprep.subr.mxu1 %v10210_v61  ;;  %4814 = vmatprep.subr.mxu0 %v9830_v40 }
 0x286   :  { %2624 = vmatpush1.msra.mxu1 %v10211_v27  ;;  %4815 = vmatpush3.msra.mxu0 %v10212_v7  ;;  %v1802_v54 = vpop.f32.mrf.mxu1  ;;  %v1873_v55 = vpop.f32.mrf.mxu0 }
 0x287   :  { %2625 = vmatprep.subr.mxu1 %v10213_v0  ;;  %4816 = vmatprep.subr.mxu0 %v9830_v40  ;;  %v1803_v58 = vadd.f32 %v1802_v54, %v10214_v1  ;;  %v1874_v54 = vadd.f32 %v1873_v55, %v6986_v43 }
 0x288   :  { %2626 = vmatpush1.msra.mxu1 %v10215_v3  ;;  %4817 = vmatpush3.msra.mxu0 %v7273_v18  ;;  %v1804_v60 = vpop.f32.mrf.mxu1  ;;  %v4723_v61 = vpop.f32.mrf.mxu0 }
 0x289   :  { %2627 = vmatprep.subr.mxu1 %v7279_v16  ;;  %4818 = vmatprep.subr.mxu0 %v9830_v40  ;;  %v1880_v7 = vmul.f32 %v7929_v13, %v1803_v58  ;;  %v1805_v27 = vadd.f32 %v1804_v60, %v6976_v33  ;;  %v10296_v60 = vld [vmem:[#allocation8_spill] sm:$0xff]  ;;  %v10297_v61 = vld [vmem:[#allocation9_spill] sm:$0xff]  ;;  %v10300_v13 = vld [vmem:[#allocation14_spill] sm:$0xff] }
 0x28a   :  { %2628 = vmatpush1.msra.mxu1 %v10216_v47  ;;  %4819 = vmatpush3.msra.mxu0 %v10217_v50 }
 0x28b   :  { %2629 = vmatprep.subr.mxu1 %v10218_v11  ;;  %4820 = vmatprep.subr.mxu0 %v9830_v40  ;;  %v1881_v18 = vmul.f32 %v1880_v7, %v1805_v27  ;;  %v10298_v27 = vld [vmem:[#allocation12_spill] sm:$0xff]  ;;  %v10299_v7 = vld [vmem:[#allocation13_spill] sm:$0xff] }
 0x28c   :  { %2630 = vmatpush1.msra.mxu1 %v7308_v49  ;;  %4821 = vmatpush3.msra.mxu0 %v7314_v23 }
 0x28d   :  { %2631 = vmatprep.subr.mxu1 %v10219_v22  ;;  %4822 = vmatprep.subr.mxu0 %v9830_v40  ;;  %v8094_v58 = vmul.f32 %v1881_v18, %v1874_v54  ;;  %v99_v18 = vsub.s32 7, %v5759_v38  ;;  %v10295_v38 = vld [vmem:[#allocation7_spill] sm:$0xff] }
 0x28e   :  { %2632 = vmatpush1.msra.mxu1 %v7329_v19  ;;  %4823 = vmatpush3.msra.mxu0 %v7335_v21 }
 0x28f   :  { %10294 = vst [vmem:[#allocation91_spill] sm:$0xff] %v8094_v58  ;;  %2633 = vmatprep.subr.mxu1 %v7341_v45  ;;  %4824 = vmatprep.subr.mxu0 %v9830_v40  ;;  %v100_v55 = vrot.slane %v7034_v24, %v99_v18  ;;  %v10303_v24 = vld [vmem:[#allocation16_spill] sm:$0xff]  ;;  %v10304_v18 = vld [vmem:[#allocation19_spill] sm:$0xff] }
 0x290   :  { %2634 = vmatpush1.msra.mxu1 %v7348_v17  ;;  %2667 = vmatprep.mubr.f32.mxu1 %v9830_v40  ;;  %v10305_v58 = vld [vmem:[#allocation20_spill] sm:$0xff] }
 0x291   :  { %4825 = vmatpush3.msra.mxu0 %v7355_v34  ;;  %4826 = vmatprep.mubr.msk.f32.mxu0 %vm5189_vm4, %v9830_v40  ;;  %v8130_v54 = vadd.f32 %v10302_v9, %v100_v55  ;;  %v10312_v55 = vld [vmem:[#allocation36_spill] sm:$0xff] }
 0x292   :  { %4212 = vmatmul.mubr.msk.f32.vlgmr.msra.gmra.mxu1 %vm7947_vm7, %v7945_v2  ;;  %4827 = vmatmul.mubr.msk.f32.vlgmr.msra.gmra.mxu0 %vm7947_vm7, %v7945_v2  ;;  %v10301_v2 = vld [vmem:[#allocation15_spill] sm:$0xff] }
 0x293   :  { %2750 = vmatprep.subr.mxu1 %v7544_v36  ;;  %2821 = vmatprep.subr.mxu0 %v7550_v28  ;;  %v485_v9 = vmul.f32 %v8130_v54, %v8130_v54  ;;  %vm545_vm8 = vcmp.le.f32.partialorder %v8130_v54, -0.5  ;;  %vm555_vm9 = vcmp.ge.f32.partialorder %v8130_v54, 0.5 }
 0x294   :  { %2751 = vmatpush1.msra.mxu1 %v7556_v51  ;;  %2822 = vmatpush1.msra.mxu0 %v7562_v14  ;;  %vm8196_vm10 = vmneg %vm545_vm8 }
 0x295   :  { %2752 = vmatprep.subr.mxu1 %v7568_v41  ;;  %2823 = vmatprep.subr.mxu0 %v7574_v31 }
 0x296   :  { %2753 = vmatpush1.msra.mxu1 %v7580_v39  ;;  %2824 = vmatpush1.msra.mxu0 %v7586_v63  ;;  %v10335_v63 = vld [vmem:[#allocation24_spill] sm:$0xff]  ;;  %v10337_v39 = vld [vmem:[#allocation27_spill] sm:$0xff] }
 0x297   :  { %2754 = vmatprep.subr.mxu1 %v7595_v35  ;;  %2825 = vmatprep.subr.mxu0 %v10295_v38  ;;  %v10322_v38 = vld [vmem:[#allocation58_spill] sm:$0xff] }
 0x298   :  { %2755 = vmatpush1.msra.mxu1 %v10296_v60  ;;  %2826 = vmatpush1.msra.mxu0 %v10297_v61  ;;  %v10306_v60 = vld [vmem:[#allocation23_spill] sm:$0xff]  ;;  %v10307_v61 = vld [vmem:[#allocation29_spill] sm:$0xff] }
 0x299   :  { %2756 = vmatprep.subr.mxu1 %v10298_v27  ;;  %2827 = vmatprep.subr.mxu0 %v10299_v7  ;;  %v10308_v27 = vld [vmem:[#allocation30_spill] sm:$0xff]  ;;  %v10309_v7 = vld [vmem:[#allocation32_spill] sm:$0xff] }
 0x29a   :  { %2757 = vmatpush1.msra.mxu1 %v10300_v13  ;;  %2828 = vmatpush1.msra.mxu0 %v10301_v2  ;;  %v10310_v13 = vld [vmem:[#allocation34_spill] sm:$0xff]  ;;  %v10311_v2 = vld [vmem:[#allocation35_spill] sm:$0xff] }
 0x29b   :  { %2758 = vmatprep.subr.mxu1 %v10303_v24  ;;  %2829 = vmatprep.subr.mxu0 %v10304_v18  ;;  %v10313_v18 = vld [vmem:[#allocation37_spill] sm:$0xff]  ;;  %v10321_v24 = vld [vmem:[#allocation54_spill] sm:$0xff] }
 0x29c   :  { %2759 = vmatpush1.msra.mxu1 %v10305_v58  ;;  %2830 = vmatpush1.msra.mxu0 %v10306_v60  ;;  %v10314_v58 = vld [vmem:[#allocation38_spill] sm:$0xff]  ;;  %v10315_v60 = vld [vmem:[#allocation39_spill] sm:$0xff] }
 0x29d   :  { %2760 = vmatprep.subr.mxu1 %v10307_v61  ;;  %2831 = vmatprep.subr.mxu0 %v10308_v27  ;;  %v10316_v61 = vld [vmem:[#allocation42_spill] sm:$0xff]  ;;  %v10317_v27 = vld [vmem:[#allocation43_spill] sm:$0xff] }
 0x29e   :  { %2761 = vmatpush1.msra.mxu1 %v10309_v7  ;;  %2832 = vmatpush1.msra.mxu0 %v10310_v13  ;;  %v10318_v7 = vld [vmem:[#allocation50_spill] sm:$0xff]  ;;  %v10319_v13 = vld [vmem:[#allocation51_spill] sm:$0xff] }
 0x29f   :  { %2762 = vmatprep.subr.mxu1 %v10311_v2  ;;  %2833 = vmatprep.subr.mxu0 %v10312_v55  ;;  %v10320_v2 = vld [vmem:[#allocation53_spill] sm:$0xff]  ;;  %v495_v55 = vmul.f32 %v485_v9, %v8130_v54 }
 0x2a0   :  { %2763 = vmatpush1.msra.mxu1 %v10313_v18  ;;  %2834 = vmatpush1.msra.mxu0 %v10314_v58  ;;  %v10323_v18 = vld [vmem:[#allocation59_spill] sm:$0xff]  ;;  %v10324_v58 = vld [vmem:[#allocation60_spill] sm:$0xff]  ;;  %v10329_v9 = vld [vmem:[#allocation69_spill] sm:$0xff] }
 0x2a1   :  { %2764 = vmatprep.subr.mxu1 %v10315_v60  ;;  %2835 = vmatprep.subr.mxu0 %v10316_v61  ;;  %v10325_v60 = vld [vmem:[#allocation61_spill] sm:$0xff]  ;;  %v10326_v61 = vld [vmem:[#allocation62_spill] sm:$0xff] }
 0x2a2   :  { %2765 = vmatpush1.msra.mxu1 %v10317_v27  ;;  %2836 = vmatpush1.msra.mxu0 %v10318_v7  ;;  %v10327_v27 = vld [vmem:[#allocation63_spill] sm:$0xff]  ;;  %v10328_v7 = vld [vmem:[#allocation66_spill] sm:$0xff] }
 0x2a3   :  { %2766 = vmatprep.subr.mxu1 %v10319_v13  ;;  %2837 = vmatprep.subr.mxu0 %v10320_v2  ;;  %v505_v13 = vmul.f32 -2.0, %v495_v55  ;;  %v515_v2 = vmul.f32 1.5, %v8130_v54  ;;  %v10336_v55 = vld [vmem:[#allocation26_spill] sm:$0xff]  ;;  %v10347_v54 = vld [vmem:[#allocation52_spill] sm:$0xff] }
 0x2a4   :  { %2767 = vmatpush1.msra.mxu1 %v10321_v24  ;;  %2838 = vmatpush1.msra.mxu0 %v10322_v38  ;;  %v10330_v24 = vld [vmem:[#allocation17_spill] sm:$0xff] }
 0x2a5   :  { %2768 = vmatprep.subr.mxu1 %v10323_v18  ;;  %2839 = vmatprep.subr.mxu0 %v10324_v58  ;;  %v10331_v18 = vld [vmem:[#allocation18_spill] sm:$0xff]  ;;  %v10332_v58 = vld [vmem:[#allocation21_spill] sm:$0xff] }
 0x2a6   :  { %2769 = vmatpush1.msra.mxu1 %v10325_v60  ;;  %2840 = vmatpush1.msra.mxu0 %v10326_v61  ;;  %v10333_v60 = vld [vmem:[#allocation64_spill] sm:$0xff]  ;;  %v10334_v61 = vld [vmem:[#allocation22_spill] sm:$0xff] }
 0x2a7   :  { %2770 = vmatprep.subr.mxu1 %v10327_v27  ;;  %2841 = vmatprep.subr.mxu0 %v10328_v7 }
 0x2a8   :  { %2771 = vmatpush1.msra.mxu1 %v10329_v9  ;;  %2842 = vmatpush1.msra.mxu0 %v10330_v24  ;;  %v1949_v38 = vpop.f32.mrf.mxu1  ;;  %v2020_v35 = vpop.f32.mrf.mxu0  ;;  %v525_v9 = vadd.f32 %v515_v2, %v505_v13 }
 0x2a9   :  { %2772 = vmatprep.subr.mxu1 %v10331_v18  ;;  %2843 = vmatprep.subr.mxu0 %v10332_v58  ;;  %v1950_v7 = vadd.f32 %v1949_v38, %v6681_v25  ;;  %v10338_v58 = vld [vmem:[#allocation65_spill] sm:$0xff] }
 0x2aa   :  { %2773 = vmatpush1.msra.mxu1 %v10333_v60  ;;  %2844 = vmatpush1.msra.mxu0 %v10334_v61  ;;  %v1951_v27 = vpop.f32.mrf.mxu1  ;;  %v2022_v18 = vpop.f32.mrf.mxu0  ;;  %v10339_v60 = vld [vmem:[#allocation70_spill] sm:$0xff]  ;;  %v2021_v61 = vadd.f32 %v2020_v35, %v6714_v30  ;;  %v10342_v38 = vld [vmem:[#allocation45_spill] sm:$0xff] }
 0x2ab   :  { %2774 = vmatprep.subr.mxu1 %v10335_v63  ;;  %2845 = vmatprep.subr.mxu0 %v10336_v55  ;;  %v1952_v24 = vadd.f32 %v1951_v27, %v10106_v37  ;;  %v10340_v63 = vld [vmem:[#allocation72_spill] sm:$0xff]  ;;  %v535_v27 = vadd.f32 0.5, %v525_v9  ;;  %v2023_v13 = vadd.f32 %v2022_v18, %v6743_v48  ;;  %v10348_v18 = vld [vmem:[#allocation10_spill] sm:$0xff] }
 0x2ac   :  { %2775 = vmatpush1.msra.mxu1 %v7856_v20  ;;  %2846 = vmatpush1.msra.mxu0 %v10337_v39  ;;  %v10341_v55 = vld [vmem:[#allocation44_spill] sm:$0xff]  ;;  %v10349_v9 = vld [vmem:[#allocation78_spill] sm:$0xff] }
 0x2ad   :  { %2776 = vmatprep.subr.mxu1 %v10338_v58  ;;  %2847 = vmatprep.subr.mxu0 %v10339_v60  ;;  %v2166_v31 = vmul.f32 %v1952_v24, %v1950_v7  ;;  %v10343_v7 = vld [vmem:[#allocation48_spill] sm:$0xff]  ;;  %v10344_v24 = vld [vmem:[#allocation49_spill] sm:$0xff] }
 0x2ae   :  { %2777 = vmatpush1.msra.mxu1 %v10340_v63  ;;  %2848 = vmatpush1.msra.mxu0 %v10341_v55 }
 0x2af   :  { %2778 = vmatprep.subr.mxu1 %v10342_v38  ;;  %2849 = vmatprep.subr.mxu0 %v7899_v5  ;;  %v2167_v2 = vmul.f32 %v2166_v31, %v2021_v61  ;;  %v8194_v31 = vsel %vm555_vm9, 1.0, %v535_v27  ;;  %v10350_v27 = vld [vmem:[#allocation79_spill] sm:$0xff] }
 0x2b0   :  { %2779 = vmatpush1.msra.mxu1 %v7906_v6  ;;  %2850 = vmatpush1.msra.mxu0 %v7912_v8  ;;  %v10379_v61 = vld [vmem:[#allocation15_spill] sm:$0xff] }
 0x2b1   :  { %2780 = vmatprep.subr.mxu1 %v7920_v15  ;;  %2851 = vmatprep.subr.mxu0 %v7926_v62  ;;  %v8188_v35 = vmul.f32 %v2167_v2, %v2023_v13  ;;  %v10351_v13 = vld [vmem:[#allocation80_spill] sm:$0xff]  ;;  %v10352_v2 = vld [vmem:[#allocation81_spill] sm:$0xff] }
 0x2b2   :  { %2781 = vmatpush1.msra.mxu1 %v10343_v7  ;;  %2814 = vmatprep.mubr.f32.mxu1 %v9830_v40  ;;  %v10354_v7 = vld [vmem:[#allocation83_spill] sm:$0xff]  ;;  %v10356_v62 = vld [vmem:[#allocation85_spill] sm:$0xff] }
 0x2b3   :  { %2852 = vmatpush1.msra.mxu0 %v10344_v24  ;;  %2885 = vmatprep.mubr.f32.mxu0 %v9830_v40  ;;  %v10353_v24 = vld [vmem:[#allocation82_spill] sm:$0xff] }
 0x2b4   :  { %4216 = vmatmul.mubr.msk.f32.vlgmr.msra.gmra.mxu1 %vm8196_vm10, %v8194_v31  ;;  %4218 = vmatmul.mubr.msk.f32.vlgmr.msra.gmra.mxu0 %vm8196_vm10, %v8194_v31 }
 0x2b5   :  { %2892 = vmatprep.subr.mxu1 %v10347_v54  ;;  %4829 = vmatprep.subr.mxu0 %v9830_v40  ;;  %v10355_v54 = vld [vmem:[#allocation84_spill] sm:$0xff] }
 0x2b6   :  { %2893 = vmatpush1.msra.mxu1 %v10348_v18  ;;  %4830 = vmatpush3.msra.mxu0 %v10349_v9  ;;  %v10357_v9 = vld [vmem:[#allocation86_spill] sm:$0xff] }
 0x2b7   :  { %2894 = vmatprep.subr.mxu1 %v10350_v27  ;;  %4831 = vmatprep.subr.mxu0 %v9830_v40  ;;  %v10358_v27 = vld [vmem:[#allocation87_spill] sm:$0xff] }
 0x2b8   :  { %2895 = vmatpush1.msra.mxu1 %v10351_v13  ;;  %4832 = vmatpush3.msra.mxu0 %v10352_v2 }
 0x2b9   :  { %2896 = vmatprep.subr.mxu1 %v10353_v24  ;;  %4833 = vmatprep.subr.mxu0 %v9830_v40 }
 0x2ba   :  { %2897 = vmatpush1.msra.mxu1 %v10354_v7  ;;  %4834 = vmatpush3.msra.mxu0 %v10355_v54 }
 0x2bb   :  { %2898 = vmatprep.subr.mxu1 %v10356_v62  ;;  %4835 = vmatprep.subr.mxu0 %v9830_v40 }
 0x2bc   :  { %2899 = vmatpush1.msra.mxu1 %v10357_v9  ;;  %4836 = vmatpush3.msra.mxu0 %v10358_v27 }
 0x2bd   :  { %2900 = vmatprep.subr.mxu1 %v8036_v10  ;;  %4837 = vmatprep.subr.mxu0 %v9830_v40 }
 0x2be   :  { %2901 = vmatpush1.msra.mxu1 %v8043_v46  ;;  %4838 = vmatpush3.msra.mxu0 %v8049_v26 }
 0x2bf   :  { %2902 = vmatprep.subr.mxu1 %v10195_v57  ;;  %4839 = vmatprep.subr.mxu0 %v9830_v40  ;;  %v10359_v57 = vld [vmem:[#allocation67_spill] sm:$0xff] }
 0x2c0   :  { %2903 = vmatpush1.msra.mxu1 %v10196_v12  ;;  %4840 = vmatpush3.msra.mxu0 %v10197_v29  ;;  %v10360_v12 = vld [vmem:[#allocation68_spill] sm:$0xff]  ;;  %v10361_v29 = vld [vmem:[#allocation71_spill] sm:$0xff] }
 0x2c1   :  { %2904 = vmatprep.subr.mxu1 %v10198_v4  ;;  %4841 = vmatprep.subr.mxu0 %v9830_v40  ;;  %v10362_v4 = vld [vmem:[#allocation73_spill] sm:$0xff] }
 0x2c2   :  { %2905 = vmatpush1.msra.mxu1 %v10199_v32  ;;  %4842 = vmatpush3.msra.mxu0 %v10200_v42  ;;  %v10363_v32 = vld [vmem:[#allocation40_spill] sm:$0xff]  ;;  %v10364_v42 = vld [vmem:[#allocation31_spill] sm:$0xff] }
 0x2c3   :  { %2906 = vmatprep.subr.mxu1 %v10201_v44  ;;  %4843 = vmatprep.subr.mxu0 %v9830_v40  ;;  %v10365_v44 = vld [vmem:[#allocation41_spill] sm:$0xff] }
 0x2c4   :  { %2907 = vmatpush1.msra.mxu1 %v10202_v52  ;;  %4844 = vmatpush3.msra.mxu0 %v10203_v53 }
 0x2c5   :  { %2908 = vmatprep.subr.mxu1 %v10359_v57  ;;  %4845 = vmatprep.subr.mxu0 %v9830_v40 }
 0x2c6   :  { %2909 = vmatpush1.msra.mxu1 %v10360_v12  ;;  %4846 = vmatpush3.msra.mxu0 %v10206_v56 }
 0x2c7   :  { %2910 = vmatprep.subr.mxu1 %v10361_v29  ;;  %4847 = vmatprep.subr.mxu0 %v9830_v40 }
 0x2c8   :  { %2911 = vmatpush1.msra.mxu1 %v10208_v59  ;;  %4848 = vmatpush3.msra.mxu0 %v10362_v4  ;;  %v10366_v59 = vld [vmem:[#allocation46_spill] sm:$0xff] }
 0x2c9   :  { %2912 = vmatprep.subr.mxu1 %v10363_v32  ;;  %4849 = vmatprep.subr.mxu0 %v9830_v40  ;;  %v10380_v32 = vld [vmem:[#allocation11_spill] sm:$0xff] }
 0x2ca   :  { %2913 = vmatpush1.msra.mxu1 %v10364_v42  ;;  %4850 = vmatpush3.msra.mxu0 %v10365_v44  ;;  %v2091_v52 = vpop.f32.mrf.mxu1  ;;  %v2162_v53 = vpop.f32.mrf.mxu0  ;;  %v10381_v44 = vld [vmem:[#allocation16_spill] sm:$0xff] }
 0x2cb   :  { %2914 = vmatprep.subr.mxu1 %v10213_v0  ;;  %4851 = vmatprep.subr.mxu0 %v9830_v40  ;;  %v2092_v56 = vadd.f32 %v2091_v52, %v10214_v1  ;;  %v2163_v0 = vadd.f32 %v2162_v53, %v6986_v43  ;;  %v10382_v52 = vld [vmem:[#allocation19_spill] sm:$0xff]  ;;  %v10383_v53 = vld [vmem:[#allocation20_spill] sm:$0xff] }
 0x2cc   :  { %2915 = vmatpush1.msra.mxu1 %v10215_v3  ;;  %4852 = vmatpush3.msra.mxu0 %v10366_v59  ;;  %v2093_v57 = vpop.f32.mrf.mxu1  ;;  %v4758_v12 = vpop.f32.mrf.mxu0  ;;  %v10385_v59 = vld [vmem:[#allocation29_spill] sm:$0xff] }
 0x2cd   :  { %2916 = vmatprep.subr.mxu1 %v7279_v16  ;;  %4853 = vmatprep.subr.mxu0 %v9830_v40  ;;  %v2169_v29 = vmul.f32 %v8188_v35, %v2092_v56  ;;  %v2094_v4 = vadd.f32 %v2093_v57, %v6976_v33  ;;  %v10377_v35 = vld [vmem:[#allocation13_spill] sm:$0xff]  ;;  %v10384_v56 = vld [vmem:[#allocation23_spill] sm:$0xff]  ;;  %v10386_v57 = vld [vmem:[#allocation30_spill] sm:$0xff] }
 0x2ce   :  { %2917 = vmatpush1.msra.mxu1 %v10216_v47  ;;  %4854 = vmatpush3.msra.mxu0 %v10217_v50  ;;  %v10373_v47 = vld [vmem:[#allocation7_spill] sm:$0xff]  ;;  %v10374_v50 = vld [vmem:[#allocation8_spill] sm:$0xff] }
 0x2cf   :  { %2918 = vmatprep.subr.mxu1 %v10218_v11  ;;  %4855 = vmatprep.subr.mxu0 %v9830_v40  ;;  %v2170_v3 = vmul.f32 %v2169_v29, %v2094_v4  ;;  %v10375_v11 = vld [vmem:[#allocation9_spill] sm:$0xff]  ;;  %v10387_v12 = vld [vmem:[#allocation32_spill] sm:$0xff]  ;;  %v10388_v29 = vld [vmem:[#allocation34_spill] sm:$0xff] }
 0x2d0   :  { %2919 = vmatpush1.msra.mxu1 %v7308_v49  ;;  %4856 = vmatpush3.msra.mxu0 %v7314_v23  ;;  %v8290_v49 = vld [vmem:[%s9319_s2 + $0x8] sm:$0x3]  ;;  %v10389_v4 = vld [vmem:[#allocation35_spill] sm:$0xff] }
 0x2d1   :  { %2920 = vmatprep.subr.mxu1 %v10219_v22  ;;  %4857 = vmatprep.subr.mxu0 %v9830_v40  ;;  %v8268_v16 = vmul.f32 %v2170_v3, %v2163_v0  ;;  %v10368_v23 = vld [vmem:[#allocation57_spill] sm:$0xff]  ;;  %v10376_v22 = vld [vmem:[#allocation12_spill] sm:$0xff] }
 0x2d2   :  { %2921 = vmatpush1.msra.mxu1 %v7329_v19  ;;  %4858 = vmatpush3.msra.mxu0 %v7335_v21  ;;  %v10370_v19 = vld [vmem:[#allocation74_spill] sm:$0xff]  ;;  %v10371_v21 = vld [vmem:[#allocation33_spill] sm:$0xff]  ;;  %v10390_v0 = vld [vmem:[#allocation36_spill] sm:$0xff] }
 0x2d3   :  { %10367 = vst [vmem:[#allocation25_spill] sm:$0xff] %v8268_v16  ;;  %2922 = vmatprep.subr.mxu1 %v7341_v45  ;;  %4859 = vmatprep.subr.mxu0 %v9830_v40  ;;  %v10369_v45 = vld [vmem:[#allocation5_spill] sm:$0xff]  ;;  %v10394_v16 = vld [vmem:[#allocation42_spill] sm:$0xff] }
 0x2d4   :  { %2923 = vmatpush1.msra.mxu1 %v7348_v17  ;;  %2956 = vmatprep.mubr.f32.mxu1 %v9830_v40  ;;  %v104_v17 = vrot.slane %v8290_v49, %v10371_v21  ;;  %v10391_v21 = vld [vmem:[#allocation37_spill] sm:$0xff] }
 0x2d5   :  { %4860 = vmatpush3.msra.mxu0 %v7355_v34  ;;  %4861 = vmatprep.mubr.msk.f32.mxu0 %vm5189_vm4, %v9830_v40  ;;  %v10372_v34 = vld [vmem:[#allocation6_spill] sm:$0xff] }
 0x2d6   :  { %4220 = vmatmul.mubr.msk.f32.vlgmr.msra.gmra.mxu1 %vm8196_vm10, %v8194_v31  ;;  %4862 = vmatmul.mubr.msk.f32.vlgmr.msra.gmra.mxu0 %vm8196_vm10, %v8194_v31  ;;  %v10378_v31 = vld [vmem:[#allocation14_spill] sm:$0xff]  ;;  %v8309_v42 = vadd.f32 %v10380_v32, %v104_v17  ;;  %v10393_v32 = vld [vmem:[#allocation39_spill] sm:$0xff] }
 0x2d7   :  { %3039 = vmatprep.subr.mxu1 %v7544_v36  ;;  %3110 = vmatprep.subr.mxu0 %v7550_v28  ;;  %v10392_v17 = vld [vmem:[#allocation38_spill] sm:$0xff] }
 0x2d8   :  { %3040 = vmatpush1.msra.mxu1 %v7556_v51  ;;  %3111 = vmatpush1.msra.mxu0 %v7562_v14  ;;  %v486_v3 = vmul.f32 %v8309_v42, %v8309_v42  ;;  %vm546_vm11 = vcmp.le.f32.partialorder %v8309_v42, -0.5  ;;  %vm556_vm12 = vcmp.ge.f32.partialorder %v8309_v42, 0.5 }
 0x2d9   :  { %3041 = vmatprep.subr.mxu1 %v7568_v41  ;;  %3112 = vmatprep.subr.mxu0 %v10368_v23  ;;  %vm8375_vm13 = vmneg %vm546_vm11 }
 0x2da   :  { %3042 = vmatpush1.msra.mxu1 %v10369_v45  ;;  %3113 = vmatpush1.msra.mxu0 %v10370_v19 }
 0x2db   :  { %3043 = vmatprep.subr.mxu1 %v10372_v34  ;;  %3114 = vmatprep.subr.mxu0 %v10373_v47 }
 0x2dc   :  { %3044 = vmatpush1.msra.mxu1 %v10374_v50  ;;  %3115 = vmatpush1.msra.mxu0 %v10375_v11 }
 0x2dd   :  { %3045 = vmatprep.subr.mxu1 %v10376_v22  ;;  %3116 = vmatprep.subr.mxu0 %v10377_v35 }
 0x2de   :  { %3046 = vmatpush1.msra.mxu1 %v10378_v31  ;;  %3117 = vmatpush1.msra.mxu0 %v10379_v61 }
 0x2df   :  { %3047 = vmatprep.subr.mxu1 %v10381_v44  ;;  %3118 = vmatprep.subr.mxu0 %v10382_v52  ;;  %v10413_v52 = vld [vmem:[#allocation24_spill] sm:$0xff] }
 0x2e0   :  { %3048 = vmatpush1.msra.mxu1 %v10383_v53  ;;  %3119 = vmatpush1.msra.mxu0 %v10384_v56  ;;  %v10400_v56 = vld [vmem:[#allocation58_spill] sm:$0xff] }
 0x2e1   :  { %3049 = vmatprep.subr.mxu1 %v10385_v59  ;;  %3120 = vmatprep.subr.mxu0 %v10386_v57  ;;  %v10395_v57 = vld [vmem:[#allocation43_spill] sm:$0xff]  ;;  %v10399_v59 = vld [vmem:[#allocation54_spill] sm:$0xff] }
 0x2e2   :  { %3050 = vmatpush1.msra.mxu1 %v10387_v12  ;;  %3121 = vmatpush1.msra.mxu0 %v10388_v29  ;;  %v10396_v12 = vld [vmem:[#allocation50_spill] sm:$0xff]  ;;  %v10397_v29 = vld [vmem:[#allocation51_spill] sm:$0xff] }
 0x2e3   :  { %3051 = vmatprep.subr.mxu1 %v10389_v4  ;;  %3122 = vmatprep.subr.mxu0 %v10390_v0  ;;  %v10398_v4 = vld [vmem:[#allocation53_spill] sm:$0xff]  ;;  %v496_v0 = vmul.f32 %v486_v3, %v8309_v42 }
 0x2e4   :  { %3052 = vmatpush1.msra.mxu1 %v10391_v21  ;;  %3123 = vmatpush1.msra.mxu0 %v10392_v17  ;;  %v10401_v21 = vld [vmem:[#allocation59_spill] sm:$0xff]  ;;  %v10402_v17 = vld [vmem:[#allocation60_spill] sm:$0xff]  ;;  %v10407_v3 = vld [vmem:[#allocation69_spill] sm:$0xff] }
 0x2e5   :  { %3053 = vmatprep.subr.mxu1 %v10393_v32  ;;  %3124 = vmatprep.subr.mxu0 %v10394_v16  ;;  %v10403_v32 = vld [vmem:[#allocation61_spill] sm:$0xff]  ;;  %v10404_v16 = vld [vmem:[#allocation62_spill] sm:$0xff] }
 0x2e6   :  { %3054 = vmatpush1.msra.mxu1 %v10395_v57  ;;  %3125 = vmatpush1.msra.mxu0 %v10396_v12  ;;  %v10405_v57 = vld [vmem:[#allocation63_spill] sm:$0xff]  ;;  %v10406_v12 = vld [vmem:[#allocation66_spill] sm:$0xff] }
 0x2e7   :  { %3055 = vmatprep.subr.mxu1 %v10397_v29  ;;  %3126 = vmatprep.subr.mxu0 %v10398_v4  ;;  %v506_v29 = vmul.f32 -2.0, %v496_v0  ;;  %v516_v4 = vmul.f32 1.5, %v8309_v42  ;;  %v10414_v0 = vld [vmem:[#allocation26_spill] sm:$0xff]  ;;  %v10420_v42 = vld [vmem:[#allocation52_spill] sm:$0xff] }
 0x2e8   :  { %3056 = vmatpush1.msra.mxu1 %v10399_v59  ;;  %3127 = vmatpush1.msra.mxu0 %v10400_v56  ;;  %v10408_v59 = vld [vmem:[#allocation17_spill] sm:$0xff] }
 0x2e9   :  { %3057 = vmatprep.subr.mxu1 %v10401_v21  ;;  %3128 = vmatprep.subr.mxu0 %v10402_v17  ;;  %v10409_v21 = vld [vmem:[#allocation18_spill] sm:$0xff]  ;;  %v10410_v17 = vld [vmem:[#allocation21_spill] sm:$0xff] }
 0x2ea   :  { %3058 = vmatpush1.msra.mxu1 %v10403_v32  ;;  %3129 = vmatpush1.msra.mxu0 %v10404_v16  ;;  %v10411_v32 = vld [vmem:[#allocation64_spill] sm:$0xff]  ;;  %v10412_v16 = vld [vmem:[#allocation22_spill] sm:$0xff] }
 0x2eb   :  { %3059 = vmatprep.subr.mxu1 %v10405_v57  ;;  %3130 = vmatprep.subr.mxu0 %v10406_v12 }
 0x2ec   :  { %3060 = vmatpush1.msra.mxu1 %v10407_v3  ;;  %3131 = vmatpush1.msra.mxu0 %v10408_v59  ;;  %v2238_v56 = vpop.f32.mrf.mxu1  ;;  %v2309_v53 = vpop.f32.mrf.mxu0  ;;  %v526_v3 = vadd.f32 %v516_v4, %v506_v29  ;;  %v10417_v4 = vld [vmem:[#allocation49_spill] sm:$0xff] }
 0x2ed   :  { %3061 = vmatprep.subr.mxu1 %v10409_v21  ;;  %3132 = vmatprep.subr.mxu0 %v10410_v17  ;;  %v2239_v12 = vadd.f32 %v2238_v56, %v6681_v25 }
 0x2ee   :  { %3062 = vmatpush1.msra.mxu1 %v10411_v32  ;;  %3133 = vmatpush1.msra.mxu0 %v10412_v16  ;;  %v2240_v57 = vpop.f32.mrf.mxu1  ;;  %v2311_v21 = vpop.f32.mrf.mxu0  ;;  %v2310_v16 = vadd.f32 %v2309_v53, %v6714_v30  ;;  %v536_v56 = vadd.f32 0.5, %v526_v3  ;;  %v10415_v53 = vld [vmem:[#allocation47_spill] sm:$0xff] }
 0x2ef   :  { %3063 = vmatprep.subr.mxu1 %v10413_v52  ;;  %3134 = vmatprep.subr.mxu0 %v10414_v0  ;;  %v2241_v59 = vadd.f32 %v2240_v57, %v10106_v37  ;;  %v2312_v57 = vadd.f32 %v2311_v21, %v6743_v48  ;;  %v10422_v3 = vld [vmem:[#allocation79_spill] sm:$0xff] }
 0x2f0   :  { %3064 = vmatpush1.msra.mxu1 %v7856_v20  ;;  %3135 = vmatpush1.msra.mxu0 %v10337_v39 }
 0x2f1   :  { %3065 = vmatprep.subr.mxu1 %v10338_v58  ;;  %3136 = vmatprep.subr.mxu0 %v10339_v60  ;;  %v2455_v32 = vmul.f32 %v2241_v59, %v2239_v12  ;;  %v10416_v12 = vld [vmem:[#allocation48_spill] sm:$0xff] }
 0x2f2   :  { %3066 = vmatpush1.msra.mxu1 %v10340_v63  ;;  %3137 = vmatpush1.msra.mxu0 %v10341_v55 }
 0x2f3   :  { %3067 = vmatprep.subr.mxu1 %v10342_v38  ;;  %3138 = vmatprep.subr.mxu0 %v7899_v5  ;;  %v2456_v29 = vmul.f32 %v2455_v32, %v2310_v16  ;;  %v8373_v16 = vsel %vm556_vm12, 1.0, %v536_v56  ;;  %v10421_v32 = vld [vmem:[#allocation78_spill] sm:$0xff]  ;;  %v8408_v56 = vld [vmem:[%s9320_s3 + $0x258] sm:$0xff] }
 0x2f4   :  { %3068 = vmatpush1.msra.mxu1 %v7906_v6  ;;  %3139 = vmatpush1.msra.mxu0 %v7912_v8  ;;  %10423 = vst [vmem:[#allocation27_spill] sm:$0xff] %v8408_v56 }
 0x2f5   :  { %3069 = vmatprep.subr.mxu1 %v7920_v15  ;;  %3140 = vmatprep.subr.mxu0 %v10415_v53  ;;  %v8367_v59 = vmul.f32 %v2456_v29, %v2312_v57  ;;  %v8415_v57 = vld [vmem:[%s9320_s3 + $0x250] sm:$0xff]  ;;  %v8421_v29 = vld [vmem:[%s9320_s3 + $0x260] sm:$0xff] }
 0x2f6   :  { %3070 = vmatpush1.msra.mxu1 %v10416_v12  ;;  %3103 = vmatprep.mubr.f32.mxu1 %v9830_v40  ;;  %10424 = vst [vmem:[#allocation65_spill] sm:$0xff] %v8415_v57  ;;  %10425 = vst [vmem:[#allocation70_spill] sm:$0xff] %v8421_v29 }
 0x2f7   :  { %3141 = vmatpush1.msra.mxu0 %v10417_v4  ;;  %3174 = vmatprep.mubr.f32.mxu0 %v9830_v40 }
 0x2f8   :  { %4224 = vmatmul.mubr.msk.f32.vlgmr.msra.gmra.mxu1 %vm8375_vm13, %v8373_v16  ;;  %4226 = vmatmul.mubr.msk.f32.vlgmr.msra.gmra.mxu0 %vm8375_vm13, %v8373_v16 }
 0x2f9   :  { %3181 = vmatprep.subr.mxu1 %v10420_v42  ;;  %4864 = vmatprep.subr.mxu0 %v9830_v40 }
 0x2fa   :  { %3182 = vmatpush1.msra.mxu1 %v10348_v18  ;;  %4865 = vmatpush3.msra.mxu0 %v10421_v32 }
 0x2fb   :  { %3183 = vmatprep.subr.mxu1 %v10422_v3  ;;  %4866 = vmatprep.subr.mxu0 %v9830_v40 }
 0x2fc   :  { %3184 = vmatpush1.msra.mxu1 %v10351_v13  ;;  %4867 = vmatpush3.msra.mxu0 %v10352_v2 }
 0x2fd   :  { %3185 = vmatprep.subr.mxu1 %v10353_v24  ;;  %4868 = vmatprep.subr.mxu0 %v9830_v40 }
 0x2fe   :  { %3186 = vmatpush1.msra.mxu1 %v10354_v7  ;;  %4869 = vmatpush3.msra.mxu0 %v10355_v54 }
 0x2ff   :  { %3187 = vmatprep.subr.mxu1 %v10356_v62  ;;  %4870 = vmatprep.subr.mxu0 %v9830_v40 }
 0x300   :  { %3188 = vmatpush1.msra.mxu1 %v10357_v9  ;;  %4871 = vmatpush3.msra.mxu0 %v10358_v27  ;;  %v8551_v9 = vld [vmem:[%s9320_s3 + $0xc8] sm:$0xff] }
 0x301   :  { %3189 = vmatprep.subr.mxu1 %v8036_v10  ;;  %4872 = vmatprep.subr.mxu0 %v9830_v40  ;;  %v8530_v10 = vld [vmem:[%s9320_s3 + $0x100] sm:$0xff]  ;;  %10443 = vst [vmem:[#allocation46_spill] sm:$0xff] %v8551_v9 }
 0x302   :  { %3190 = vmatpush1.msra.mxu1 %v8043_v46  ;;  %4873 = vmatpush3.msra.mxu0 %v8049_v26  ;;  %10442 = vst [vmem:[#allocation41_spill] sm:$0xff] %v8530_v10 }
 0x303   :  { %3191 = vmatprep.subr.mxu1 %v8408_v56  ;;  %4874 = vmatprep.subr.mxu0 %v9830_v40  ;;  %v8427_v56 = vld [vmem:[%s9320_s3 + $0x220] sm:$0xff] }
 0x304   :  { %3192 = vmatpush1.msra.mxu1 %v8415_v57  ;;  %4875 = vmatpush3.msra.mxu0 %v8421_v29  ;;  %10426 = vst [vmem:[#allocation72_spill] sm:$0xff] %v8427_v56  ;;  %v8434_v57 = vld [vmem:[%s9320_s3 + $0x218] sm:$0xff]  ;;  %v8440_v29 = vld [vmem:[%s9320_s3 + $0x228] sm:$0xff] }
 0x305   :  { %3193 = vmatprep.subr.mxu1 %v8427_v56  ;;  %4876 = vmatprep.subr.mxu0 %v9830_v40  ;;  %10427 = vst [vmem:[#allocation44_spill] sm:$0xff] %v8434_v57  ;;  %10428 = vst [vmem:[#allocation45_spill] sm:$0xff] %v8440_v29  ;;  %v8446_v56 = vld [vmem:[%s9320_s3 + $0x1e8] sm:$0xff] }
 0x306   :  { %3194 = vmatpush1.msra.mxu1 %v8434_v57  ;;  %4877 = vmatpush3.msra.mxu0 %v8440_v29  ;;  %10429 = vst [vmem:[#allocation10_spill] sm:$0xff] %v8446_v56  ;;  %v8453_v57 = vld [vmem:[%s9320_s3 + $0x1e0] sm:$0xff]  ;;  %v8459_v29 = vld [vmem:[%s9320_s3 + $0x1f0] sm:$0xff] }
 0x307   :  { %3195 = vmatprep.subr.mxu1 %v8446_v56  ;;  %4878 = vmatprep.subr.mxu0 %v9830_v40  ;;  %10430 = vst [vmem:[#allocation80_spill] sm:$0xff] %v8453_v57  ;;  %10431 = vst [vmem:[#allocation81_spill] sm:$0xff] %v8459_v29  ;;  %v8465_v56 = vld [vmem:[%s9320_s3 + $0x1b0] sm:$0xff] }
 0x308   :  { %3196 = vmatpush1.msra.mxu1 %v8453_v57  ;;  %4879 = vmatpush3.msra.mxu0 %v8459_v29  ;;  %10432 = vst [vmem:[#allocation82_spill] sm:$0xff] %v8465_v56  ;;  %v8472_v57 = vld [vmem:[%s9320_s3 + $0x1a8] sm:$0xff]  ;;  %v8478_v29 = vld [vmem:[%s9320_s3 + $0x1b8] sm:$0xff] }
 0x309   :  { %3197 = vmatprep.subr.mxu1 %v8465_v56  ;;  %4880 = vmatprep.subr.mxu0 %v9830_v40  ;;  %10433 = vst [vmem:[#allocation83_spill] sm:$0xff] %v8472_v57  ;;  %10434 = vst [vmem:[#allocation84_spill] sm:$0xff] %v8478_v29  ;;  %v8484_v56 = vld [vmem:[%s9320_s3 + $0x178] sm:$0xff] }
 0x30a   :  { %3198 = vmatpush1.msra.mxu1 %v8472_v57  ;;  %4881 = vmatpush3.msra.mxu0 %v8478_v29  ;;  %10435 = vst [vmem:[#allocation85_spill] sm:$0xff] %v8484_v56  ;;  %v8491_v57 = vld [vmem:[%s9320_s3 + $0x170] sm:$0xff]  ;;  %v8497_v29 = vld [vmem:[%s9320_s3 + $0x180] sm:$0xff] }
 0x30b   :  { %3199 = vmatprep.subr.mxu1 %v8484_v56  ;;  %4882 = vmatprep.subr.mxu0 %v9830_v40  ;;  %10436 = vst [vmem:[#allocation67_spill] sm:$0xff] %v8491_v57  ;;  %10437 = vst [vmem:[#allocation68_spill] sm:$0xff] %v8497_v29  ;;  %v8503_v56 = vld [vmem:[%s9320_s3 + $0x140] sm:$0xff] }
 0x30c   :  { %3200 = vmatpush1.msra.mxu1 %v8491_v57  ;;  %4883 = vmatpush3.msra.mxu0 %v8497_v29  ;;  %10438 = vst [vmem:[#allocation71_spill] sm:$0xff] %v8503_v56  ;;  %v8510_v57 = vld [vmem:[%s9320_s3 + $0x138] sm:$0xff]  ;;  %v8516_v29 = vld [vmem:[%s9320_s3 + $0x148] sm:$0xff] }
 0x30d   :  { %3201 = vmatprep.subr.mxu1 %v8503_v56  ;;  %4884 = vmatprep.subr.mxu0 %v9830_v40  ;;  %10439 = vst [vmem:[#allocation73_spill] sm:$0xff] %v8510_v57  ;;  %10440 = vst [vmem:[#allocation40_spill] sm:$0xff] %v8516_v29  ;;  %v8522_v56 = vld [vmem:[%s9320_s3 + $0x108] sm:$0xff] }
 0x30e   :  { %3202 = vmatpush1.msra.mxu1 %v8510_v57  ;;  %4885 = vmatpush3.msra.mxu0 %v8516_v29  ;;  %v2380_v26 = vpop.f32.mrf.mxu1  ;;  %v2451_v46 = vpop.f32.mrf.mxu0  ;;  %10441 = vst [vmem:[#allocation31_spill] sm:$0xff] %v8522_v56  ;;  %v8536_v29 = vld [vmem:[%s9320_s3 + $0x110] sm:$0xff] }
 0x30f   :  { %3203 = vmatprep.subr.mxu1 %v8522_v56  ;;  %4886 = vmatprep.subr.mxu0 %v9830_v40  ;;  %v2381_v57 = vadd.f32 %v2380_v26, %v10214_v1  ;;  %v8542_v26 = vld [vmem:[%s9320_s3 + $0xd0] sm:$0xff] }
 0x310   :  { %3204 = vmatpush1.msra.mxu1 %v8530_v10  ;;  %4887 = vmatpush3.msra.mxu0 %v8536_v29  ;;  %v2382_v27 = vpop.f32.mrf.mxu1  ;;  %v4793_v56 = vpop.f32.mrf.mxu0 }
 0x311   :  { %3205 = vmatprep.subr.mxu1 %v8542_v26  ;;  %4888 = vmatprep.subr.mxu0 %v9830_v40  ;;  %v2458_v10 = vmul.f32 %v8367_v59, %v2381_v57  ;;  %v2383_v1 = vadd.f32 %v2382_v27, %v6976_v33  ;;  %v8557_v56 = vld [vmem:[%s9320_s3 + $0xd8] sm:$0xff]  ;;  %v2452_v27 = vadd.f32 %v2451_v46, %v6986_v43  ;;  %v8598_v46 = vld [vmem:[%s9320_s3 + $0x68] sm:$0xff] }
 0x312   :  { %3206 = vmatpush1.msra.mxu1 %v8551_v9  ;;  %10444 = vst [vmem:[#allocation57_spill] sm:$0xff] %v8557_v56  ;;  %4889 = vmatpush3.msra.mxu0 %v8557_v56  ;;  %v8563_v59 = vld [vmem:[%s9320_s3 + $0x98] sm:$0xff]  ;;  %v8571_v9 = vld [vmem:[%s9320_s3 + $0x90] sm:$0xff]  ;;  %v8577_v56 = vld [vmem:[%s9320_s3 + $0xa0] sm:$0xff] }
 0x313   :  { %10445 = vst [vmem:[#allocation5_spill] sm:$0xff] %v8563_v59  ;;  %3207 = vmatprep.subr.mxu1 %v8563_v59  ;;  %4890 = vmatprep.subr.mxu0 %v9830_v40  ;;  %v2459_v57 = vmul.f32 %v2458_v10, %v2383_v1  ;;  %v8583_v59 = vld [vmem:[%s9320_s3 + $0x60] sm:$0xff]  ;;  %v8592_v10 = vld [vmem:[%s9320_s3 + $0x58] sm:$0xff] }
 0x314   :  { %3208 = vmatpush1.msra.mxu1 %v8571_v9  ;;  %4891 = vmatpush3.msra.mxu0 %v8577_v56  ;;  %10446 = vst [vmem:[#allocation74_spill] sm:$0xff] %v8583_v59 }
 0x315   :  { %3209 = vmatprep.subr.mxu1 %v8583_v59  ;;  %4892 = vmatprep.subr.mxu0 %v9830_v40  ;;  %v8587_v1 = vmul.f32 %v2459_v57, %v2452_v27  ;;  %v8604_v59 = vld [vmem:[%s9320_s3 + $0x28] sm:$0xff]  ;;  %v8611_v27 = vld [vmem:[%s9320_s3 + $0x20] sm:$0xff]  ;;  %v8618_v57 = vld [vmem:[%s9320_s3 + $0x30] sm:$0xff] }
 0x316   :  { %3210 = vmatpush1.msra.mxu1 %v8592_v10  ;;  %4893 = vmatpush3.msra.mxu0 %v8598_v46 }
 0x317   :  { %10447 = vst [vmem:[#allocation33_spill] sm:$0xff] %v8587_v1  ;;  %3211 = vmatprep.subr.mxu1 %v8604_v59  ;;  %4894 = vmatprep.subr.mxu0 %v9830_v40  ;;  %v10448_v1 = vld [vmem:[#allocation77_spill] sm:$0xff] }
 0x318   :  { %3212 = vmatpush1.msra.mxu1 %v8611_v27  ;;  %3245 = vmatprep.mubr.f32.mxu1 %v9830_v40  ;;  %v108_v21 = vrot.slane %v8290_v49, %v10448_v1  ;;  %v10453_v49 = vld [vmem:[#allocation29_spill] sm:$0xff] }
 0x319   :  { %4895 = vmatpush3.msra.mxu0 %v8618_v57  ;;  %4896 = vmatprep.mubr.msk.f32.mxu0 %vm5189_vm4, %v9830_v40  ;;  %v10466_v1 = vld [vmem:[#allocation53_spill] sm:$0xff] }
 0x31a   :  { %4228 = vmatmul.mubr.msk.f32.vlgmr.msra.gmra.mxu1 %vm8375_vm13, %v8373_v16  ;;  %4897 = vmatmul.mubr.msk.f32.vlgmr.msra.gmra.mxu0 %vm8375_vm13, %v8373_v16  ;;  %v10465_v16 = vld [vmem:[#allocation51_spill] sm:$0xff] }
 0x31b   :  { %3328 = vmatprep.subr.mxu1 %v7544_v36  ;;  %3399 = vmatprep.subr.mxu0 %v7550_v28  ;;  %v10449_v36 = vld [vmem:[#allocation28_spill] sm:$0xff] }
 0x31c   :  { %3329 = vmatpush1.msra.mxu1 %v7556_v51  ;;  %3400 = vmatpush1.msra.mxu0 %v7562_v14  ;;  %v8648_v28 = vadd.f32 %v10449_v36, %v108_v21  ;;  %v10450_v51 = vld [vmem:[#allocation19_spill] sm:$0xff]  ;;  %v10451_v14 = vld [vmem:[#allocation20_spill] sm:$0xff]  ;;  %v10467_v36 = vld [vmem:[#allocation54_spill] sm:$0xff] }
 0x31d   :  { %3330 = vmatprep.subr.mxu1 %v7568_v41  ;;  %3401 = vmatprep.subr.mxu0 %v10368_v23  ;;  %v10452_v41 = vld [vmem:[#allocation23_spill] sm:$0xff]  ;;  %v10454_v23 = vld [vmem:[#allocation30_spill] sm:$0xff] }
 0x31e   :  { %3331 = vmatpush1.msra.mxu1 %v10369_v45  ;;  %3402 = vmatpush1.msra.mxu0 %v10370_v19  ;;  %v10455_v45 = vld [vmem:[#allocation32_spill] sm:$0xff]  ;;  %v10456_v19 = vld [vmem:[#allocation34_spill] sm:$0xff]  ;;  %vm547_vm14 = vcmp.le.f32.partialorder %v8648_v28, -0.5  ;;  %vm557_vm15 = vcmp.ge.f32.partialorder %v8648_v28, 0.5 }
 0x31f   :  { %3332 = vmatprep.subr.mxu1 %v10372_v34  ;;  %3403 = vmatprep.subr.mxu0 %v10373_v47  ;;  %v10457_v34 = vld [vmem:[#allocation35_spill] sm:$0xff]  ;;  %v10458_v47 = vld [vmem:[#allocation36_spill] sm:$0xff]  ;;  %vm8714_vm0 = vmneg %vm547_vm14 }
 0x320   :  { %3333 = vmatpush1.msra.mxu1 %v10374_v50  ;;  %3404 = vmatpush1.msra.mxu0 %v10375_v11  ;;  %v487_v50 = vmul.f32 %v8648_v28, %v8648_v28  ;;  %v10459_v11 = vld [vmem:[#allocation37_spill] sm:$0xff] }
 0x321   :  { %3334 = vmatprep.subr.mxu1 %v10376_v22  ;;  %3405 = vmatprep.subr.mxu0 %v10377_v35  ;;  %v10460_v22 = vld [vmem:[#allocation38_spill] sm:$0xff]  ;;  %v10461_v35 = vld [vmem:[#allocation39_spill] sm:$0xff] }
 0x322   :  { %3335 = vmatpush1.msra.mxu1 %v10378_v31  ;;  %3406 = vmatpush1.msra.mxu0 %v10379_v61  ;;  %v10462_v31 = vld [vmem:[#allocation42_spill] sm:$0xff]  ;;  %v10463_v61 = vld [vmem:[#allocation43_spill] sm:$0xff]  ;;  %v497_v21 = vmul.f32 %v487_v50, %v8648_v28  ;;  %v10475_v50 = vld [vmem:[#allocation69_spill] sm:$0xff] }
 0x323   :  { %3336 = vmatprep.subr.mxu1 %v10381_v44  ;;  %3407 = vmatprep.subr.mxu0 %v10450_v51  ;;  %v10464_v44 = vld [vmem:[#allocation50_spill] sm:$0xff] }
 0x324   :  { %3337 = vmatpush1.msra.mxu1 %v10451_v14  ;;  %3408 = vmatpush1.msra.mxu0 %v10452_v41  ;;  %v10468_v51 = vld [vmem:[#allocation58_spill] sm:$0xff]  ;;  %v10469_v14 = vld [vmem:[#allocation59_spill] sm:$0xff]  ;;  %v10470_v41 = vld [vmem:[#allocation60_spill] sm:$0xff] }
 0x325   :  { %3338 = vmatprep.subr.mxu1 %v10453_v49  ;;  %3409 = vmatprep.subr.mxu0 %v10454_v23  ;;  %v10471_v49 = vld [vmem:[#allocation61_spill] sm:$0xff]  ;;  %v10472_v23 = vld [vmem:[#allocation62_spill] sm:$0xff] }
 0x326   :  { %3339 = vmatpush1.msra.mxu1 %v10455_v45  ;;  %3410 = vmatpush1.msra.mxu0 %v10456_v19  ;;  %v10473_v45 = vld [vmem:[#allocation63_spill] sm:$0xff]  ;;  %v10474_v19 = vld [vmem:[#allocation66_spill] sm:$0xff] }
 0x327   :  { %3340 = vmatprep.subr.mxu1 %v10457_v34  ;;  %3411 = vmatprep.subr.mxu0 %v10458_v47  ;;  %v507_v34 = vmul.f32 -2.0, %v497_v21  ;;  %v517_v47 = vmul.f32 1.5, %v8648_v28  ;;  %v10502_v28 = vld [vmem:[#allocation71_spill] sm:$0xff] }
 0x328   :  { %3341 = vmatpush1.msra.mxu1 %v10459_v11  ;;  %3412 = vmatpush1.msra.mxu0 %v10460_v22  ;;  %v10476_v11 = vld [vmem:[#allocation17_spill] sm:$0xff] }
 0x329   :  { %3342 = vmatprep.subr.mxu1 %v10461_v35  ;;  %3413 = vmatprep.subr.mxu0 %v10462_v31  ;;  %v10477_v31 = vld [vmem:[#allocation18_spill] sm:$0xff]  ;;  %v527_v21 = vadd.f32 %v517_v47, %v507_v34  ;;  %v10506_v34 = vld [vmem:[#allocation75_spill] sm:$0xff] }
 0x32a   :  { %3343 = vmatpush1.msra.mxu1 %v10463_v61  ;;  %3414 = vmatpush1.msra.mxu0 %v10464_v44  ;;  %v10478_v61 = vld [vmem:[#allocation64_spill] sm:$0xff]  ;;  %v10479_v44 = vld [vmem:[#allocation22_spill] sm:$0xff] }
 0x32b   :  { %3344 = vmatprep.subr.mxu1 %v10465_v16  ;;  %3415 = vmatprep.subr.mxu0 %v10466_v1 }
 0x32c   :  { %3345 = vmatpush1.msra.mxu1 %v10467_v36  ;;  %3416 = vmatpush1.msra.mxu0 %v10468_v51 }
 0x32d   :  { %3346 = vmatprep.subr.mxu1 %v10469_v14  ;;  %3417 = vmatprep.subr.mxu0 %v10470_v41  ;;  %v10503_v41 = vld [vmem:[#allocation73_spill] sm:$0xff] }
 0x32e   :  { %3347 = vmatpush1.msra.mxu1 %v10471_v49  ;;  %3418 = vmatpush1.msra.mxu0 %v10472_v23  ;;  %v10504_v49 = vld [vmem:[#allocation40_spill] sm:$0xff] }
 0x32f   :  { %3348 = vmatprep.subr.mxu1 %v10473_v45  ;;  %3419 = vmatprep.subr.mxu0 %v10474_v19  ;;  %v10505_v19 = vld [vmem:[#allocation31_spill] sm:$0xff] }
 0x330   :  { %3349 = vmatpush1.msra.mxu1 %v10475_v50  ;;  %3420 = vmatpush1.msra.mxu0 %v10476_v11  ;;  %v2527_v22 = vpop.f32.mrf.mxu1  ;;  %v2598_v35 = vpop.f32.mrf.mxu0  ;;  %v10507_v50 = vld [vmem:[#allocation41_spill] sm:$0xff] }
 0x331   :  { %3350 = vmatprep.subr.mxu1 %v10477_v31  ;;  %3421 = vmatprep.subr.mxu0 %v10410_v17  ;;  %v2528_v1 = vadd.f32 %v2527_v22, %v6681_v25  ;;  %v2599_v17 = vadd.f32 %v2598_v35, %v6714_v30 }
 0x332   :  { %3351 = vmatpush1.msra.mxu1 %v10478_v61  ;;  %3422 = vmatpush1.msra.mxu0 %v10479_v44  ;;  %v2529_v16 = vpop.f32.mrf.mxu1  ;;  %v2600_v51 = vpop.f32.mrf.mxu0  ;;  %v10508_v61 = vld [vmem:[#allocation46_spill] sm:$0xff]  ;;  %v10509_v44 = vld [vmem:[#allocation57_spill] sm:$0xff] }
 0x333   :  { %3352 = vmatprep.subr.mxu1 %v10413_v52  ;;  %3423 = vmatprep.subr.mxu0 %v10414_v0  ;;  %v2530_v36 = vadd.f32 %v2529_v16, %v10106_v37  ;;  %v537_v52 = vadd.f32 0.5, %v527_v21  ;;  %v10495_v0 = vld [vmem:[#allocation81_spill] sm:$0xff] }
 0x334   :  { %3353 = vmatpush1.msra.mxu1 %v7856_v20  ;;  %3424 = vmatpush1.msra.mxu0 %v10337_v39  ;;  %v2601_v20 = vadd.f32 %v2600_v51, %v6743_v48  ;;  %v10510_v16 = vld [vmem:[#allocation5_spill] sm:$0xff]  ;;  %v10513_v51 = vld [vmem:[#allocation91_spill] sm:$0xff] }
 0x335   :  { %3354 = vmatprep.subr.mxu1 %v10338_v58  ;;  %3425 = vmatprep.subr.mxu0 %v10339_v60  ;;  %v2744_v14 = vmul.f32 %v2530_v36, %v2528_v1  ;;  %v10484_v58 = vld [vmem:[#allocation88_spill] sm:$0xff]  ;;  %v10485_v60 = vld [vmem:[#allocation89_spill] sm:$0xff]  ;;  %v3663_v36 = vld [vmem:[%s9322_s5 + $0x170] sm:$0xff] }
 0x336   :  { %3355 = vmatpush1.msra.mxu1 %v10340_v63  ;;  %3426 = vmatpush1.msra.mxu0 %v10341_v55  ;;  %v10486_v55 = vld [vmem:[#allocation90_spill] sm:$0xff] }
 0x337   :  { %3356 = vmatprep.subr.mxu1 %v10342_v38  ;;  %3427 = vmatprep.subr.mxu0 %v7899_v5  ;;  %v2745_v39 = vmul.f32 %v2744_v14, %v2599_v17  ;;  %v10482_v5 = vld [vmem:[#allocation86_spill] sm:$0xff]  ;;  %v10487_v38 = vld [vmem:[#allocation27_spill] sm:$0xff]  ;;  %v3646_v17 = vld [vmem:[%s9322_s5 + $0xe8] sm:$0xff] }
 0x338   :  { %3357 = vmatpush1.msra.mxu1 %v7906_v6  ;;  %3428 = vmatpush1.msra.mxu0 %v7912_v8  ;;  %v8712_v6 = vsel %vm557_vm15, 1.0, %v537_v52  ;;  %v3678_v14 = vld [vmem:[%s9322_s5 + $0x1e8] sm:$0xff]  ;;  %v3661_v8 = vld [vmem:[%s9322_s5 + $0x160] sm:$0xff] }
 0x339   :  { %3358 = vmatprep.subr.mxu1 %v7920_v15  ;;  %3429 = vmatprep.subr.mxu0 %v10415_v53  ;;  %v8706_v63 = vmul.f32 %v2745_v39, %v2601_v20  ;;  %v10483_v15 = vld [vmem:[#allocation87_spill] sm:$0xff]  ;;  %v10496_v53 = vld [vmem:[#allocation82_spill] sm:$0xff]  ;;  %v3630_v52 = vld [vmem:[%s9322_s5 + $0x68] sm:$0xff] }
 0x33a   :  { %3359 = vmatpush1.msra.mxu1 %v10416_v12  ;;  %3392 = vmatprep.mubr.f32.mxu1 %v9830_v40  ;;  %v10497_v12 = vld [vmem:[#allocation83_spill] sm:$0xff]  ;;  %v3662_v20 = vld [vmem:[%s9322_s5 + $0x168] sm:$0xff]  ;;  %v3645_v39 = vld [vmem:[%s9322_s5 + $0xe0] sm:$0xff] }
 0x33b   :  { %3430 = vmatpush1.msra.mxu0 %v10417_v4  ;;  %3463 = vmatprep.mubr.f32.mxu0 %v9830_v40  ;;  %v10498_v4 = vld [vmem:[#allocation84_spill] sm:$0xff] }
 0x33c   :  { %4232 = vmatmul.mubr.msk.f32.vlgmr.msra.gmra.mxu1 %vm8714_vm0, %v8712_v6  ;;  %4234 = vmatmul.mubr.msk.f32.vlgmr.msra.gmra.mxu0 %vm8714_vm0, %v8712_v6 }
 0x33d   :  { %3470 = vmatprep.subr.mxu1 %v10420_v42  ;;  %4899 = vmatprep.subr.mxu0 %v9830_v40  ;;  %v10499_v42 = vld [vmem:[#allocation85_spill] sm:$0xff] }
 0x33e   :  { %3471 = vmatpush1.msra.mxu1 %v10348_v18  ;;  %4900 = vmatpush3.msra.mxu0 %v10421_v32  ;;  %v10492_v18 = vld [vmem:[#allocation45_spill] sm:$0xff]  ;;  %v10500_v32 = vld [vmem:[#allocation67_spill] sm:$0xff] }
 0x33f   :  { %3472 = vmatprep.subr.mxu1 %v10422_v3  ;;  %4901 = vmatprep.subr.mxu0 %v9830_v40  ;;  %v10501_v3 = vld [vmem:[#allocation68_spill] sm:$0xff] }
 0x340   :  { %3473 = vmatpush1.msra.mxu1 %v10351_v13  ;;  %4902 = vmatpush3.msra.mxu0 %v10352_v2  ;;  %v10493_v13 = vld [vmem:[#allocation10_spill] sm:$0xff]  ;;  %v10494_v2 = vld [vmem:[#allocation80_spill] sm:$0xff] }
 0x341   :  { %3474 = vmatprep.subr.mxu1 %v10353_v24  ;;  %4903 = vmatprep.subr.mxu0 %v9830_v40  ;;  %v10490_v24 = vld [vmem:[#allocation72_spill] sm:$0xff] }
 0x342   :  { %3475 = vmatpush1.msra.mxu1 %v10354_v7  ;;  %4904 = vmatpush3.msra.mxu0 %v10355_v54  ;;  %v10488_v7 = vld [vmem:[#allocation65_spill] sm:$0xff]  ;;  %v10491_v54 = vld [vmem:[#allocation44_spill] sm:$0xff] }
 0x343   :  { %3476 = vmatprep.subr.mxu1 %v10356_v62  ;;  %4905 = vmatprep.subr.mxu0 %v9830_v40  ;;  %v10489_v62 = vld [vmem:[#allocation70_spill] sm:$0xff] }
 0x344   :  { %3477 = vmatpush1.msra.mxu1 %v10482_v5  ;;  %4906 = vmatpush3.msra.mxu0 %v10483_v15  ;;  %v3644_v5 = vld [vmem:[%s9322_s5 + $0xd8] sm:$0xff] }
 0x345   :  { %3478 = vmatprep.subr.mxu1 %v10484_v58  ;;  %4907 = vmatprep.subr.mxu0 %v9830_v40  ;;  %v3676_v15 = vld [vmem:[%s9322_s5 + $0x1d8] sm:$0xff] }
 0x346   :  { %3479 = vmatpush1.msra.mxu1 %v10485_v60  ;;  %4908 = vmatpush3.msra.mxu0 %v10486_v55  ;;  %v3628_v58 = vld [vmem:[%s9322_s5 + $0x58] sm:$0xff]  ;;  %v3643_v55 = vld [vmem:[%s9322_s5 + $0xd0] sm:$0xff] }
 0x347   :  { %3480 = vmatprep.subr.mxu1 %v10487_v38  ;;  %4909 = vmatprep.subr.mxu0 %v9830_v40  ;;  %v3660_v60 = vld [vmem:[%s9322_s5 + $0x158] sm:$0xff]  ;;  %v3675_v38 = vld [vmem:[%s9322_s5 + $0x1d0] sm:$0xff] }
 0x348   :  { %3481 = vmatpush1.msra.mxu1 %v10488_v7  ;;  %4910 = vmatpush3.msra.mxu0 %v10489_v62  ;;  %v3627_v7 = vld [vmem:[%s9322_s5 + $0x50] sm:$0xff] }
 0x349   :  { %3482 = vmatprep.subr.mxu1 %v10490_v24  ;;  %4911 = vmatprep.subr.mxu0 %v9830_v40  ;;  %v3659_v62 = vld [vmem:[%s9322_s5 + $0x150] sm:$0xff]  ;;  %v3642_v24 = vld [vmem:[%s9322_s5 + $0xc8] sm:$0xff] }
 0x34a   :  { %3483 = vmatpush1.msra.mxu1 %v10491_v54  ;;  %4912 = vmatpush3.msra.mxu0 %v10492_v18  ;;  %v3674_v54 = vld [vmem:[%s9322_s5 + $0x1c8] sm:$0xff] }
 0x34b   :  { %3484 = vmatprep.subr.mxu1 %v10493_v13  ;;  %4913 = vmatprep.subr.mxu0 %v9830_v40  ;;  %v3626_v18 = vld [vmem:[%s9322_s5 + $0x48] sm:$0xff] }
 0x34c   :  { %3485 = vmatpush1.msra.mxu1 %v10494_v2  ;;  %4914 = vmatpush3.msra.mxu0 %v10495_v0  ;;  %v3658_v13 = vld [vmem:[%s9322_s5 + $0x148] sm:$0xff]  ;;  %v3641_v2 = vld [vmem:[%s9322_s5 + $0xc0] sm:$0xff] }
 0x34d   :  { %3486 = vmatprep.subr.mxu1 %v10496_v53  ;;  %4915 = vmatprep.subr.mxu0 %v9830_v40  ;;  %v3673_v0 = vld [vmem:[%s9322_s5 + $0x1c0] sm:$0xff] }
 0x34e   :  { %3487 = vmatpush1.msra.mxu1 %v10497_v12  ;;  %4916 = vmatpush3.msra.mxu0 %v10498_v4  ;;  %v3625_v53 = vld [vmem:[%s9322_s5 + $0x40] sm:$0xff]  ;;  %v3640_v4 = vld [vmem:[%s9322_s5 + $0xb8] sm:$0xff] }
 0x34f   :  { %3488 = vmatprep.subr.mxu1 %v10499_v42  ;;  %4917 = vmatprep.subr.mxu0 %v9830_v40  ;;  %v3657_v12 = vld [vmem:[%s9322_s5 + $0x140] sm:$0xff]  ;;  %v3672_v42 = vld [vmem:[%s9322_s5 + $0x1b8] sm:$0xff] }
 0x350   :  { %3489 = vmatpush1.msra.mxu1 %v10500_v32  ;;  %4918 = vmatpush3.msra.mxu0 %v10501_v3  ;;  %v3624_v32 = vld [vmem:[%s9322_s5 + $0x38] sm:$0xff] }
 0x351   :  { %3490 = vmatprep.subr.mxu1 %v10502_v28  ;;  %4919 = vmatprep.subr.mxu0 %v9830_v40  ;;  %v3656_v3 = vld [vmem:[%s9322_s5 + $0x138] sm:$0xff]  ;;  %v3639_v28 = vld [vmem:[%s9322_s5 + $0xb0] sm:$0xff] }
 0x352   :  { %3491 = vmatpush1.msra.mxu1 %v10503_v41  ;;  %4920 = vmatpush3.msra.mxu0 %v10504_v49  ;;  %v2669_v23 = vpop.f32.mrf.mxu1  ;;  %v2740_v45 = vpop.f32.mrf.mxu0  ;;  %v3671_v41 = vld [vmem:[%s9322_s5 + $0x1b0] sm:$0xff] }
 0x353   :  { %3492 = vmatprep.subr.mxu1 %v10505_v19  ;;  %4921 = vmatprep.subr.mxu0 %v9830_v40  ;;  %v2670_v47 = vadd.f32 %v2669_v23, %v10506_v34  ;;  %v3623_v49 = vld [vmem:[%s9322_s5 + $0x30] sm:$0xff]  ;;  %v3670_v19 = vld [vmem:[%s9322_s5 + $0x1a8] sm:$0xff] }
 0x354   :  { %3493 = vmatpush1.msra.mxu1 %v10507_v50  ;;  %4922 = vmatpush3.msra.mxu0 %v8536_v29  ;;  %v2671_v11 = vpop.f32.mrf.mxu1  ;;  %v4828_v22 = vpop.f32.mrf.mxu0  ;;  %v2741_v29 = vadd.f32 %v2740_v45, %v6986_v43  ;;  %v3655_v23 = vld [vmem:[%s9322_s5 + $0x130] sm:$0xff]  ;;  %v3638_v45 = vld [vmem:[%s9322_s5 + $0xa8] sm:$0xff] }
 0x355   :  { %3494 = vmatprep.subr.mxu1 %v8542_v26  ;;  %4923 = vmatprep.subr.mxu0 %v9830_v40  ;;  %v2747_v35 = vmul.f32 %v8706_v63, %v2670_v47  ;;  %v2672_v31 = vadd.f32 %v2671_v11, %v6976_v33  ;;  %v10511_v26 = vld [vmem:[#allocation74_spill] sm:$0xff]  ;;  %v3677_v63 = vld [vmem:[%s9322_s5 + $0x1e0] sm:$0xff]  ;;  %v3622_v47 = vld [vmem:[%s9322_s5 + $0x28] sm:$0xff] }
 0x356   :  { %3495 = vmatpush1.msra.mxu1 %v10508_v61  ;;  %4924 = vmatpush3.msra.mxu0 %v10509_v44  ;;  %v3654_v50 = vld [vmem:[%s9322_s5 + $0x128] sm:$0xff]  ;;  %v3637_v11 = vld [vmem:[%s9322_s5 + $0xa0] sm:$0xff]  ;;  %v3636_v61 = vld [vmem:[%s9322_s5 + $0x98] sm:$0xff] }
 0x357   :  { %3496 = vmatprep.subr.mxu1 %v10510_v16  ;;  %4925 = vmatprep.subr.mxu0 %v9830_v40  ;;  %v2748_v1 = vmul.f32 %v2747_v35, %v2672_v31  ;;  %v3669_v22 = vld [vmem:[%s9322_s5 + $0x1a0] sm:$0xff]  ;;  %v3668_v44 = vld [vmem:[%s9322_s5 + $0x198] sm:$0xff] }
 0x358   :  { %3497 = vmatpush1.msra.mxu1 %v8571_v9  ;;  %4926 = vmatpush3.msra.mxu0 %v8577_v56  ;;  %v3648_v9 = vld [vmem:[%s9322_s5 + $0xf8] sm:$0xff]  ;;  %v3621_v35 = vld [vmem:[%s9322_s5 + $0x20] sm:$0xff] }
 0x359   :  { %3498 = vmatprep.subr.mxu1 %v10511_v26  ;;  %4927 = vmatprep.subr.mxu0 %v9830_v40  ;;  %v8786_v21 = vmul.f32 %v2748_v1, %v2741_v29  ;;  %v3680_v56 = vld [vmem:[%s9322_s5 + $0x1f8] sm:$0xff]  ;;  %v3653_v31 = vld [vmem:[%s9322_s5 + $0x120] sm:$0xff]  ;;  %v3635_v1 = vld [vmem:[%s9322_s5 + $0x90] sm:$0xff] }
 0x35a   :  { %3499 = vmatpush1.msra.mxu1 %v8592_v10  ;;  %4928 = vmatpush3.msra.mxu0 %v8598_v46  ;;  %v3664_v10 = vld [vmem:[%s9322_s5 + $0x178] sm:$0xff]  ;;  %v3679_v46 = vld [vmem:[%s9322_s5 + $0x1f0] sm:$0xff] }
 0x35b   :  { %3500 = vmatprep.subr.mxu1 %v8604_v59  ;;  %4929 = vmatprep.subr.mxu0 %v9830_v40  ;;  %v3632_v59 = vld [vmem:[%s9322_s5 + $0x78] sm:$0xff]  ;;  %v3667_v26 = vld [vmem:[%s9322_s5 + $0x190] sm:$0xff] }
 0x35c   :  { %3501 = vmatpush1.msra.mxu1 %v8611_v27  ;;  %3534 = vmatprep.mubr.f32.mxu1 %v9830_v40  ;;  %v10512_v27 = vld [vmem:[#allocation55_spill] sm:$0xff] }
 0x35d   :  { %4930 = vmatpush3.msra.mxu0 %v8618_v57  ;;  %4931 = vmatprep.mubr.msk.f32.mxu0 %vm5189_vm4, %v9830_v40  ;;  %v3647_v40 = vld [vmem:[%s9322_s5 + $0xf0] sm:$0xff]  ;;  %v3620_v16 = vld [vmem:[%s9322_s5 + $0x18] sm:$0xff]  ;;  %vm4127_vm4 = vcmask 64512  }
 0x35e   :  { %4236 = vmatmul.mubr.msk.f32.vlgmr.msra.gmra.mxu1 %vm8714_vm0, %v8712_v6  ;;  %4932 = vmatmul.mubr.msk.f32.vlgmr.msra.gmra.mxu0 %vm8714_vm0, %v8712_v6  ;;  %v3631_v57 = vld [vmem:[%s9322_s5 + $0x70] sm:$0xff]  ;;  %v3629_v6 = vld [vmem:[%s9322_s5 + $0x60] sm:$0xff]  ;;  %v3652_v29 = vld [vmem:[%s9322_s5 + $0x118] sm:$0xff] }
 0x35f   :  { %4409 = vmatprep.subr.mxu1 %v3648_v9  ;;  %4444 = vmatprep.subr.mxu0 %v3680_v56  ;;  %v3619_v9 = vld [vmem:[%s9322_s5 + $0x10] sm:$0xff] }
 0x360   :  { %4410 = vmatpush3.msra.mxu1 %v3632_v59  ;;  %3841 = vmatprep.mubr.f32.mxu1 %v10512_v27  ;;  %v3651_v56 = vld [vmem:[%s9322_s5 + $0x110] sm:$0xff]  ;;  %v3634_v59 = vld [vmem:[%s9322_s5 + $0x88] sm:$0xff]  ;;  %v3633_v27 = vld [vmem:[%s9322_s5 + $0x80] sm:$0xff] }
 0x361   :  { %4445 = vmatpush3.msra.mxu0 %v3664_v10  ;;  %3911 = vmatprep.mubr.f32.mxu0 %v10513_v51  ;;  %v3666_v10 = vld [vmem:[%s9322_s5 + $0x188] sm:$0xff]  ;;  %v3649_v51 = vld [vmem:[%s9322_s5 + $0x100] sm:$0xff] }
 0x362   :  { %4411 = vmatprep.subr.mxu1 %v3647_v40  ;;  %4446 = vmatprep.subr.mxu0 %v3679_v46  ;;  %v3618_v40 = vld [vmem:[%s9322_s5 + $0x8] sm:$0xff] }
 0x363   :  { %4412 = vmatpush3.msra.mxu1 %v3631_v57  ;;  %4447 = vmatpush3.msra.mxu0 %v3663_v36  ;;  %v3650_v46 = vld [vmem:[%s9322_s5 + $0x108] sm:$0xff]  ;;  %v3665_v57 = vld [vmem:[%s9322_s5 + $0x180] sm:$0xff] }
 0x364   :  { %4413 = vmatprep.subr.mxu1 %v3646_v17  ;;  %4448 = vmatprep.subr.mxu0 %v3678_v14  ;;  %v3617_v36 = vld [vmem:[%s9322_s5] sm:$0xff]  ;;  %v3712_v17 = vld [vmem:[%s9322_s5 + $0x2f8] sm:$0xff] }
 0x365   :  { %4414 = vmatpush3.msra.mxu1 %v3630_v52  ;;  %4449 = vmatpush3.msra.mxu0 %v3662_v20  ;;  %v3696_v14 = vld [vmem:[%s9322_s5 + $0x278] sm:$0xff]  ;;  %v10514_v20 = vld [vmem:[#allocation76_spill] sm:$0xff] }
 0x366   :  { %4415 = vmatprep.subr.mxu1 %v3645_v39  ;;  %4450 = vmatprep.subr.mxu0 %v3677_v63  ;;  %v3744_v52 = vld [vmem:[%s9322_s5 + $0x3f8] sm:$0xff]  ;;  %v10515_v39 = vld [vmem:[#allocation56_spill] sm:$0xff]  ;;  %v3711_v63 = vld [vmem:[%s9322_s5 + $0x2f0] sm:$0xff] }
 0x367   :  { %4416 = vmatpush3.msra.mxu1 %v3629_v6  ;;  %4451 = vmatpush3.msra.mxu0 %v3661_v8  ;;  %v3728_v6 = vld [vmem:[%s9322_s5 + $0x378] sm:$0xff]  ;;  %v10516_v8 = vld [vmem:[#allocation33_spill] sm:$0xff] }
 0x368   :  { %4417 = vmatprep.subr.mxu1 %v3644_v5  ;;  %4452 = vmatprep.subr.mxu0 %v3676_v15  ;;  %v3695_v5 = vld [vmem:[%s9322_s5 + $0x270] sm:$0xff] }
 0x369   :  { %4418 = vmatpush3.msra.mxu1 %v3628_v58  ;;  %4453 = vmatpush3.msra.mxu0 %v3660_v60  ;;  %v3743_v15 = vld [vmem:[%s9322_s5 + $0x3f0] sm:$0xff]  ;;  %v3710_v58 = vld [vmem:[%s9322_s5 + $0x2e8] sm:$0xff] }
 0x36a   :  { %4419 = vmatprep.subr.mxu1 %v3643_v55  ;;  %4454 = vmatprep.subr.mxu0 %v3675_v38  ;;  %v3727_v60 = vld [vmem:[%s9322_s5 + $0x370] sm:$0xff]  ;;  %v3694_v55 = vld [vmem:[%s9322_s5 + $0x268] sm:$0xff] }
 0x36b   :  { %4420 = vmatpush3.msra.mxu1 %v3627_v7  ;;  %4455 = vmatpush3.msra.mxu0 %v3659_v62  ;;  %v3742_v38 = vld [vmem:[%s9322_s5 + $0x3e8] sm:$0xff]  ;;  %v3709_v62 = vld [vmem:[%s9322_s5 + $0x2e0] sm:$0xff] }
 0x36c   :  { %4421 = vmatprep.subr.mxu1 %v3642_v24  ;;  %4456 = vmatprep.subr.mxu0 %v3674_v54  ;;  %v3726_v24 = vld [vmem:[%s9322_s5 + $0x368] sm:$0xff]  ;;  %v3693_v54 = vld [vmem:[%s9322_s5 + $0x260] sm:$0xff] }
 0x36d   :  { %4422 = vmatpush3.msra.mxu1 %v3626_v18  ;;  %4457 = vmatpush3.msra.mxu0 %v3658_v13  ;;  %v3741_v18 = vld [vmem:[%s9322_s5 + $0x3e0] sm:$0xff]  ;;  %v3708_v13 = vld [vmem:[%s9322_s5 + $0x2d8] sm:$0xff] }
 0x36e   :  { %4423 = vmatprep.subr.mxu1 %v3641_v2  ;;  %4458 = vmatprep.subr.mxu0 %v3673_v0  ;;  %v3725_v2 = vld [vmem:[%s9322_s5 + $0x360] sm:$0xff]  ;;  %v3692_v0 = vld [vmem:[%s9322_s5 + $0x258] sm:$0xff] }
 0x36f   :  { %4424 = vmatpush3.msra.mxu1 %v3625_v53  ;;  %4459 = vmatpush3.msra.mxu0 %v3657_v12  ;;  %v3740_v53 = vld [vmem:[%s9322_s5 + $0x3d8] sm:$0xff] }
 0x370   :  { %4425 = vmatprep.subr.mxu1 %v3640_v4  ;;  %4460 = vmatprep.subr.mxu0 %v3672_v42  ;;  %v3707_v4 = vld [vmem:[%s9322_s5 + $0x2d0] sm:$0xff]  ;;  %v3724_v42 = vld [vmem:[%s9322_s5 + $0x358] sm:$0xff] }
 0x371   :  { %4426 = vmatpush3.msra.mxu1 %v3624_v32  ;;  %4461 = vmatpush3.msra.mxu0 %v3656_v3  ;;  %v3691_v32 = vld [vmem:[%s9322_s5 + $0x250] sm:$0xff] }
 0x372   :  { %4427 = vmatprep.subr.mxu1 %v3639_v28  ;;  %4462 = vmatprep.subr.mxu0 %v3671_v41  ;;  %v3739_v3 = vld [vmem:[%s9322_s5 + $0x3d0] sm:$0xff]  ;;  %v3706_v28 = vld [vmem:[%s9322_s5 + $0x2c8] sm:$0xff] }
 0x373   :  { %4428 = vmatpush3.msra.mxu1 %v3623_v49  ;;  %4463 = vmatpush3.msra.mxu0 %v3655_v23  ;;  %v3723_v41 = vld [vmem:[%s9322_s5 + $0x350] sm:$0xff]  ;;  %v3690_v23 = vld [vmem:[%s9322_s5 + $0x248] sm:$0xff] }
 0x374   :  { %4429 = vmatprep.subr.mxu1 %v3638_v45  ;;  %4464 = vmatprep.subr.mxu0 %v3670_v19  ;;  %v2816_v7 = vpop.f32.mrf.mxu1  ;;  %v3738_v45 = vld [vmem:[%s9322_s5 + $0x3c8] sm:$0xff]  ;;  %v3705_v19 = vld [vmem:[%s9322_s5 + $0x2c0] sm:$0xff] }
 0x375   :  { %4430 = vmatpush3.msra.mxu1 %v3622_v47  ;;  %4465 = vmatpush3.msra.mxu0 %v3654_v50  ;;  %v3722_v47 = vld [vmem:[%s9322_s5 + $0x348] sm:$0xff]  ;;  %v2817_v50 = vadd.f32 %v2816_v7, %v6681_v25 }
 0x376   :  { %4431 = vmatprep.subr.mxu1 %v3637_v11  ;;  %4466 = vmatprep.subr.mxu0 %v3669_v22  ;;  %v2818_v12 = vpop.f32.mrf.mxu1  ;;  %v3689_v11 = vld [vmem:[%s9322_s5 + $0x240] sm:$0xff] }
 0x377   :  { %4432 = vmatpush3.msra.mxu1 %v3621_v35  ;;  %4467 = vmatpush3.msra.mxu0 %v3653_v31  ;;  %v2819_v49 = vadd.f32 %v2818_v12, %v10106_v37  ;;  %v3737_v22 = vld [vmem:[%s9322_s5 + $0x3c0] sm:$0xff]  ;;  %v2887_v35 = vpop.f32.mrf.mxu0  ;;  %v3704_v31 = vld [vmem:[%s9322_s5 + $0x2b8] sm:$0xff] }
 0x378   :  { %4433 = vmatprep.subr.mxu1 %v3636_v61  ;;  %4468 = vmatprep.subr.mxu0 %v3668_v44  ;;  %v3721_v61 = vld [vmem:[%s9322_s5 + $0x340] sm:$0xff] }
 0x379   :  { %4434 = vmatpush3.msra.mxu1 %v3620_v16  ;;  %4469 = vmatpush3.msra.mxu0 %v3652_v29  ;;  %v3033_v44 = vmul.f32 %v2819_v49, %v2817_v50  ;;  %v3688_v16 = vld [vmem:[%s9322_s5 + $0x238] sm:$0xff]  ;;  %v3713_v49 = vld [vmem:[%s9322_s5 + $0x300] sm:$0xff]  ;;  %v3775_v50 = vld [vmem:[%s9322_s5 + $0x4f0] sm:$0xff] }
 0x37a   :  { %4435 = vmatprep.subr.mxu1 %v3635_v1  ;;  %4470 = vmatprep.subr.mxu0 %v3667_v26  ;;  %v3736_v29 = vld [vmem:[%s9322_s5 + $0x3b8] sm:$0xff]  ;;  %v3703_v1 = vld [vmem:[%s9322_s5 + $0x2b0] sm:$0xff] }
 0x37b   :  { %4436 = vmatpush3.msra.mxu1 %v3619_v9  ;;  %4471 = vmatpush3.msra.mxu0 %v3651_v56  ;;  %v3720_v26 = vld [vmem:[%s9322_s5 + $0x338] sm:$0xff]  ;;  %v2888_v9 = vadd.f32 %v2887_v35, %v6714_v30  ;;  %v3687_v56 = vld [vmem:[%s9322_s5 + $0x230] sm:$0xff]  ;;  %v3758_v35 = vld [vmem:[%s9322_s5 + $0x468] sm:$0xff] }
 0x37c   :  { %4437 = vmatprep.subr.mxu1 %v3634_v59  ;;  %4472 = vmatprep.subr.mxu0 %v3666_v10  ;;  %v3735_v59 = vld [vmem:[%s9322_s5 + $0x3b0] sm:$0xff]  ;;  %v2889_v10 = vpop.f32.mrf.mxu0 }
 0x37d   :  { %4438 = vmatpush3.msra.mxu1 %v3618_v40  ;;  %4473 = vmatpush3.msra.mxu0 %v3650_v46  ;;  %v3702_v40 = vld [vmem:[%s9322_s5 + $0x2a8] sm:$0xff]  ;;  %v3719_v46 = vld [vmem:[%s9322_s5 + $0x330] sm:$0xff] }
 0x37e   :  { %4439 = vmatprep.subr.mxu1 %v3633_v27  ;;  %4474 = vmatprep.subr.mxu0 %v3665_v57  ;;  %v3034_v27 = vmul.f32 %v3033_v44, %v2888_v9  ;;  %v3686_v57 = vld [vmem:[%s9322_s5 + $0x228] sm:$0xff]  ;;  %v3756_v44 = vld [vmem:[%s9322_s5 + $0x458] sm:$0xff]  ;;  %v3769_v9 = vld [vmem:[%s9322_s5 + $0x4c0] sm:$0xff] }
 0x37f   :  { %4440 = vmatpush3.msra.mxu1 %v3617_v36  ;;  %4475 = vmatpush3.msra.mxu0 %v3649_v51  ;;  %v3734_v36 = vld [vmem:[%s9322_s5 + $0x3a8] sm:$0xff]  ;;  %v3701_v51 = vld [vmem:[%s9322_s5 + $0x2a0] sm:$0xff] }
 0x380   :  { %3842 = vmatmul.mubr.f32.vlgmr.msra.gmra.mxu1 %v10514_v20  ;;  %3912 = vmatmul.mubr.f32.vlgmr.msra.gmra.mxu0 %v10515_v39  ;;  %v3733_v20 = vld [vmem:[%s9322_s5 + $0x3a0] sm:$0xff]  ;;  %v3700_v39 = vld [vmem:[%s9322_s5 + $0x298] sm:$0xff] }
 0x381   :  { %4479 = vmatprep.subr.mxu1 %v3712_v17  ;;  %3981 = vmatprep.mubr.f32.mxu1 %v10516_v8  ;;  %v3718_v17 = vld [vmem:[%s9322_s5 + $0x328] sm:$0xff]  ;;  %v3717_v8 = vld [vmem:[%s9322_s5 + $0x320] sm:$0xff] }
 0x382   :  { %4480 = vmatpush3.msra.mxu1 %v3696_v14  ;;  %4514 = vmatprep.subr.mxu0 %v3744_v52  ;;  %v2890_v14 = vadd.f32 %v2889_v10, %v6743_v48  ;;  %v3685_v52 = vld [vmem:[%s9322_s5 + $0x220] sm:$0xff]  ;;  %v3752_v10 = vld [vmem:[%s9322_s5 + $0x438] sm:$0xff] }
 0x383   :  { %4481 = vmatprep.subr.mxu1 %v3711_v63  ;;  %4515 = vmatpush3.msra.mxu0 %v3728_v6 }
 0x384   :  { %4482 = vmatpush3.msra.mxu1 %v3695_v5  ;;  %4516 = vmatprep.subr.mxu0 %v3743_v15  ;;  %v3035_v5 = vmul.f32 %v3034_v27, %v2890_v14  ;;  %v3684_v15 = vld [vmem:[%s9322_s5 + $0x218] sm:$0xff]  ;;  %v3766_v27 = vld [vmem:[%s9322_s5 + $0x4a8] sm:$0xff] }
 0x385   :  { %4483 = vmatprep.subr.mxu1 %v3710_v58  ;;  %4517 = vmatpush3.msra.mxu0 %v3727_v60  ;;  %v3732_v60 = vld [vmem:[%s9322_s5 + $0x398] sm:$0xff] }
 0x386   :  { %4484 = vmatpush3.msra.mxu1 %v3694_v55  ;;  %4518 = vmatprep.subr.mxu0 %v3742_v38  ;;  %v3699_v55 = vld [vmem:[%s9322_s5 + $0x290] sm:$0xff] }
 0x387   :  { %4485 = vmatprep.subr.mxu1 %v3709_v62  ;;  %4519 = vmatpush3.msra.mxu0 %v3726_v24  ;;  %v3716_v62 = vld [vmem:[%s9322_s5 + $0x318] sm:$0xff]  ;;  %v3683_v24 = vld [vmem:[%s9322_s5 + $0x210] sm:$0xff] }
 0x388   :  { %4486 = vmatpush3.msra.mxu1 %v3693_v54  ;;  %4520 = vmatprep.subr.mxu0 %v3741_v18 }
 0x389   :  { %4487 = vmatprep.subr.mxu1 %v3708_v13  ;;  %4521 = vmatpush3.msra.mxu0 %v3725_v2  ;;  %v3731_v13 = vld [vmem:[%s9322_s5 + $0x390] sm:$0xff]  ;;  %v3698_v2 = vld [vmem:[%s9322_s5 + $0x288] sm:$0xff] }
 0x38a   :  { %4488 = vmatpush3.msra.mxu1 %v3692_v0  ;;  %4522 = vmatprep.subr.mxu0 %v3740_v53  ;;  %v3715_v0 = vld [vmem:[%s9322_s5 + $0x310] sm:$0xff]  ;;  %v3682_v53 = vld [vmem:[%s9322_s5 + $0x208] sm:$0xff] }
 0x38b   :  { %4489 = vmatprep.subr.mxu1 %v3707_v4  ;;  %4523 = vmatpush3.msra.mxu0 %v3724_v42  ;;  %v3730_v4 = vld [vmem:[%s9322_s5 + $0x388] sm:$0xff]  ;;  %v3697_v42 = vld [vmem:[%s9322_s5 + $0x280] sm:$0xff] }
 0x38c   :  { %4490 = vmatpush3.msra.mxu1 %v3691_v32  ;;  %4524 = vmatprep.subr.mxu0 %v3739_v3  ;;  %v3714_v3 = vld [vmem:[%s9322_s5 + $0x308] sm:$0xff] }
 0x38d   :  { %4491 = vmatprep.subr.mxu1 %v3706_v28  ;;  %4525 = vmatpush3.msra.mxu0 %v3723_v41  ;;  %v3681_v28 = vld [vmem:[%s9322_s5 + $0x200] sm:$0xff] }
 0x38e   :  { %4492 = vmatpush3.msra.mxu1 %v3690_v23  ;;  %4526 = vmatprep.subr.mxu0 %v3738_v45  ;;  %v3729_v41 = vld [vmem:[%s9322_s5 + $0x380] sm:$0xff]  ;;  %v3776_v45 = vld [vmem:[%s9322_s5 + $0x4f8] sm:$0xff] }
 0x38f   :  { %4493 = vmatprep.subr.mxu1 %v3705_v19  ;;  %4527 = vmatpush3.msra.mxu0 %v3722_v47  ;;  %v3760_v19 = vld [vmem:[%s9322_s5 + $0x478] sm:$0xff]  ;;  %v10517_v47 = vld [vmem:[#allocation25_spill] sm:$0xff] }
 0x390   :  { %4494 = vmatpush3.msra.mxu1 %v3689_v11  ;;  %4528 = vmatprep.subr.mxu0 %v3737_v22  ;;  %v3759_v11 = vld [vmem:[%s9322_s5 + $0x470] sm:$0xff]  ;;  %v3774_v22 = vld [vmem:[%s9322_s5 + $0x4e8] sm:$0xff] }
 0x391   :  { %4495 = vmatprep.subr.mxu1 %v3704_v31  ;;  %4529 = vmatpush3.msra.mxu0 %v3721_v61  ;;  %v3773_v31 = vld [vmem:[%s9322_s5 + $0x4e0] sm:$0xff]  ;;  %v3772_v61 = vld [vmem:[%s9322_s5 + $0x4d8] sm:$0xff] }
 0x392   :  { %4496 = vmatpush3.msra.mxu1 %v3688_v16  ;;  %4530 = vmatprep.subr.mxu0 %v3736_v29  ;;  %v3771_v16 = vld [vmem:[%s9322_s5 + $0x4d0] sm:$0xff] }
 0x393   :  { %4497 = vmatprep.subr.mxu1 %v3703_v1  ;;  %4531 = vmatpush3.msra.mxu0 %v3720_v26  ;;  %v3755_v29 = vld [vmem:[%s9322_s5 + $0x450] sm:$0xff]  ;;  %v3770_v1 = vld [vmem:[%s9322_s5 + $0x4c8] sm:$0xff] }
 0x394   :  { %4498 = vmatpush3.msra.mxu1 %v3687_v56  ;;  %4532 = vmatprep.subr.mxu0 %v3735_v59  ;;  %v3754_v26 = vld [vmem:[%s9322_s5 + $0x448] sm:$0xff]  ;;  %v3753_v56 = vld [vmem:[%s9322_s5 + $0x440] sm:$0xff]  ;;  %v3768_v59 = vld [vmem:[%s9322_s5 + $0x4b8] sm:$0xff] }
 0x395   :  { %4499 = vmatprep.subr.mxu1 %v3702_v40  ;;  %4533 = vmatpush3.msra.mxu0 %v3719_v46  ;;  %v3767_v40 = vld [vmem:[%s9322_s5 + $0x4b0] sm:$0xff] }
 0x396   :  { %4500 = vmatpush3.msra.mxu1 %v3686_v57  ;;  %4534 = vmatprep.subr.mxu0 %v3734_v36  ;;  %v2958_v63 = vpop.f32.mrf.mxu1  ;;  %v3029_v6 = vpop.f32.mrf.mxu0  ;;  %v3751_v46 = vld [vmem:[%s9322_s5 + $0x430] sm:$0xff]  ;;  %v3750_v57 = vld [vmem:[%s9322_s5 + $0x428] sm:$0xff]  ;;  %v3765_v36 = vld [vmem:[%s9322_s5 + $0x4a0] sm:$0xff] }
 0x397   :  { %4501 = vmatprep.subr.mxu1 %v3701_v51  ;;  %4535 = vmatpush3.msra.mxu0 %v3718_v17  ;;  %v2959_v58 = vadd.f32 %v2958_v63, %v10506_v34  ;;  %v3030_v32 = vadd.f32 %v3029_v6, %v6986_v43  ;;  %v3749_v51 = vld [vmem:[%s9322_s5 + $0x420] sm:$0xff]  ;;  %v3764_v17 = vld [vmem:[%s9322_s5 + $0x498] sm:$0xff]  ;;  %v3747_v6 = vld [vmem:[%s9322_s5 + $0x410] sm:$0xff] }
 0x398   :  { %4502 = vmatpush3.msra.mxu1 %v3685_v52  ;;  %4536 = vmatprep.subr.mxu0 %v3733_v20  ;;  %v2960_v38 = vpop.f32.mrf.mxu1  ;;  %v4863_v7 = vpop.f32.mrf.mxu0  ;;  %v3748_v20 = vld [vmem:[%s9322_s5 + $0x418] sm:$0xff] }
 0x399   :  { %4503 = vmatprep.subr.mxu1 %v3700_v39  ;;  %v3036_v54 = vmul.f32 %v3035_v5, %v2959_v58  ;;  %4537 = vmatpush3.msra.mxu0 %v3717_v8  ;;  %v2961_v18 = vadd.f32 %v2960_v38, %v6976_v33  ;;  %v3763_v39 = vld [vmem:[%s9322_s5 + $0x490] sm:$0xff]  ;;  %v3761_v7 = vld [vmem:[%s9322_s5 + $0x480] sm:$0xff] }
 0x39a   :  { %4504 = vmatpush3.msra.mxu1 %v3684_v15  ;;  %4538 = vmatprep.subr.mxu0 %v3732_v60  ;;  %v3762_v15 = vld [vmem:[%s9322_s5 + $0x488] sm:$0xff] }
 0x39b   :  { %4505 = vmatprep.subr.mxu1 %v3699_v55  ;;  %v3037_v12 = vmul.f32 %v3036_v54, %v2961_v18  ;;  %4539 = vmatpush3.msra.mxu0 %v3716_v62  ;;  %v3746_v60 = vld [vmem:[%s9322_s5 + $0x408] sm:$0xff]  ;;  %v3745_v62 = vld [vmem:[%s9322_s5 + $0x400] sm:$0xff] }
 0x39c   :  { %4506 = vmatpush3.msra.mxu1 %v3683_v24  ;;  %4540 = vmatprep.subr.mxu0 %v3731_v13 }
 0x39d   :  { %4507 = vmatprep.subr.mxu1 %v3698_v2  ;;  %4541 = vmatpush3.msra.mxu0 %v3715_v0  ;;  %v3038_v23 = vmul.f32 %v3037_v12, %v3030_v32 }
 0x39e   :  { %4508 = vmatpush3.msra.mxu1 %v3682_v53  ;;  %4542 = vmatprep.subr.mxu0 %v3730_v4 }
 0x39f   :  { %4509 = vmatprep.subr.mxu1 %v3697_v42  ;;  %4543 = vmatpush3.msra.mxu0 %v3714_v3 }
 0x3a0   :  { %4510 = vmatpush3.msra.mxu1 %v3681_v28  ;;  %4544 = vmatprep.subr.mxu0 %v3729_v41 }
 0x3a1   :  { %3982 = vmatmul.mubr.f32.vlgmr.msra.gmra.mxu1 %v10517_v47  ;;  %4545 = vmatpush3.msra.mxu0 %v3713_v49 }
 0x3a2   :  { %4051 = vmatprep.mubr.f32.mxu0 %v3038_v23  ;;  %4549 = vmatprep.subr.mxu1 %v3776_v45 }
 0x3a3   :  { %4052 = vmatmul.mubr.f32.vlgmr.msra.gmra.mxu0 %v8786_v21  ;;  %4550 = vmatpush3.msra.mxu1 %v3760_v19  ;;  %v3757_v21 = vld [vmem:[%s9322_s5 + $0x460] sm:$0xff]  ;;  %s5190_s5 = smov [#allocation2]  }
 0x3a4   :  { %4551 = vmatprep.subr.mxu1 %v3775_v50  ;;  %s4146_s17 = sshll.u32 %s5190_s5, 4  ;;  %s4147_s17 = int_to_ptr.vmem [resolvable:$true] %s4146_s17 }
 0x3a5   :  { %4552 = vmatpush3.msra.mxu1 %v3759_v11  ;;  %s5166_s18 = scalar_lea.vmem %s4147_s17, 128  ;;  %p5171_p1 = scmp.lt.s32.totalorder %s4147_s17, %s4147_s17 }
 0x3a6   :  { %4553 = vmatprep.subr.mxu1 %v3774_v22  ;;  %p5167_p0 = scmp.ne.s32.totalorder %s4147_s17, %s5166_s18  ;;  %p5172_p2 = scmp.lt.s32.totalorder %s5166_s18, %s5166_s18 }
 0x3a7   :  { %4554 = vmatpush3.msra.mxu1 %v3758_v35 }
 0x3a8   :  { %4555 = vmatprep.subr.mxu1 %v3773_v31  ;;  %p5173_p3 = por %p5172_p2, %p5171_p1 }
 0x3a9   :  { %4556 = vmatpush3.msra.mxu1 %v3757_v21 }
 0x3aa   :  { %4557 = vmatprep.subr.mxu1 %v3772_v61  ;;  %p5174_p4 = pnand %p5173_p3, %p5167_p0 }
 0x3ab   :  { %4558 = vmatpush3.msra.mxu1 %v3756_v44 }
 0x3ac   :  { %4559 = vmatprep.subr.mxu1 %v3771_v16 }
 0x3ad   :  { %4560 = vmatpush3.msra.mxu1 %v3755_v29 }
 0x3ae   :  { %4561 = vmatprep.subr.mxu1 %v3770_v1 }
 0x3af   :  { %4562 = vmatpush3.msra.mxu1 %v3754_v26 }
 0x3b0   :  { %4563 = vmatprep.subr.mxu1 %v3769_v9 }
 0x3b1   :  { %4564 = vmatpush3.msra.mxu1 %v3753_v56 }
 0x3b2   :  { %4565 = vmatprep.subr.mxu1 %v3768_v59 }
 0x3b3   :  { %4566 = vmatpush3.msra.mxu1 %v3752_v10 }
 0x3b4   :  { %4567 = vmatprep.subr.mxu1 %v3767_v40 }
 0x3b5   :  { %4568 = vmatpush3.msra.mxu1 %v3751_v46 }
 0x3b6   :  { %4569 = vmatprep.subr.mxu1 %v3766_v27 }
 0x3b7   :  { %4570 = vmatpush3.msra.mxu1 %v3750_v57 }
 0x3b8   :  { %v3105_v14 = vpop.f32.mrf.mxu1  ;;  %v3176_v52 = vpop.f32.mrf.mxu0  ;;  %4571 = vmatprep.subr.mxu1 %v3765_v36 }
 0x3b9   :  { %4572 = vmatpush3.msra.mxu1 %v3749_v51  ;;  %v3106_v8 = vadd.f32 %v3105_v14, %v6681_v25  ;;  %v3177_v55 = vadd.f32 %v3176_v52, %v6714_v30 }
 0x3ba   :  { %v3107_v63 = vpop.f32.mrf.mxu1  ;;  %4573 = vmatprep.subr.mxu1 %v3764_v17  ;;  %v3178_v58 = vpop.f32.mrf.mxu0 }
 0x3bb   :  { %v3108_v5 = vadd.f32 %v3107_v63, %v10106_v37  ;;  %4574 = vmatpush3.msra.mxu1 %v3748_v20  ;;  %v3179_v24 = vadd.f32 %v3178_v58, %v6743_v48 }
 0x3bc   :  { %4575 = vmatprep.subr.mxu1 %v3763_v39 }
 0x3bd   :  { %v3322_v38 = vmul.f32 %v3108_v5, %v3106_v8  ;;  %4576 = vmatpush3.msra.mxu1 %v3747_v6 }
 0x3be   :  { %4577 = vmatprep.subr.mxu1 %v3762_v15 }
 0x3bf   :  { %v3323_v54 = vmul.f32 %v3322_v38, %v3177_v55  ;;  %4578 = vmatpush3.msra.mxu1 %v3746_v60 }
 0x3c0   :  { %4579 = vmatprep.subr.mxu1 %v3761_v7 }
 0x3c1   :  { %v3324_v18 = vmul.f32 %v3323_v54, %v3179_v24  ;;  %4580 = vmatpush3.msra.mxu1 %v3745_v62 }
 0x3da   :  { %v3247_v13 = vpop.f32.mrf.mxu1  ;;  %v3318_v2 = vpop.f32.mrf.mxu0 }
 0x3db   :  { %v3248_v0 = vadd.f32 %v3247_v13, %v10506_v34  ;;  %v3319_v32 = vadd.f32 %v3318_v2, %v6986_v43 }
 0x3dc   :  { %v3249_v53 = vpop.f32.mrf.mxu1  ;;  %v4898_v12 = vpop.f32.mrf.mxu0 }
 0x3dd   :  { %v3325_v4 = vmul.f32 %v3324_v18, %v3248_v0  ;;  %v3250_v42 = vadd.f32 %v3249_v53, %v6976_v33 }
 0x3df   :  { %v3326_v3 = vmul.f32 %v3325_v4, %v3250_v42 }
 0x3e1   :  { %v3327_v28 = vmul.f32 %v3326_v3, %v3319_v32 }
 0x3fc   :  { %v3394_v41 = vpop.f32.mrf.mxu1  ;;  %v3465_v19 = vpop.f32.mrf.mxu0 }
 0x3fd   :  { %v3395_v45 = vadd.f32 %v3394_v41, %v6681_v25  ;;  %v3466_v50 = vadd.f32 %v3465_v19, %v6714_v30 }
 0x3fe   :  { %v3396_v49 = vpop.f32.mrf.mxu1  ;;  %v3467_v11 = vpop.f32.mrf.mxu0 }
 0x3ff   :  { %v3397_v23 = vadd.f32 %v3396_v49, %v10106_v37  ;;  %v3468_v35 = vadd.f32 %v3467_v11, %v6743_v48 }
 0x401   :  { %v3611_v47 = vmul.f32 %v3397_v23, %v3395_v45 }
 0x403   :  { %v3612_v22 = vmul.f32 %v3611_v47, %v3466_v50 }
 0x405   :  { %v3613_v61 = vmul.f32 %v3612_v22, %v3468_v35 }
 0x41e   :  { %v3536_v31 = vpop.f32.mrf.mxu1  ;;  %v3607_v21 = vpop.f32.mrf.mxu0 }
 0x41f   :  { %v3537_v44 = vadd.f32 %v3536_v31, %v10506_v34  ;;  %v3608_v25 = vadd.f32 %v3607_v21, %v6986_v43 }
 0x420   :  { %v3538_v16 = vpop.f32.mrf.mxu1  ;;  %v4933_v29 = vpop.f32.mrf.mxu0 }
 0x421   :  { %v3614_v1 = vmul.f32 %v3613_v61, %v3537_v44  ;;  %v3539_v37 = vadd.f32 %v3538_v16, %v6976_v33 }
 0x423   :  { %v3615_v26 = vmul.f32 %v3614_v1, %v3539_v37 }
 0x425   :  { %v3616_v9 = vmul.f32 %v3615_v26, %v3608_v25 }
 0x427   :  { %4121 = vmatprep.mubr.f32.mxu1 %v3616_v9 }
 0x428   :  { %4122 = vmatmul.mubr.f32.vlgmr.msra.gmra.mxu1 %v3327_v28 }
 0x440   :  { %v4441_v30 = vpop.f32.mrf.mxu1  ;;  %v4476_v56 = vpop.f32.mrf.mxu0 }
 0x442   :  { %v4442_v59 = vpop.f32.mrf.mxu1  ;;  %v4477_v48 = vpop.f32.mrf.mxu0 }
 0x443   :  { %v4443_v27 = vadd.f32 %v4442_v59, %v4441_v30  ;;  %v4478_v34 = vadd.f32 %v4477_v48, %v4476_v56 }
 0x445   :  { %v3914_v51 = vadd.f32 %v4478_v34, %v4443_v27 }
 0x461   :  { %v4511_v10 = vpop.f32.mrf.mxu1 }
 0x463   :  { %v4546_v40 = vpop.f32.mrf.mxu0  ;;  %v4512_v46 = vpop.f32.mrf.mxu1 }
 0x464   :  { %v4513_v36 = vadd.f32 %v4512_v46, %v4511_v10 }
 0x465   :  { %v4547_v57 = vpop.f32.mrf.mxu0 }
 0x466   :  { %v4548_v17 = vadd.f32 %v4547_v57, %v4546_v40  ;;  %v3984_v14 = vadd.f32 %v4513_v36, %v3914_v51 }
 0x468   :  { %v4054_v52 = vadd.f32 %v4548_v17, %v3984_v14 }
 0x4e8   :  { %v4581_v33 = vpop.f32.mrf.mxu1 }
 0x4ea   :  { %v4582_v43 = vpop.f32.mrf.mxu1 }
 0x4eb   :  { %v4583_v20 = vadd.f32 %v4582_v43, %v4581_v33 }
 0x4ed   :  { %v4124_v39 = vadd.f32 %v4583_v20, %v4054_v52 }
 0x4ef   :  { %v4128_v63 = vsel %vm4127_vm4, %v4124_v39, -inf }
 0x4f0   :  { %4129 = vmax.xlane.f32.xlu0 %v4128_v63 }
 0x579   :  { %v4130_v6 = vpop.xlane.xlu0 %4129 }
 0x57a   :  { %v4131_v8 = vsub.f32 %v4124_v39, %v4130_v6 }
 0x57c   :  { %v4132_v5 = vmul.f32 1.442695, %v4131_v8 }
 0x57e   :  { %4937 = vpow2.f32 %v4132_v5 }
 0x58b   :  { %v4938_v15 = vpop.eup %4937 }
 0x58c   :  { %v4134_v58 = vsel %vm4127_vm4, %v4938_v15, 0.0 }
 0x58d   :  { %4135 = vadd.xlane.f32.xlu0 %v4134_v58 }
 0x616   :  { %v4136_v60 = vpop.xlane.xlu0 %4135 }
 0x617   :  { %4939 = vrcp.f32 %v4136_v60 }
 0x624   :  { %v4940_v55 = vpop.eup %4939 }
 0x625   :  { %v4138_v38 = vmul.f32 %v4940_v55, %v4938_v15 }
 0x627   :  { %4139 = vst.msk [vmem:[#allocation2] sm:$0xff] %vm4127_vm4, %v4138_v38 }
 0x628   :  { %5177 = shalt.err (!%p5174_p4)
}
 0x629   :  { %4149 = dma.vmem_to_hbm [thread:$0]  %s4147_s17, 128, %s9323_s6, [#allocation3]  }
 0x62a   :  { %5186 = dma.done.wait [#allocation3], 128  }
 0x62b   :  { %5187 = vsyncadd [#allocation3], 4294967168 }
 0x62c   :  { %4153 = vsyncpa [#allocation3], 1 }

</bundles_post_ra>
